<compile_context>
chip_gen: v6e
topology: v6e:2x2x1
jax: 0.10.0
libtpu: 0.0.40
codegen_flags: <defaults>
</compile_context>

<pallas_src>
import functools

import jax
import jax.numpy as jnp
import numpy as np
from jax.experimental import pallas as pl
from jax.experimental.pallas import tpu as pltpu

NORM_EPS = 1e-6


def _layernorm(x, w, b, eps=NORM_EPS):
    mu = jnp.mean(x, axis=-1, keepdims=True)
    var = jnp.mean(jnp.square(x - mu), axis=-1, keepdims=True)
    return (x - mu) * jax.lax.rsqrt(var + eps) * w + b


def _mm(a, b):
    # bf16 MXU operands, f32 accumulation.
    return jnp.dot(a.astype(jnp.bfloat16), b.astype(jnp.bfloat16),
                   preferred_element_type=jnp.float32)


# -------------------- fused ViT kernel: grid = (batch_block, layer)
def vit_kernel(
    patch_ref, pw_ref, pe_ref,
    ln1w_ref, ln1b_ref, qkvw_ref, qkvb_ref, ow_ref, ob_ref,
    ln2w_ref, ln2b_ref, w1_ref, b1_ref, w2_ref, b2_ref,
    nw_ref, nb_ref,
    out_ref,
    x_sc,
    *, n_heads, b_blk, s_pad, s_real,
):
    l = pl.program_id(1)
    n_layers = pl.num_programs(1)
    M, D = x_sc.shape                                 # M = b_blk * s_pad
    dh = D // n_heads
    scale = 1.0 / float(np.sqrt(dh))

    # ---- first layer step: fused patch embedding + pos-embed (+ cls row,
    #      patch_b already folded into pe_ref host-side).
    @pl.when(l == 0)
    def _():
        x_sc[...] = _mm(patch_ref[...], pw_ref[...]) + pe_ref[...]

    x = x_sc[...]                                     # (M, D) f32 residual

    # ---- self-attention branch (pre-norm), fused QKV projection
    h = _layernorm(x, ln1w_ref[...], ln1b_ref[...])
    qkv = _mm(h, qkvw_ref[...]) + qkvb_ref[...]       # (M, 3D) f32
    q = qkv[:, :D] * scale                            # scale q once
    k = qkv[:, D:2 * D]
    v = qkv[:, 2 * D:]

    # key-padding mask: padded key columns get a large negative bias
    col = jax.lax.broadcasted_iota(jnp.int32, (s_pad, s_pad), 1)
    kmask = col < s_real

    attn_rows = []
    for b in range(b_blk):                            # static loop over images
        rows = slice(b * s_pad, (b + 1) * s_pad)
        attn_b = None
        for hh in range(n_heads):                     # static loop over heads
            sl = slice(hh * dh, (hh + 1) * dh)
            s = jax.lax.dot_general(
                q[rows, sl].astype(jnp.bfloat16),
                k[rows, sl].astype(jnp.bfloat16),
                (((1,), (1,)), ((), ())),
                preferred_element_type=jnp.float32)   # (s_pad, s_pad)
            s = jnp.where(kmask, s, -1e30)
            s = s - jnp.max(s, axis=-1, keepdims=True)
            p = jnp.exp(s)
            p = p / jnp.sum(p, axis=-1, keepdims=True)
            ctx = _mm(p, v[rows, sl])                 # (s_pad, dh)
            # fused output projection: lane-dense N = D matmul per head
            contrib = _mm(ctx, ow_ref[sl, :])         # (s_pad, D)
            attn_b = contrib if attn_b is None else attn_b + contrib
        attn_rows.append(attn_b)

    x = x + jnp.concatenate(attn_rows, axis=0) + ob_ref[...]

    # ---- MLP branch (pre-norm)
    h2 = _layernorm(x, ln2w_ref[...], ln2b_ref[...])
    h2 = _mm(h2, w1_ref[...]) + b1_ref[...]
    # TODO(synk): PyTorch nn.GELU defaults to the exact erf GELU; using the
    # tanh approximation here for robust Mosaic (EUP) lowering.
    h2 = jax.nn.gelu(h2, approximate=True)
    x = x + _mm(h2, w2_ref[...]) + b2_ref[...]

    x_sc[...] = x                                     # carry residual stream

    # ---- final LayerNorm + cls-token pooling (only last layer step)
    @pl.when(l == n_layers - 1)
    def _():
        cls = jnp.concatenate(
            [x[b * s_pad:b * s_pad + 1, :] for b in range(b_blk)], axis=0)
        out_ref[...] = _layernorm(cls, nw_ref[...], nb_ref[...])


# -------------------- host-side data prep (pure data movement)
def extract_patches(imgs, patch_size):
    B, C, H, W = imgs.shape
    P = patch_size
    Hp, Wp = H // P, W // P
    # matches Conv2d(stride=P).flatten(-2).transpose(-1,-2) patch ordering
    p = imgs.reshape(B, C, Hp, P, Wp, P)
    p = p.transpose(0, 2, 4, 1, 3, 5)                 # (B, Hp, Wp, C, P, P)
    return p.reshape(B, Hp * Wp, C * P * P)


def _pad_and_fold(imgs, params, patch_size):
    """Extract patches, prepend a zero cls row, pad S to a multiple of 8 and
    fold cls_token / patch_b into a positional table.

    Row 0 of the patch matrix is zeros and row 0 of pe_full is cls_token, so
    0 @ W + cls_token == cls_token.  Real rows get pe + patch_b; padded rows
    are all-zero (their key columns are masked in-kernel).
    """
    patches = extract_patches(imgs, patch_size)       # (B, N, CPP)
    B, N, CPP = patches.shape
    D = params["patch_w"].shape[1]
    s_real = N + 1
    s_pad = ((s_real + 7) // 8) * 8
    n_extra = s_pad - s_real
    patches_ext = jnp.concatenate(
        [jnp.zeros((B, 1, CPP), patches.dtype),
         patches,
         jnp.zeros((B, n_extra, CPP), patches.dtype)], axis=1)  # (B, s_pad, CPP)
    pe_full = jnp.concatenate(
        [params["cls_token"],
         params["pe"] + params["patch_b"],
         jnp.zeros((n_extra, D), jnp.float32)], axis=0)         # (s_pad, D)
    return patches_ext, pe_full, s_real, s_pad


# -------------------- wrapper
def vit_forward(imgs, params, *, patch_size, n_heads, b_blk=None):
    B = imgs.shape[0]
    if b_blk is None:
        b_blk = min(B, 4)
    assert B % b_blk == 0, "batch must be divisible by the batch block size"

    patches_ext, pe_full, s_real, s_pad = _pad_and_fold(imgs, params, patch_size)
    CPP = patches_ext.shape[2]
    D = params["patch_w"].shape[1]
    Dh = params["w1"].shape[2]
    L = params["qkv_w"].shape[0]
    M = b_blk * s_pad

    patches_flat = patches_ext.reshape(B * s_pad, CPP)   # (B*s_pad, CPP)
    pe_tiled = jnp.tile(pe_full, (b_blk, 1))              # (M, D)

    kernel = functools.partial(vit_kernel, n_heads=n_heads, b_blk=b_blk,
                               s_pad=s_pad, s_real=s_real)
    const = lambda r, c: pl.BlockSpec((r, c), lambda bb, l: (0, 0))
    per_layer = lambda r, c: pl.BlockSpec((None, r, c), lambda bb, l: (l, 0, 0))

    out = pl.pallas_call(
        kernel,
        out_shape=jax.ShapeDtypeStruct((B // b_blk, b_blk, D), jnp.float32),
        grid=(B // b_blk, L),
        in_specs=[
            pl.BlockSpec((M, CPP), lambda bb, l: (bb, 0)),  # patches (blocked)
            const(CPP, D),                      # patch_w (bf16)
            const(M, D),                        # pe (cls + patch_b folded, tiled)
            per_layer(1, D), per_layer(1, D),           # sa_norm scale/bias
            per_layer(D, 3 * D), per_layer(1, 3 * D),   # fused qkv (bf16 w)
            per_layer(D, D), per_layer(1, D),           # out proj (bf16 w)
            per_layer(1, D), per_layer(1, D),           # mlp_norm scale/bias
            per_layer(D, Dh), per_layer(1, Dh),         # linear1 (bf16 w)
            per_layer(Dh, D), per_layer(1, D),          # linear2 (bf16 w)
            const(1, D), const(1, D),                   # final norm scale/bias
        ],
        out_specs=pl.BlockSpec((None, b_blk, D), lambda bb, l: (bb, 0, 0)),
        scratch_shapes=[
            pltpu.VMEM((M, D), jnp.float32),    # residual-stream carry
        ],
        compiler_params=pltpu.CompilerParams(
            dimension_semantics=("parallel", "arbitrary"),
            vmem_limit_bytes=48 * 1024 * 1024,
        ),
    )(
        patches_flat,
        params["patch_w"], pe_tiled,
        params["ln1_w"], params["ln1_b"], params["qkv_w"], params["qkv_b"],
        params["out_w"], params["out_b"], params["ln2_w"], params["ln2_b"],
        params["w1"], params["b1"], params["w2"], params["b2"],
        params["norm_w"], params["norm_b"],
    )
    return out.reshape(B, D)


# -------------------- pure-JAX reference (same math, no Pallas)
def _reference_single(patches_pad, pe_full, params, n_heads, s_real):
    D = params["patch_w"].shape[1]
    s_pad = patches_pad.shape[0]
    x = _mm(patches_pad, params["patch_w"]) + pe_full
    dh = D // n_heads
    scale = 1.0 / float(np.sqrt(dh))
    L = params["qkv_w"].shape[0]
    col = jax.lax.broadcasted_iota(jnp.int32, (s_pad, s_pad), 1)
    kmask = col < s_real
    for i in range(L):
        h = _layernorm(x, params["ln1_w"][i], params["ln1_b"][i])
        qkv = _mm(h, params["qkv_w"][i]) + params["qkv_b"][i]
        q = qkv[:, :D] * scale
        k = qkv[:, D:2 * D]
        v = qkv[:, 2 * D:]
        attn = None
        for hh in range(n_heads):
            sl = slice(hh * dh, (hh + 1) * dh)
            s = jnp.dot(q[:, sl].astype(jnp.bfloat16),
                        k[:, sl].astype(jnp.bfloat16).T,
                        preferred_element_type=jnp.float32)
            s = jnp.where(kmask, s, -1e30)
            s = s - jnp.max(s, axis=-1, keepdims=True)
            p = jnp.exp(s)
            p = p / jnp.sum(p, axis=-1, keepdims=True)
            ctx = _mm(p, v[:, sl])
            contrib = _mm(ctx, params["out_w"][i][sl, :])
            attn = contrib if attn is None else attn + contrib
        x = x + attn + params["out_b"][i]
        h2 = _layernorm(x, params["ln2_w"][i], params["ln2_b"][i])
        h2 = jax.nn.gelu(_mm(h2, params["w1"][i]) + params["b1"][i],
                         approximate=True)
        x = x + _mm(h2, params["w2"][i]) + params["b2"][i]
    return _layernorm(x[0:1, :], params["norm_w"], params["norm_b"])[0]


def vit_reference(imgs, params, *, patch_size, n_heads):
    patches_ext, pe_full, s_real, _ = _pad_and_fold(imgs, params, patch_size)
    outs = [_reference_single(patches_ext[i], pe_full, params, n_heads, s_real)
            for i in range(patches_ext.shape[0])]
    return jnp.stack(outs, axis=0)


# -------------------- deterministic parameter init
def init_params(key, *, n_layers, d_model, n_heads, patch_size, n_patches,
                mlp_ratio=4.0):
    CPP = 3 * patch_size * patch_size
    D = d_model
    Dh = int(d_model * mlp_ratio)
    keys = jax.random.split(key, 12)
    bf16 = jnp.bfloat16

    def w(k, shape, scale=0.02, dtype=jnp.float32):
        return (scale * jax.random.normal(k, shape)).astype(dtype)

    params = dict(
        patch_w=w(keys[0], (CPP, D), dtype=bf16),
        patch_b=w(keys[1], (1, D)),
        pe=w(keys[2], (n_patches, D)),
        cls_token=w(keys[3], (1, D)),
        norm_w=jnp.ones((1, D), jnp.float32),
        norm_b=jnp.zeros((1, D), jnp.float32),
        ln1_w=jnp.ones((n_layers, 1, D), jnp.float32),
        ln1_b=jnp.zeros((n_layers, 1, D), jnp.float32),
        ln2_w=jnp.ones((n_layers, 1, D), jnp.float32),
        ln2_b=jnp.zeros((n_layers, 1, D), jnp.float32),
        # fused q|k|v along the output axis
        qkv_w=w(keys[4], (n_layers, D, 3 * D), dtype=bf16),
        qkv_b=w(keys[5], (n_layers, 1, 3 * D)),
        out_w=w(keys[6], (n_layers, D, D), dtype=bf16),
        out_b=w(keys[7], (n_layers, 1, D)),
        w1=w(keys[8], (n_layers, D, Dh), dtype=bf16),
        b1=w(keys[9], (n_layers, 1, Dh)),
        w2=w(keys[10], (n_layers, Dh, D), dtype=bf16),
        b2=w(keys[11], (n_layers, 1, D)),
    )
    return params


if __name__ == "__main__":
    # small, lane-dense config:
    # ViT(n_layers=2, d_model=128, n_heads=4, patch_size=8, img_size=32,
    #     cls_token=True, pool_type='cls_token'), batch=4, batch-block=2
    B, C, IMG, P = 4, 3, 32, 8
    N_LAYERS, D_MODEL, N_HEADS = 2, 128, 4
    N_PATCHES = (IMG // P) ** 2
    B_BLK = 2

    key = jax.random.PRNGKey(0)
    k_img, k_par = jax.random.split(key)
    imgs = jax.random.normal(k_img, (B, C, IMG, IMG), dtype=jnp.float32)
    params = init_params(
        k_par, n_layers=N_LAYERS, d_model=D_MODEL, n_heads=N_HEADS,
        patch_size=P, n_patches=N_PATCHES,
    )

    out = jax.block_until_ready(
        vit_forward(imgs, params, patch_size=P, n_heads=N_HEADS, b_blk=B_BLK))
    assert out.shape == (B, D_MODEL), out.shape

    ref = jax.block_until_ready(
        vit_reference(imgs, params, patch_size=P, n_heads=N_HEADS))
    np.testing.assert_allclose(np.asarray(out), np.asarray(ref),
                               rtol=2e-2, atol=2e-2)
    print("KERNEL_OK")
</pallas_src>

<mosaic_0001>
module attributes {stable_mosaic.version = 11 : i64} {
  func.func @vit_kernel(%arg0: i32, %arg1: i32, %arg2: memref<48x192xf32, #tpu.memory_space<vmem>>, %arg3: memref<192x128xbf16, #tpu.memory_space<vmem>>, %arg4: memref<48x128xf32, #tpu.memory_space<vmem>>, %arg5: memref<1x1x128xf32, #tpu.memory_space<vmem>>, %arg6: memref<1x1x128xf32, #tpu.memory_space<vmem>>, %arg7: memref<1x128x384xbf16, #tpu.memory_space<vmem>>, %arg8: memref<1x1x384xf32, #tpu.memory_space<vmem>>, %arg9: memref<1x128x128xbf16, #tpu.memory_space<vmem>>, %arg10: memref<1x1x128xf32, #tpu.memory_space<vmem>>, %arg11: memref<1x1x128xf32, #tpu.memory_space<vmem>>, %arg12: memref<1x1x128xf32, #tpu.memory_space<vmem>>, %arg13: memref<1x128x512xbf16, #tpu.memory_space<vmem>>, %arg14: memref<1x1x512xf32, #tpu.memory_space<vmem>>, %arg15: memref<1x512x128xbf16, #tpu.memory_space<vmem>>, %arg16: memref<1x1x128xf32, #tpu.memory_space<vmem>>, %arg17: memref<1x128xf32, #tpu.memory_space<vmem>>, %arg18: memref<1x128xf32, #tpu.memory_space<vmem>>, %arg19: memref<1x2x128xf32, #tpu.memory_space<vmem>>, %arg20: memref<48x128xf32, #tpu.memory_space<vmem>>) attributes {dimension_semantics = [#tpu.dimension_semantics<parallel>, #tpu.dimension_semantics<arbitrary>], iteration_bounds = array<i64: 2, 2>, scalar_prefetch = 0 : i64, scratch_operands = 1 : i64, tpu.core_type = #tpu.core_type<tc>, window_params = [{transform_indices = @transform_0, window_bounds = array<i64: 48, 192>}, {pipeline_mode = #tpu.pipeline_mode<synchronous>, transform_indices = @transform_1, window_bounds = array<i64: 192, 128>}, {pipeline_mode = #tpu.pipeline_mode<synchronous>, transform_indices = @transform_2, window_bounds = array<i64: 48, 128>}, {transform_indices = @transform_3, window_bounds = array<i64: 1, 1, 128>}, {transform_indices = @transform_4, window_bounds = array<i64: 1, 1, 128>}, {transform_indices = @transform_5, window_bounds = array<i64: 1, 128, 384>}, {transform_indices = @transform_6, window_bounds = array<i64: 1, 1, 384>}, {transform_indices = @transform_7, window_bounds = array<i64: 1, 128, 128>}, {transform_indices = @transform_8, window_bounds = array<i64: 1, 1, 128>}, {transform_indices = @transform_9, window_bounds = array<i64: 1, 1, 128>}, {transform_indices = @transform_10, window_bounds = array<i64: 1, 1, 128>}, {transform_indices = @transform_11, window_bounds = array<i64: 1, 128, 512>}, {transform_indices = @transform_12, window_bounds = array<i64: 1, 1, 512>}, {transform_indices = @transform_13, window_bounds = array<i64: 1, 512, 128>}, {transform_indices = @transform_14, window_bounds = array<i64: 1, 1, 128>}, {pipeline_mode = #tpu.pipeline_mode<synchronous>, transform_indices = @transform_15, window_bounds = array<i64: 1, 128>}, {pipeline_mode = #tpu.pipeline_mode<synchronous>, transform_indices = @transform_16, window_bounds = array<i64: 1, 128>}, {transform_indices = @transform_17, window_bounds = array<i64: 1, 2, 128>}]} {
    %c0_i32 = arith.constant 0 : i32
    %0 = arith.cmpi eq, %arg1, %c0_i32 : i32
    %1 = arith.extui %0 : i1 to i32
    %c0_i32_0 = arith.constant 0 : i32
    %2 = arith.cmpi ne, %1, %c0_i32_0 : i32
    scf.if %2 {
      %c0_124 = arith.constant 0 : index
      %c0_125 = arith.constant 0 : index
      %310 = vector.load %arg2[%c0_124, %c0_125] : memref<48x192xf32, #tpu.memory_space<vmem>>, vector<48x192xf32>
      %c0_126 = arith.constant 0 : index
      %c0_127 = arith.constant 0 : index
      %311 = vector.load %arg3[%c0_126, %c0_127] : memref<192x128xbf16, #tpu.memory_space<vmem>>, vector<192x128xbf16>
      %312 = arith.truncf %310 : vector<48x192xf32> to vector<48x192xbf16>
      %cst_128 = arith.constant dense<0.000000e+00> : vector<48x128xf32>
      %313 = tpu.matmul %312, %311, %cst_128 {dimension_numbers = #tpu.dot_dimension_numbers<[1], [0], [0], [1], [0, 0, 1, 1], [], []>} : vector<48x192xbf16>, vector<192x128xbf16>, vector<48x128xf32> -> vector<48x128xf32>
      %c0_129 = arith.constant 0 : index
      %c0_130 = arith.constant 0 : index
      %314 = vector.load %arg4[%c0_129, %c0_130] : memref<48x128xf32, #tpu.memory_space<vmem>>, vector<48x128xf32>
      %315 = arith.addf %313, %314 : vector<48x128xf32>
      %c0_131 = arith.constant 0 : index
      %c0_132 = arith.constant 0 : index
      %316 = vector.load %arg20[%c0_131, %c0_132] : memref<48x128xf32, #tpu.memory_space<vmem>>, vector<48x128xf32>
      tpu.vector_store %arg20[%c0_131, %c0_132], %315 {strides = array<i32>} : memref<48x128xf32, #tpu.memory_space<vmem>>, vector<48x128xf32>,
    } else {
    }
    %c0 = arith.constant 0 : index
    %c0_1 = arith.constant 0 : index
    %3 = vector.load %arg20[%c0, %c0_1] : memref<48x128xf32, #tpu.memory_space<vmem>>, vector<48x128xf32>
    %c0_2 = arith.constant 0 : index
    %c0_3 = arith.constant 0 : index
    %c0_4 = arith.constant 0 : index
    %4 = vector.load %arg5[%c0_2, %c0_3, %c0_4] : memref<1x1x128xf32, #tpu.memory_space<vmem>>, vector<1x1x128xf32>
    %5 = vector.shape_cast %4 : vector<1x1x128xf32> to vector<1x128xf32>
    %c0_5 = arith.constant 0 : index
    %c0_6 = arith.constant 0 : index
    %c0_7 = arith.constant 0 : index
    %6 = vector.load %arg6[%c0_5, %c0_6, %c0_7] : memref<1x1x128xf32, #tpu.memory_space<vmem>>, vector<1x1x128xf32>
    %7 = vector.shape_cast %6 : vector<1x1x128xf32> to vector<1x128xf32>
    %cst = arith.constant dense<0.000000e+00> : vector<48xf32>
    %8 = vector.multi_reduction <add>, %3, %cst [1] : vector<48x128xf32> to vector<48xf32>
    %9 = vector.shape_cast %8 : vector<48xf32> to vector<48x1xf32>
    %cst_8 = arith.constant 1.280000e+02 : f32
    %10 = vector.broadcast %cst_8 : f32 to vector<48x1xf32>
    %11 = arith.divf %9, %10 : vector<48x1xf32>
    %12 = vector.broadcast %11 : vector<48x1xf32> to vector<48x128xf32>
    %13 = arith.subf %3, %12 : vector<48x128xf32>
    %14 = arith.mulf %13, %13 : vector<48x128xf32>
    %cst_9 = arith.constant dense<0.000000e+00> : vector<48xf32>
    %15 = vector.multi_reduction <add>, %14, %cst_9 [1] : vector<48x128xf32> to vector<48xf32>
    %16 = vector.shape_cast %15 : vector<48xf32> to vector<48x1xf32>
    %cst_10 = arith.constant 1.280000e+02 : f32
    %17 = vector.broadcast %cst_10 : f32 to vector<48x1xf32>
    %18 = arith.divf %16, %17 : vector<48x1xf32>
    %19 = vector.broadcast %11 : vector<48x1xf32> to vector<48x128xf32>
    %20 = arith.subf %3, %19 : vector<48x128xf32>
    %cst_11 = arith.constant 9.99999997E-7 : f32
    %21 = vector.broadcast %cst_11 : f32 to vector<48x1xf32>
    %22 = arith.addf %18, %21 : vector<48x1xf32>
    %23 = math.rsqrt %22 : vector<48x1xf32>
    %24 = vector.broadcast %23 : vector<48x1xf32> to vector<48x128xf32>
    %25 = arith.mulf %20, %24 : vector<48x128xf32>
    %26 = vector.broadcast %5 : vector<1x128xf32> to vector<48x128xf32>
    %27 = arith.mulf %25, %26 : vector<48x128xf32>
    %28 = vector.broadcast %7 : vector<1x128xf32> to vector<48x128xf32>
    %29 = arith.addf %27, %28 : vector<48x128xf32>
    %c0_12 = arith.constant 0 : index
    %c0_13 = arith.constant 0 : index
    %c0_14 = arith.constant 0 : index
    %30 = vector.load %arg7[%c0_12, %c0_13, %c0_14] : memref<1x128x384xbf16, #tpu.memory_space<vmem>>, vector<1x128x384xbf16>
    %31 = vector.shape_cast %30 : vector<1x128x384xbf16> to vector<128x384xbf16>
    %32 = arith.truncf %29 : vector<48x128xf32> to vector<48x128xbf16>
    %cst_15 = arith.constant dense<0.000000e+00> : vector<48x384xf32>
    %33 = tpu.matmul %32, %31, %cst_15 {dimension_numbers = #tpu.dot_dimension_numbers<[1], [0], [0], [1], [0, 0, 1, 1], [], []>} : vector<48x128xbf16>, vector<128x384xbf16>, vector<48x384xf32> -> vector<48x384xf32>
    %c0_16 = arith.constant 0 : index
    %c0_17 = arith.constant 0 : index
    %c0_18 = arith.constant 0 : index
    %34 = vector.load %arg8[%c0_16, %c0_17, %c0_18] : memref<1x1x384xf32, #tpu.memory_space<vmem>>, vector<1x1x384xf32>
    %35 = vector.shape_cast %34 : vector<1x1x384xf32> to vector<1x384xf32>
    %36 = vector.broadcast %35 : vector<1x384xf32> to vector<48x384xf32>
    %37 = arith.addf %33, %36 : vector<48x384xf32>
    %38 = vector.extract_strided_slice %37 {offsets = [0, 0], sizes = [48, 128], strides = [1, 1]} : vector<48x384xf32> to vector<48x128xf32>
    %cst_19 = arith.constant 0.176776692 : f32
    %39 = vector.broadcast %cst_19 : f32 to vector<48x128xf32>
    %40 = arith.mulf %38, %39 : vector<48x128xf32>
    %41 = vector.extract_strided_slice %37 {offsets = [0, 128], sizes = [48, 128], strides = [1, 1]} : vector<48x384xf32> to vector<48x128xf32>
    %42 = vector.extract_strided_slice %37 {offsets = [0, 256], sizes = [48, 128], strides = [1, 1]} : vector<48x384xf32> to vector<48x128xf32>
    %43 = tpu.iota {dimensions = array<i32: 1>} : vector<24x24xi32>
    %c17_i32 = arith.constant 17 : i32
    %44 = vector.broadcast %c17_i32 : i32 to vector<24x24xi32>
    %45 = arith.cmpi slt, %43, %44 : vector<24x24xi32>
    %46 = vector.extract_strided_slice %40 {offsets = [0, 0], sizes = [24, 32], strides = [1, 1]} : vector<48x128xf32> to vector<24x32xf32>
    %47 = arith.truncf %46 : vector<24x32xf32> to vector<24x32xbf16>
    %48 = vector.extract_strided_slice %41 {offsets = [0, 0], sizes = [24, 32], strides = [1, 1]} : vector<48x128xf32> to vector<24x32xf32>
    %49 = arith.truncf %48 : vector<24x32xf32> to vector<24x32xbf16>
    %cst_20 = arith.constant dense<0.000000e+00> : vector<24x24xf32>
    %50 = tpu.matmul %47, %49, %cst_20 {dimension_numbers = #tpu.dot_dimension_numbers<[1], [1], [0], [0], [0, 0, 1, 0], [], []>} : vector<24x32xbf16>, vector<24x32xbf16>, vector<24x24xf32> -> vector<24x24xf32>
    %cst_21 = arith.constant -1.000000e+30 : f32
    %51 = vector.broadcast %cst_21 : f32 to vector<24x24xf32>
    %52 = arith.select %45, %50, %51 : vector<24x24xi1>, vector<24x24xf32>
    %cst_22 = arith.constant dense<0xFF800000> : vector<24xf32>
    %53 = vector.multi_reduction <maximumf>, %52, %cst_22 [1] : vector<24x24xf32> to vector<24xf32>
    %54 = vector.shape_cast %53 : vector<24xf32> to vector<24x1xf32>
    %55 = vector.broadcast %54 : vector<24x1xf32> to vector<24x24xf32>
    %56 = arith.subf %52, %55 : vector<24x24xf32>
    %57 = math.exp %56 : vector<24x24xf32>
    %cst_23 = arith.constant dense<0.000000e+00> : vector<24xf32>
    %58 = vector.multi_reduction <add>, %57, %cst_23 [1] : vector<24x24xf32> to vector<24xf32>
    %59 = vector.shape_cast %58 : vector<24xf32> to vector<24x1xf32>
    %60 = vector.broadcast %59 : vector<24x1xf32> to vector<24x24xf32>
    %61 = arith.divf %57, %60 : vector<24x24xf32>
    %62 = vector.extract_strided_slice %42 {offsets = [0, 0], sizes = [24, 32], strides = [1, 1]} : vector<48x128xf32> to vector<24x32xf32>
    %63 = arith.truncf %61 : vector<24x24xf32> to vector<24x24xbf16>
    %64 = arith.truncf %62 : vector<24x32xf32> to vector<24x32xbf16>
    %cst_24 = arith.constant dense<0.000000e+00> : vector<24x32xf32>
    %65 = tpu.matmul %63, %64, %cst_24 {dimension_numbers = #tpu.dot_dimension_numbers<[1], [0], [0], [1], [0, 0, 1, 1], [], []>} : vector<24x24xbf16>, vector<24x32xbf16>, vector<24x32xf32> -> vector<24x32xf32>
    %c0_25 = arith.constant 0 : index
    %c0_26 = arith.constant 0 : index
    %c0_27 = arith.constant 0 : index
    %66 = vector.load %arg9[%c0_25, %c0_26, %c0_27] : memref<1x128x128xbf16, #tpu.memory_space<vmem>>, vector<1x32x128xbf16>
    %67 = vector.shape_cast %66 : vector<1x32x128xbf16> to vector<32x128xbf16>
    %68 = arith.truncf %65 : vector<24x32xf32> to vector<24x32xbf16>
    %cst_28 = arith.constant dense<0.000000e+00> : vector<24x128xf32>
    %69 = tpu.matmul %68, %67, %cst_28 {dimension_numbers = #tpu.dot_dimension_numbers<[1], [0], [0], [1], [0, 0, 1, 1], [], []>} : vector<24x32xbf16>, vector<32x128xbf16>, vector<24x128xf32> -> vector<24x128xf32>
    %70 = vector.extract_strided_slice %40 {offsets = [0, 32], sizes = [24, 32], strides = [1, 1]} : vector<48x128xf32> to vector<24x32xf32>
    %71 = arith.truncf %70 : vector<24x32xf32> to vector<24x32xbf16>
    %72 = vector.extract_strided_slice %41 {offsets = [0, 32], sizes = [24, 32], strides = [1, 1]} : vector<48x128xf32> to vector<24x32xf32>
    %73 = arith.truncf %72 : vector<24x32xf32> to vector<24x32xbf16>
    %cst_29 = arith.constant dense<0.000000e+00> : vector<24x24xf32>
    %74 = tpu.matmul %71, %73, %cst_29 {dimension_numbers = #tpu.dot_dimension_numbers<[1], [1], [0], [0], [0, 0, 1, 0], [], []>} : vector<24x32xbf16>, vector<24x32xbf16>, vector<24x24xf32> -> vector<24x24xf32>
    %cst_30 = arith.constant -1.000000e+30 : f32
    %75 = vector.broadcast %cst_30 : f32 to vector<24x24xf32>
    %76 = arith.select %45, %74, %75 : vector<24x24xi1>, vector<24x24xf32>
    %cst_31 = arith.constant dense<0xFF800000> : vector<24xf32>
    %77 = vector.multi_reduction <maximumf>, %76, %cst_31 [1] : vector<24x24xf32> to vector<24xf32>
    %78 = vector.shape_cast %77 : vector<24xf32> to vector<24x1xf32>
    %79 = vector.broadcast %78 : vector<24x1xf32> to vector<24x24xf32>
    %80 = arith.subf %76, %79 : vector<24x24xf32>
    %81 = math.exp %80 : vector<24x24xf32>
    %cst_32 = arith.constant dense<0.000000e+00> : vector<24xf32>
    %82 = vector.multi_reduction <add>, %81, %cst_32 [1] : vector<24x24xf32> to vector<24xf32>
    %83 = vector.shape_cast %82 : vector<24xf32> to vector<24x1xf32>
    %84 = vector.broadcast %83 : vector<24x1xf32> to vector<24x24xf32>
    %85 = arith.divf %81, %84 : vector<24x24xf32>
    %86 = vector.extract_strided_slice %42 {offsets = [0, 32], sizes = [24, 32], strides = [1, 1]} : vector<48x128xf32> to vector<24x32xf32>
    %87 = arith.truncf %85 : vector<24x24xf32> to vector<24x24xbf16>
    %88 = arith.truncf %86 : vector<24x32xf32> to vector<24x32xbf16>
    %cst_33 = arith.constant dense<0.000000e+00> : vector<24x32xf32>
    %89 = tpu.matmul %87, %88, %cst_33 {dimension_numbers = #tpu.dot_dimension_numbers<[1], [0], [0], [1], [0, 0, 1, 1], [], []>} : vector<24x24xbf16>, vector<24x32xbf16>, vector<24x32xf32> -> vector<24x32xf32>
    %c0_34 = arith.constant 0 : index
    %c32 = arith.constant 32 : index
    %c0_35 = arith.constant 0 : index
    %90 = vector.load %arg9[%c0_34, %c32, %c0_35] : memref<1x128x128xbf16, #tpu.memory_space<vmem>>, vector<1x32x128xbf16>
    %91 = vector.shape_cast %90 : vector<1x32x128xbf16> to vector<32x128xbf16>
    %92 = arith.truncf %89 : vector<24x32xf32> to vector<24x32xbf16>
    %cst_36 = arith.constant dense<0.000000e+00> : vector<24x128xf32>
    %93 = tpu.matmul %92, %91, %cst_36 {dimension_numbers = #tpu.dot_dimension_numbers<[1], [0], [0], [1], [0, 0, 1, 1], [], []>} : vector<24x32xbf16>, vector<32x128xbf16>, vector<24x128xf32> -> vector<24x128xf32>
    %94 = arith.addf %69, %93 : vector<24x128xf32>
    %95 = vector.extract_strided_slice %40 {offsets = [0, 64], sizes = [24, 32], strides = [1, 1]} : vector<48x128xf32> to vector<24x32xf32>
    %96 = arith.truncf %95 : vector<24x32xf32> to vector<24x32xbf16>
    %97 = vector.extract_strided_slice %41 {offsets = [0, 64], sizes = [24, 32], strides = [1, 1]} : vector<48x128xf32> to vector<24x32xf32>
    %98 = arith.truncf %97 : vector<24x32xf32> to vector<24x32xbf16>
    %cst_37 = arith.constant dense<0.000000e+00> : vector<24x24xf32>
    %99 = tpu.matmul %96, %98, %cst_37 {dimension_numbers = #tpu.dot_dimension_numbers<[1], [1], [0], [0], [0, 0, 1, 0], [], []>} : vector<24x32xbf16>, vector<24x32xbf16>, vector<24x24xf32> -> vector<24x24xf32>
    %cst_38 = arith.constant -1.000000e+30 : f32
    %100 = vector.broadcast %cst_38 : f32 to vector<24x24xf32>
    %101 = arith.select %45, %99, %100 : vector<24x24xi1>, vector<24x24xf32>
    %cst_39 = arith.constant dense<0xFF800000> : vector<24xf32>
    %102 = vector.multi_reduction <maximumf>, %101, %cst_39 [1] : vector<24x24xf32> to vector<24xf32>
    %103 = vector.shape_cast %102 : vector<24xf32> to vector<24x1xf32>
    %104 = vector.broadcast %103 : vector<24x1xf32> to vector<24x24xf32>
    %105 = arith.subf %101, %104 : vector<24x24xf32>
    %106 = math.exp %105 : vector<24x24xf32>
    %cst_40 = arith.constant dense<0.000000e+00> : vector<24xf32>
    %107 = vector.multi_reduction <add>, %106, %cst_40 [1] : vector<24x24xf32> to vector<24xf32>
    %108 = vector.shape_cast %107 : vector<24xf32> to vector<24x1xf32>
    %109 = vector.broadcast %108 : vector<24x1xf32> to vector<24x24xf32>
    %110 = arith.divf %106, %109 : vector<24x24xf32>
    %111 = vector.extract_strided_slice %42 {offsets = [0, 64], sizes = [24, 32], strides = [1, 1]} : vector<48x128xf32> to vector<24x32xf32>
    %112 = arith.truncf %110 : vector<24x24xf32> to vector<24x24xbf16>
    %113 = arith.truncf %111 : vector<24x32xf32> to vector<24x32xbf16>
    %cst_41 = arith.constant dense<0.000000e+00> : vector<24x32xf32>
    %114 = tpu.matmul %112, %113, %cst_41 {dimension_numbers = #tpu.dot_dimension_numbers<[1], [0], [0], [1], [0, 0, 1, 1], [], []>} : vector<24x24xbf16>, vector<24x32xbf16>, vector<24x32xf32> -> vector<24x32xf32>
    %c0_42 = arith.constant 0 : index
    %c64 = arith.constant 64 : index
    %c0_43 = arith.constant 0 : index
    %115 = vector.load %arg9[%c0_42, %c64, %c0_43] : memref<1x128x128xbf16, #tpu.memory_space<vmem>>, vector<1x32x128xbf16>
    %116 = vector.shape_cast %115 : vector<1x32x128xbf16> to vector<32x128xbf16>
    %117 = arith.truncf %114 : vector<24x32xf32> to vector<24x32xbf16>
    %cst_44 = arith.constant dense<0.000000e+00> : vector<24x128xf32>
    %118 = tpu.matmul %117, %116, %cst_44 {dimension_numbers = #tpu.dot_dimension_numbers<[1], [0], [0], [1], [0, 0, 1, 1], [], []>} : vector<24x32xbf16>, vector<32x128xbf16>, vector<24x128xf32> -> vector<24x128xf32>
    %119 = arith.addf %94, %118 : vector<24x128xf32>
    %120 = vector.extract_strided_slice %40 {offsets = [0, 96], sizes = [24, 32], strides = [1, 1]} : vector<48x128xf32> to vector<24x32xf32>
    %121 = arith.truncf %120 : vector<24x32xf32> to vector<24x32xbf16>
    %122 = vector.extract_strided_slice %41 {offsets = [0, 96], sizes = [24, 32], strides = [1, 1]} : vector<48x128xf32> to vector<24x32xf32>
    %123 = arith.truncf %122 : vector<24x32xf32> to vector<24x32xbf16>
    %cst_45 = arith.constant dense<0.000000e+00> : vector<24x24xf32>
    %124 = tpu.matmul %121, %123, %cst_45 {dimension_numbers = #tpu.dot_dimension_numbers<[1], [1], [0], [0], [0, 0, 1, 0], [], []>} : vector<24x32xbf16>, vector<24x32xbf16>, vector<24x24xf32> -> vector<24x24xf32>
    %cst_46 = arith.constant -1.000000e+30 : f32
    %125 = vector.broadcast %cst_46 : f32 to vector<24x24xf32>
    %126 = arith.select %45, %124, %125 : vector<24x24xi1>, vector<24x24xf32>
    %cst_47 = arith.constant dense<0xFF800000> : vector<24xf32>
    %127 = vector.multi_reduction <maximumf>, %126, %cst_47 [1] : vector<24x24xf32> to vector<24xf32>
    %128 = vector.shape_cast %127 : vector<24xf32> to vector<24x1xf32>
    %129 = vector.broadcast %128 : vector<24x1xf32> to vector<24x24xf32>
    %130 = arith.subf %126, %129 : vector<24x24xf32>
    %131 = math.exp %130 : vector<24x24xf32>
    %cst_48 = arith.constant dense<0.000000e+00> : vector<24xf32>
    %132 = vector.multi_reduction <add>, %131, %cst_48 [1] : vector<24x24xf32> to vector<24xf32>
    %133 = vector.shape_cast %132 : vector<24xf32> to vector<24x1xf32>
    %134 = vector.broadcast %133 : vector<24x1xf32> to vector<24x24xf32>
    %135 = arith.divf %131, %134 : vector<24x24xf32>
    %136 = vector.extract_strided_slice %42 {offsets = [0, 96], sizes = [24, 32], strides = [1, 1]} : vector<48x128xf32> to vector<24x32xf32>
    %137 = arith.truncf %135 : vector<24x24xf32> to vector<24x24xbf16>
    %138 = arith.truncf %136 : vector<24x32xf32> to vector<24x32xbf16>
    %cst_49 = arith.constant dense<0.000000e+00> : vector<24x32xf32>
    %139 = tpu.matmul %137, %138, %cst_49 {dimension_numbers = #tpu.dot_dimension_numbers<[1], [0], [0], [1], [0, 0, 1, 1], [], []>} : vector<24x24xbf16>, vector<24x32xbf16>, vector<24x32xf32> -> vector<24x32xf32>
    %c0_50 = arith.constant 0 : index
    %c96 = arith.constant 96 : index
    %c0_51 = arith.constant 0 : index
    %140 = vector.load %arg9[%c0_50, %c96, %c0_51] : memref<1x128x128xbf16, #tpu.memory_space<vmem>>, vector<1x32x128xbf16>
    %141 = vector.shape_cast %140 : vector<1x32x128xbf16> to vector<32x128xbf16>
    %142 = arith.truncf %139 : vector<24x32xf32> to vector<24x32xbf16>
    %cst_52 = arith.constant dense<0.000000e+00> : vector<24x128xf32>
    %143 = tpu.matmul %142, %141, %cst_52 {dimension_numbers = #tpu.dot_dimension_numbers<[1], [0], [0], [1], [0, 0, 1, 1], [], []>} : vector<24x32xbf16>, vector<32x128xbf16>, vector<24x128xf32> -> vector<24x128xf32>
    %144 = arith.addf %119, %143 : vector<24x128xf32>
    %145 = vector.extract_strided_slice %40 {offsets = [24, 0], sizes = [24, 32], strides = [1, 1]} : vector<48x128xf32> to vector<24x32xf32>
    %146 = arith.truncf %145 : vector<24x32xf32> to vector<24x32xbf16>
    %147 = vector.extract_strided_slice %41 {offsets = [24, 0], sizes = [24, 32], strides = [1, 1]} : vector<48x128xf32> to vector<24x32xf32>
    %148 = arith.truncf %147 : vector<24x32xf32> to vector<24x32xbf16>
    %cst_53 = arith.constant dense<0.000000e+00> : vector<24x24xf32>
    %149 = tpu.matmul %146, %148, %cst_53 {dimension_numbers = #tpu.dot_dimension_numbers<[1], [1], [0], [0], [0, 0, 1, 0], [], []>} : vector<24x32xbf16>, vector<24x32xbf16>, vector<24x24xf32> -> vector<24x24xf32>
    %cst_54 = arith.constant -1.000000e+30 : f32
    %150 = vector.broadcast %cst_54 : f32 to vector<24x24xf32>
    %151 = arith.select %45, %149, %150 : vector<24x24xi1>, vector<24x24xf32>
    %cst_55 = arith.constant dense<0xFF800000> : vector<24xf32>
    %152 = vector.multi_reduction <maximumf>, %151, %cst_55 [1] : vector<24x24xf32> to vector<24xf32>
    %153 = vector.shape_cast %152 : vector<24xf32> to vector<24x1xf32>
    %154 = vector.broadcast %153 : vector<24x1xf32> to vector<24x24xf32>
    %155 = arith.subf %151, %154 : vector<24x24xf32>
    %156 = math.exp %155 : vector<24x24xf32>
    %cst_56 = arith.constant dense<0.000000e+00> : vector<24xf32>
    %157 = vector.multi_reduction <add>, %156, %cst_56 [1] : vector<24x24xf32> to vector<24xf32>
    %158 = vector.shape_cast %157 : vector<24xf32> to vector<24x1xf32>
    %159 = vector.broadcast %158 : vector<24x1xf32> to vector<24x24xf32>
    %160 = arith.divf %156, %159 : vector<24x24xf32>
    %161 = vector.extract_strided_slice %42 {offsets = [24, 0], sizes = [24, 32], strides = [1, 1]} : vector<48x128xf32> to vector<24x32xf32>
    %162 = arith.truncf %160 : vector<24x24xf32> to vector<24x24xbf16>
    %163 = arith.truncf %161 : vector<24x32xf32> to vector<24x32xbf16>
    %cst_57 = arith.constant dense<0.000000e+00> : vector<24x32xf32>
    %164 = tpu.matmul %162, %163, %cst_57 {dimension_numbers = #tpu.dot_dimension_numbers<[1], [0], [0], [1], [0, 0, 1, 1], [], []>} : vector<24x24xbf16>, vector<24x32xbf16>, vector<24x32xf32> -> vector<24x32xf32>
    %c0_58 = arith.constant 0 : index
    %c0_59 = arith.constant 0 : index
    %c0_60 = arith.constant 0 : index
    %165 = vector.load %arg9[%c0_58, %c0_59, %c0_60] : memref<1x128x128xbf16, #tpu.memory_space<vmem>>, vector<1x32x128xbf16>
    %166 = vector.shape_cast %165 : vector<1x32x128xbf16> to vector<32x128xbf16>
    %167 = arith.truncf %164 : vector<24x32xf32> to vector<24x32xbf16>
    %cst_61 = arith.constant dense<0.000000e+00> : vector<24x128xf32>
    %168 = tpu.matmul %167, %166, %cst_61 {dimension_numbers = #tpu.dot_dimension_numbers<[1], [0], [0], [1], [0, 0, 1, 1], [], []>} : vector<24x32xbf16>, vector<32x128xbf16>, vector<24x128xf32> -> vector<24x128xf32>
    %169 = vector.extract_strided_slice %40 {offsets = [24, 32], sizes = [24, 32], strides = [1, 1]} : vector<48x128xf32> to vector<24x32xf32>
    %170 = arith.truncf %169 : vector<24x32xf32> to vector<24x32xbf16>
    %171 = vector.extract_strided_slice %41 {offsets = [24, 32], sizes = [24, 32], strides = [1, 1]} : vector<48x128xf32> to vector<24x32xf32>
    %172 = arith.truncf %171 : vector<24x32xf32> to vector<24x32xbf16>
    %cst_62 = arith.constant dense<0.000000e+00> : vector<24x24xf32>
    %173 = tpu.matmul %170, %172, %cst_62 {dimension_numbers = #tpu.dot_dimension_numbers<[1], [1], [0], [0], [0, 0, 1, 0], [], []>} : vector<24x32xbf16>, vector<24x32xbf16>, vector<24x24xf32> -> vector<24x24xf32>
    %cst_63 = arith.constant -1.000000e+30 : f32
    %174 = vector.broadcast %cst_63 : f32 to vector<24x24xf32>
    %175 = arith.select %45, %173, %174 : vector<24x24xi1>, vector<24x24xf32>
    %cst_64 = arith.constant dense<0xFF800000> : vector<24xf32>
    %176 = vector.multi_reduction <maximumf>, %175, %cst_64 [1] : vector<24x24xf32> to vector<24xf32>
    %177 = vector.shape_cast %176 : vector<24xf32> to vector<24x1xf32>
    %178 = vector.broadcast %177 : vector<24x1xf32> to vector<24x24xf32>
    %179 = arith.subf %175, %178 : vector<24x24xf32>
    %180 = math.exp %179 : vector<24x24xf32>
    %cst_65 = arith.constant dense<0.000000e+00> : vector<24xf32>
    %181 = vector.multi_reduction <add>, %180, %cst_65 [1] : vector<24x24xf32> to vector<24xf32>
    %182 = vector.shape_cast %181 : vector<24xf32> to vector<24x1xf32>
    %183 = vector.broadcast %182 : vector<24x1xf32> to vector<24x24xf32>
    %184 = arith.divf %180, %183 : vector<24x24xf32>
    %185 = vector.extract_strided_slice %42 {offsets = [24, 32], sizes = [24, 32], strides = [1, 1]} : vector<48x128xf32> to vector<24x32xf32>
    %186 = arith.truncf %184 : vector<24x24xf32> to vector<24x24xbf16>
    %187 = arith.truncf %185 : vector<24x32xf32> to vector<24x32xbf16>
    %cst_66 = arith.constant dense<0.000000e+00> : vector<24x32xf32>
    %188 = tpu.matmul %186, %187, %cst_66 {dimension_numbers = #tpu.dot_dimension_numbers<[1], [0], [0], [1], [0, 0, 1, 1], [], []>} : vector<24x24xbf16>, vector<24x32xbf16>, vector<24x32xf32> -> vector<24x32xf32>
    %c0_67 = arith.constant 0 : index
    %c32_68 = arith.constant 32 : index
    %c0_69 = arith.constant 0 : index
    %189 = vector.load %arg9[%c0_67, %c32_68, %c0_69] : memref<1x128x128xbf16, #tpu.memory_space<vmem>>, vector<1x32x128xbf16>
    %190 = vector.shape_cast %189 : vector<1x32x128xbf16> to vector<32x128xbf16>
    %191 = arith.truncf %188 : vector<24x32xf32> to vector<24x32xbf16>
    %cst_70 = arith.constant dense<0.000000e+00> : vector<24x128xf32>
    %192 = tpu.matmul %191, %190, %cst_70 {dimension_numbers = #tpu.dot_dimension_numbers<[1], [0], [0], [1], [0, 0, 1, 1], [], []>} : vector<24x32xbf16>, vector<32x128xbf16>, vector<24x128xf32> -> vector<24x128xf32>
    %193 = arith.addf %168, %192 : vector<24x128xf32>
    %194 = vector.extract_strided_slice %40 {offsets = [24, 64], sizes = [24, 32], strides = [1, 1]} : vector<48x128xf32> to vector<24x32xf32>
    %195 = arith.truncf %194 : vector<24x32xf32> to vector<24x32xbf16>
    %196 = vector.extract_strided_slice %41 {offsets = [24, 64], sizes = [24, 32], strides = [1, 1]} : vector<48x128xf32> to vector<24x32xf32>
    %197 = arith.truncf %196 : vector<24x32xf32> to vector<24x32xbf16>
    %cst_71 = arith.constant dense<0.000000e+00> : vector<24x24xf32>
    %198 = tpu.matmul %195, %197, %cst_71 {dimension_numbers = #tpu.dot_dimension_numbers<[1], [1], [0], [0], [0, 0, 1, 0], [], []>} : vector<24x32xbf16>, vector<24x32xbf16>, vector<24x24xf32> -> vector<24x24xf32>
    %cst_72 = arith.constant -1.000000e+30 : f32
    %199 = vector.broadcast %cst_72 : f32 to vector<24x24xf32>
    %200 = arith.select %45, %198, %199 : vector<24x24xi1>, vector<24x24xf32>
    %cst_73 = arith.constant dense<0xFF800000> : vector<24xf32>
    %201 = vector.multi_reduction <maximumf>, %200, %cst_73 [1] : vector<24x24xf32> to vector<24xf32>
    %202 = vector.shape_cast %201 : vector<24xf32> to vector<24x1xf32>
    %203 = vector.broadcast %202 : vector<24x1xf32> to vector<24x24xf32>
    %204 = arith.subf %200, %203 : vector<24x24xf32>
    %205 = math.exp %204 : vector<24x24xf32>
    %cst_74 = arith.constant dense<0.000000e+00> : vector<24xf32>
    %206 = vector.multi_reduction <add>, %205, %cst_74 [1] : vector<24x24xf32> to vector<24xf32>
    %207 = vector.shape_cast %206 : vector<24xf32> to vector<24x1xf32>
    %208 = vector.broadcast %207 : vector<24x1xf32> to vector<24x24xf32>
    %209 = arith.divf %205, %208 : vector<24x24xf32>
    %210 = vector.extract_strided_slice %42 {offsets = [24, 64], sizes = [24, 32], strides = [1, 1]} : vector<48x128xf32> to vector<24x32xf32>
    %211 = arith.truncf %209 : vector<24x24xf32> to vector<24x24xbf16>
    %212 = arith.truncf %210 : vector<24x32xf32> to vector<24x32xbf16>
    %cst_75 = arith.constant dense<0.000000e+00> : vector<24x32xf32>
    %213 = tpu.matmul %211, %212, %cst_75 {dimension_numbers = #tpu.dot_dimension_numbers<[1], [0], [0], [1], [0, 0, 1, 1], [], []>} : vector<24x24xbf16>, vector<24x32xbf16>, vector<24x32xf32> -> vector<24x32xf32>
    %c0_76 = arith.constant 0 : index
    %c64_77 = arith.constant 64 : index
    %c0_78 = arith.constant 0 : index
    %214 = vector.load %arg9[%c0_76, %c64_77, %c0_78] : memref<1x128x128xbf16, #tpu.memory_space<vmem>>, vector<1x32x128xbf16>
    %215 = vector.shape_cast %214 : vector<1x32x128xbf16> to vector<32x128xbf16>
    %216 = arith.truncf %213 : vector<24x32xf32> to vector<24x32xbf16>
    %cst_79 = arith.constant dense<0.000000e+00> : vector<24x128xf32>
    %217 = tpu.matmul %216, %215, %cst_79 {dimension_numbers = #tpu.dot_dimension_numbers<[1], [0], [0], [1], [0, 0, 1, 1], [], []>} : vector<24x32xbf16>, vector<32x128xbf16>, vector<24x128xf32> -> vector<24x128xf32>
    %218 = arith.addf %193, %217 : vector<24x128xf32>
    %219 = vector.extract_strided_slice %40 {offsets = [24, 96], sizes = [24, 32], strides = [1, 1]} : vector<48x128xf32> to vector<24x32xf32>
    %220 = arith.truncf %219 : vector<24x32xf32> to vector<24x32xbf16>
    %221 = vector.extract_strided_slice %41 {offsets = [24, 96], sizes = [24, 32], strides = [1, 1]} : vector<48x128xf32> to vector<24x32xf32>
    %222 = arith.truncf %221 : vector<24x32xf32> to vector<24x32xbf16>
    %cst_80 = arith.constant dense<0.000000e+00> : vector<24x24xf32>
    %223 = tpu.matmul %220, %222, %cst_80 {dimension_numbers = #tpu.dot_dimension_numbers<[1], [1], [0], [0], [0, 0, 1, 0], [], []>} : vector<24x32xbf16>, vector<24x32xbf16>, vector<24x24xf32> -> vector<24x24xf32>
    %cst_81 = arith.constant -1.000000e+30 : f32
    %224 = vector.broadcast %cst_81 : f32 to vector<24x24xf32>
    %225 = arith.select %45, %223, %224 : vector<24x24xi1>, vector<24x24xf32>
    %cst_82 = arith.constant dense<0xFF800000> : vector<24xf32>
    %226 = vector.multi_reduction <maximumf>, %225, %cst_82 [1] : vector<24x24xf32> to vector<24xf32>
    %227 = vector.shape_cast %226 : vector<24xf32> to vector<24x1xf32>
    %228 = vector.broadcast %227 : vector<24x1xf32> to vector<24x24xf32>
    %229 = arith.subf %225, %228 : vector<24x24xf32>
    %230 = math.exp %229 : vector<24x24xf32>
    %cst_83 = arith.constant dense<0.000000e+00> : vector<24xf32>
    %231 = vector.multi_reduction <add>, %230, %cst_83 [1] : vector<24x24xf32> to vector<24xf32>
    %232 = vector.shape_cast %231 : vector<24xf32> to vector<24x1xf32>
    %233 = vector.broadcast %232 : vector<24x1xf32> to vector<24x24xf32>
    %234 = arith.divf %230, %233 : vector<24x24xf32>
    %235 = vector.extract_strided_slice %42 {offsets = [24, 96], sizes = [24, 32], strides = [1, 1]} : vector<48x128xf32> to vector<24x32xf32>
    %236 = arith.truncf %234 : vector<24x24xf32> to vector<24x24xbf16>
    %237 = arith.truncf %235 : vector<24x32xf32> to vector<24x32xbf16>
    %cst_84 = arith.constant dense<0.000000e+00> : vector<24x32xf32>
    %238 = tpu.matmul %236, %237, %cst_84 {dimension_numbers = #tpu.dot_dimension_numbers<[1], [0], [0], [1], [0, 0, 1, 1], [], []>} : vector<24x24xbf16>, vector<24x32xbf16>, vector<24x32xf32> -> vector<24x32xf32>
    %c0_85 = arith.constant 0 : index
    %c96_86 = arith.constant 96 : index
    %c0_87 = arith.constant 0 : index
    %239 = vector.load %arg9[%c0_85, %c96_86, %c0_87] : memref<1x128x128xbf16, #tpu.memory_space<vmem>>, vector<1x32x128xbf16>
    %240 = vector.shape_cast %239 : vector<1x32x128xbf16> to vector<32x128xbf16>
    %241 = arith.truncf %238 : vector<24x32xf32> to vector<24x32xbf16>
    %cst_88 = arith.constant dense<0.000000e+00> : vector<24x128xf32>
    %242 = tpu.matmul %241, %240, %cst_88 {dimension_numbers = #tpu.dot_dimension_numbers<[1], [0], [0], [1], [0, 0, 1, 1], [], []>} : vector<24x32xbf16>, vector<32x128xbf16>, vector<24x128xf32> -> vector<24x128xf32>
    %243 = arith.addf %218, %242 : vector<24x128xf32>
    %244 = tpu.concatenate %144, %243 in 0 : vector<24x128xf32>, vector<24x128xf32> -> vector<48x128xf32>
    %245 = arith.addf %3, %244 : vector<48x128xf32>
    %c0_89 = arith.constant 0 : index
    %c0_90 = arith.constant 0 : index
    %c0_91 = arith.constant 0 : index
    %246 = vector.load %arg10[%c0_89, %c0_90, %c0_91] : memref<1x1x128xf32, #tpu.memory_space<vmem>>, vector<1x1x128xf32>
    %247 = vector.shape_cast %246 : vector<1x1x128xf32> to vector<1x128xf32>
    %248 = vector.broadcast %247 : vector<1x128xf32> to vector<48x128xf32>
    %249 = arith.addf %245, %248 : vector<48x128xf32>
    %c0_92 = arith.constant 0 : index
    %c0_93 = arith.constant 0 : index
    %c0_94 = arith.constant 0 : index
    %250 = vector.load %arg11[%c0_92, %c0_93, %c0_94] : memref<1x1x128xf32, #tpu.memory_space<vmem>>, vector<1x1x128xf32>
    %251 = vector.shape_cast %250 : vector<1x1x128xf32> to vector<1x128xf32>
    %c0_95 = arith.constant 0 : index
    %c0_96 = arith.constant 0 : index
    %c0_97 = arith.constant 0 : index
    %252 = vector.load %arg12[%c0_95, %c0_96, %c0_97] : memref<1x1x128xf32, #tpu.memory_space<vmem>>, vector<1x1x128xf32>
    %253 = vector.shape_cast %252 : vector<1x1x128xf32> to vector<1x128xf32>
    %cst_98 = arith.constant dense<0.000000e+00> : vector<48xf32>
    %254 = vector.multi_reduction <add>, %249, %cst_98 [1] : vector<48x128xf32> to vector<48xf32>
    %255 = vector.shape_cast %254 : vector<48xf32> to vector<48x1xf32>
    %cst_99 = arith.constant 1.280000e+02 : f32
    %256 = vector.broadcast %cst_99 : f32 to vector<48x1xf32>
    %257 = arith.divf %255, %256 : vector<48x1xf32>
    %258 = vector.broadcast %257 : vector<48x1xf32> to vector<48x128xf32>
    %259 = arith.subf %249, %258 : vector<48x128xf32>
    %260 = arith.mulf %259, %259 : vector<48x128xf32>
    %cst_100 = arith.constant dense<0.000000e+00> : vector<48xf32>
    %261 = vector.multi_reduction <add>, %260, %cst_100 [1] : vector<48x128xf32> to vector<48xf32>
    %262 = vector.shape_cast %261 : vector<48xf32> to vector<48x1xf32>
    %cst_101 = arith.constant 1.280000e+02 : f32
    %263 = vector.broadcast %cst_101 : f32 to vector<48x1xf32>
    %264 = arith.divf %262, %263 : vector<48x1xf32>
    %265 = vector.broadcast %257 : vector<48x1xf32> to vector<48x128xf32>
    %266 = arith.subf %249, %265 : vector<48x128xf32>
    %cst_102 = arith.constant 9.99999997E-7 : f32
    %267 = vector.broadcast %cst_102 : f32 to vector<48x1xf32>
    %268 = arith.addf %264, %267 : vector<48x1xf32>
    %269 = math.rsqrt %268 : vector<48x1xf32>
    %270 = vector.broadcast %269 : vector<48x1xf32> to vector<48x128xf32>
    %271 = arith.mulf %266, %270 : vector<48x128xf32>
    %272 = vector.broadcast %251 : vector<1x128xf32> to vector<48x128xf32>
    %273 = arith.mulf %271, %272 : vector<48x128xf32>
    %274 = vector.broadcast %253 : vector<1x128xf32> to vector<48x128xf32>
    %275 = arith.addf %273, %274 : vector<48x128xf32>
    %c0_103 = arith.constant 0 : index
    %c0_104 = arith.constant 0 : index
    %c0_105 = arith.constant 0 : index
    %276 = vector.load %arg13[%c0_103, %c0_104, %c0_105] : memref<1x128x512xbf16, #tpu.memory_space<vmem>>, vector<1x128x512xbf16>
    %277 = vector.shape_cast %276 : vector<1x128x512xbf16> to vector<128x512xbf16>
    %278 = arith.truncf %275 : vector<48x128xf32> to vector<48x128xbf16>
    %cst_106 = arith.constant dense<0.000000e+00> : vector<48x512xf32>
    %279 = tpu.matmul %278, %277, %cst_106 {dimension_numbers = #tpu.dot_dimension_numbers<[1], [0], [0], [1], [0, 0, 1, 1], [], []>} : vector<48x128xbf16>, vector<128x512xbf16>, vector<48x512xf32> -> vector<48x512xf32>
    %c0_107 = arith.constant 0 : index
    %c0_108 = arith.constant 0 : index
    %c0_109 = arith.constant 0 : index
    %280 = vector.load %arg14[%c0_107, %c0_108, %c0_109] : memref<1x1x512xf32, #tpu.memory_space<vmem>>, vector<1x1x512xf32>
    %281 = vector.shape_cast %280 : vector<1x1x512xf32> to vector<1x512xf32>
    %282 = vector.broadcast %281 : vector<1x512xf32> to vector<48x512xf32>
    %283 = arith.addf %279, %282 : vector<48x512xf32>
    %284 = arith.mulf %283, %283 : vector<48x512xf32>
    %285 = arith.mulf %283, %284 : vector<48x512xf32>
    %cst_110 = arith.constant 4.471500e-02 : f32
    %286 = vector.broadcast %cst_110 : f32 to vector<48x512xf32>
    %287 = arith.mulf %286, %285 : vector<48x512xf32>
    %288 = arith.addf %283, %287 : vector<48x512xf32>
    %cst_111 = arith.constant 0.797884583 : f32
    %289 = vector.broadcast %cst_111 : f32 to vector<48x512xf32>
    %290 = arith.mulf %289, %288 : vector<48x512xf32>
    %291 = math.tanh %290 : vector<48x512xf32>
    %cst_112 = arith.constant 1.000000e+00 : f32
    %292 = vector.broadcast %cst_112 : f32 to vector<48x512xf32>
    %293 = arith.addf %292, %291 : vector<48x512xf32>
    %cst_113 = arith.constant 5.000000e-01 : f32
    %294 = vector.broadcast %cst_113 : f32 to vector<48x512xf32>
    %295 = arith.mulf %294, %293 : vector<48x512xf32>
    %296 = arith.mulf %283, %295 : vector<48x512xf32>
    %c0_114 = arith.constant 0 : index
    %c0_115 = arith.constant 0 : index
    %c0_116 = arith.constant 0 : index
    %297 = vector.load %arg15[%c0_114, %c0_115, %c0_116] : memref<1x512x128xbf16, #tpu.memory_space<vmem>>, vector<1x512x128xbf16>
    %298 = vector.shape_cast %297 : vector<1x512x128xbf16> to vector<512x128xbf16>
    %299 = arith.truncf %296 : vector<48x512xf32> to vector<48x512xbf16>
    %cst_117 = arith.constant dense<0.000000e+00> : vector<48x128xf32>
    %300 = tpu.matmul %299, %298, %cst_117 {dimension_numbers = #tpu.dot_dimension_numbers<[1], [0], [0], [1], [0, 0, 1, 1], [], []>} : vector<48x512xbf16>, vector<512x128xbf16>, vector<48x128xf32> -> vector<48x128xf32>
    %301 = arith.addf %249, %300 : vector<48x128xf32>
    %c0_118 = arith.constant 0 : index
    %c0_119 = arith.constant 0 : index
    %c0_120 = arith.constant 0 : index
    %302 = vector.load %arg16[%c0_118, %c0_119, %c0_120] : memref<1x1x128xf32, #tpu.memory_space<vmem>>, vector<1x1x128xf32>
    %303 = vector.shape_cast %302 : vector<1x1x128xf32> to vector<1x128xf32>
    %304 = vector.broadcast %303 : vector<1x128xf32> to vector<48x128xf32>
    %305 = arith.addf %301, %304 : vector<48x128xf32>
    %c0_121 = arith.constant 0 : index
    %c0_122 = arith.constant 0 : index
    %306 = vector.load %arg20[%c0_121, %c0_122] : memref<48x128xf32, #tpu.memory_space<vmem>>, vector<48x128xf32>
    tpu.vector_store %arg20[%c0_121, %c0_122], %305 {strides = array<i32>} : memref<48x128xf32, #tpu.memory_space<vmem>>, vector<48x128xf32>,
    %c1_i32 = arith.constant 1 : i32
    %307 = arith.cmpi eq, %arg1, %c1_i32 : i32
    %308 = arith.extui %307 : i1 to i32
    %c0_i32_123 = arith.constant 0 : i32
    %309 = arith.cmpi ne, %308, %c0_i32_123 : i32
    scf.if %309 {
      %310 = vector.extract_strided_slice %305 {offsets = [0, 0], sizes = [1, 128], strides = [1, 1]} : vector<48x128xf32> to vector<1x128xf32>
      %311 = vector.extract_strided_slice %305 {offsets = [24, 0], sizes = [1, 128], strides = [1, 1]} : vector<48x128xf32> to vector<1x128xf32>
      %312 = tpu.concatenate %310, %311 in 0 : vector<1x128xf32>, vector<1x128xf32> -> vector<2x128xf32>
      %c0_124 = arith.constant 0 : index
      %c0_125 = arith.constant 0 : index
      %313 = vector.load %arg17[%c0_124, %c0_125] : memref<1x128xf32, #tpu.memory_space<vmem>>, vector<1x128xf32>
      %c0_126 = arith.constant 0 : index
      %c0_127 = arith.constant 0 : index
      %314 = vector.load %arg18[%c0_126, %c0_127] : memref<1x128xf32, #tpu.memory_space<vmem>>, vector<1x128xf32>
      %cst_128 = arith.constant dense<0.000000e+00> : vector<2xf32>
      %315 = vector.multi_reduction <add>, %312, %cst_128 [1] : vector<2x128xf32> to vector<2xf32>
      %316 = vector.shape_cast %315 : vector<2xf32> to vector<2x1xf32>
      %cst_129 = arith.constant 1.280000e+02 : f32
      %317 = vector.broadcast %cst_129 : f32 to vector<2x1xf32>
      %318 = arith.divf %316, %317 : vector<2x1xf32>
      %319 = vector.broadcast %318 : vector<2x1xf32> to vector<2x128xf32>
      %320 = arith.subf %312, %319 : vector<2x128xf32>
      %321 = arith.mulf %320, %320 : vector<2x128xf32>
      %cst_130 = arith.constant dense<0.000000e+00> : vector<2xf32>
      %322 = vector.multi_reduction <add>, %321, %cst_130 [1] : vector<2x128xf32> to vector<2xf32>
      %323 = vector.shape_cast %322 : vector<2xf32> to vector<2x1xf32>
      %cst_131 = arith.constant 1.280000e+02 : f32
      %324 = vector.broadcast %cst_131 : f32 to vector<2x1xf32>
      %325 = arith.divf %323, %324 : vector<2x1xf32>
      %326 = vector.broadcast %318 : vector<2x1xf32> to vector<2x128xf32>
      %327 = arith.subf %312, %326 : vector<2x128xf32>
      %cst_132 = arith.constant 9.99999997E-7 : f32
      %328 = vector.broadcast %cst_132 : f32 to vector<2x1xf32>
      %329 = arith.addf %325, %328 : vector<2x1xf32>
      %330 = math.rsqrt %329 : vector<2x1xf32>
      %331 = vector.broadcast %330 : vector<2x1xf32> to vector<2x128xf32>
      %332 = arith.mulf %327, %331 : vector<2x128xf32>
      %333 = vector.broadcast %313 : vector<1x128xf32> to vector<2x128xf32>
      %334 = arith.mulf %332, %333 : vector<2x128xf32>
      %335 = vector.broadcast %314 : vector<1x128xf32> to vector<2x128xf32>
      %336 = arith.addf %334, %335 : vector<2x128xf32>
      %c0_133 = arith.constant 0 : index
      %c0_134 = arith.constant 0 : index
      %c0_135 = arith.constant 0 : index
      %337 = vector.load %arg19[%c0_133, %c0_134, %c0_135] : memref<1x2x128xf32, #tpu.memory_space<vmem>>, vector<1x2x128xf32>
      %338 = vector.shape_cast %337 : vector<1x2x128xf32> to vector<2x128xf32>
      %339 = vector.shape_cast %336 : vector<2x128xf32> to vector<1x2x128xf32>
      tpu.vector_store %arg19[%c0_133, %c0_134, %c0_135], %339 {strides = array<i32>} : memref<1x2x128xf32, #tpu.memory_space<vmem>>, vector<1x2x128xf32>,
    } else {
    }
    return
  }
  func.func @transform_0(%arg0: i32, %arg1: i32) -> (i32, i32) {
    %c0_i32 = arith.constant 0 : i32
    %c0_i32_0 = arith.constant 0 : i32
    return %arg0, %c0_i32 : i32, i32
  }
  func.func @transform_1(%arg0: i32, %arg1: i32) -> (i32, i32) {
    %c0_i32 = arith.constant 0 : i32
    %c0_i32_0 = arith.constant 0 : i32
    %c0_i32_1 = arith.constant 0 : i32
    return %c0_i32, %c0_i32_0 : i32, i32
  }
  func.func @transform_2(%arg0: i32, %arg1: i32) -> (i32, i32) {
    %c0_i32 = arith.constant 0 : i32
    %c0_i32_0 = arith.constant 0 : i32
    %c0_i32_1 = arith.constant 0 : i32
    return %c0_i32, %c0_i32_0 : i32, i32
  }
  func.func @transform_3(%arg0: i32, %arg1: i32) -> (i32, i32, i32) {
    %c0_i32 = arith.constant 0 : i32
    %c0_i32_0 = arith.constant 0 : i32
    %c0_i32_1 = arith.constant 0 : i32
    return %arg1, %c0_i32, %c0_i32_0 : i32, i32, i32
  }
  func.func @transform_4(%arg0: i32, %arg1: i32) -> (i32, i32, i32) {
    %c0_i32 = arith.constant 0 : i32
    %c0_i32_0 = arith.constant 0 : i32
    %c0_i32_1 = arith.constant 0 : i32
    return %arg1, %c0_i32, %c0_i32_0 : i32, i32, i32
  }
  func.func @transform_5(%arg0: i32, %arg1: i32) -> (i32, i32, i32) {
    %c0_i32 = arith.constant 0 : i32
    %c0_i32_0 = arith.constant 0 : i32
    %c0_i32_1 = arith.constant 0 : i32
    return %arg1, %c0_i32, %c0_i32_0 : i32, i32, i32
  }
  func.func @transform_6(%arg0: i32, %arg1: i32) -> (i32, i32, i32) {
    %c0_i32 = arith.constant 0 : i32
    %c0_i32_0 = arith.constant 0 : i32
    %c0_i32_1 = arith.constant 0 : i32
    return %arg1, %c0_i32, %c0_i32_0 : i32, i32, i32
  }
  func.func @transform_7(%arg0: i32, %arg1: i32) -> (i32, i32, i32) {
    %c0_i32 = arith.constant 0 : i32
    %c0_i32_0 = arith.constant 0 : i32
    %c0_i32_1 = arith.constant 0 : i32
    return %arg1, %c0_i32, %c0_i32_0 : i32, i32, i32
  }
  func.func @transform_8(%arg0: i32, %arg1: i32) -> (i32, i32, i32) {
    %c0_i32 = arith.constant 0 : i32
    %c0_i32_0 = arith.constant 0 : i32
    %c0_i32_1 = arith.constant 0 : i32
    return %arg1, %c0_i32, %c0_i32_0 : i32, i32, i32
  }
  func.func @transform_9(%arg0: i32, %arg1: i32) -> (i32, i32, i32) {
    %c0_i32 = arith.constant 0 : i32
    %c0_i32_0 = arith.constant 0 : i32
    %c0_i32_1 = arith.constant 0 : i32
    return %arg1, %c0_i32, %c0_i32_0 : i32, i32, i32
  }
  func.func @transform_10(%arg0: i32, %arg1: i32) -> (i32, i32, i32) {
    %c0_i32 = arith.constant 0 : i32
    %c0_i32_0 = arith.constant 0 : i32
    %c0_i32_1 = arith.constant 0 : i32
    return %arg1, %c0_i32, %c0_i32_0 : i32, i32, i32
  }
  func.func @transform_11(%arg0: i32, %arg1: i32) -> (i32, i32, i32) {
    %c0_i32 = arith.constant 0 : i32
    %c0_i32_0 = arith.constant 0 : i32
    %c0_i32_1 = arith.constant 0 : i32
    return %arg1, %c0_i32, %c0_i32_0 : i32, i32, i32
  }
  func.func @transform_12(%arg0: i32, %arg1: i32) -> (i32, i32, i32) {
    %c0_i32 = arith.constant 0 : i32
    %c0_i32_0 = arith.constant 0 : i32
    %c0_i32_1 = arith.constant 0 : i32
    return %arg1, %c0_i32, %c0_i32_0 : i32, i32, i32
  }
  func.func @transform_13(%arg0: i32, %arg1: i32) -> (i32, i32, i32) {
    %c0_i32 = arith.constant 0 : i32
    %c0_i32_0 = arith.constant 0 : i32
    %c0_i32_1 = arith.constant 0 : i32
    return %arg1, %c0_i32, %c0_i32_0 : i32, i32, i32
  }
  func.func @transform_14(%arg0: i32, %arg1: i32) -> (i32, i32, i32) {
    %c0_i32 = arith.constant 0 : i32
    %c0_i32_0 = arith.constant 0 : i32
    %c0_i32_1 = arith.constant 0 : i32
    return %arg1, %c0_i32, %c0_i32_0 : i32, i32, i32
  }
  func.func @transform_15(%arg0: i32, %arg1: i32) -> (i32, i32) {
    %c0_i32 = arith.constant 0 : i32
    %c0_i32_0 = arith.constant 0 : i32
    %c0_i32_1 = arith.constant 0 : i32
    return %c0_i32, %c0_i32_0 : i32, i32
  }
  func.func @transform_16(%arg0: i32, %arg1: i32) -> (i32, i32) {
    %c0_i32 = arith.constant 0 : i32
    %c0_i32_0 = arith.constant 0 : i32
    %c0_i32_1 = arith.constant 0 : i32
    return %c0_i32, %c0_i32_0 : i32, i32
  }
  func.func @transform_17(%arg0: i32, %arg1: i32) -> (i32, i32, i32) {
    %c0_i32 = arith.constant 0 : i32
    %c0_i32_0 = arith.constant 0 : i32
    %c0_i32_1 = arith.constant 0 : i32
    return %arg0, %c0_i32, %c0_i32_0 : i32, i32, i32
  }
}

</mosaic_0001>

<bundles_post_ra>
// kernel: tpu_custom_call.1
= control target key start
LH: loop header
LB: loop body
LE: loop exit
PB: predicated region body
PF: predicated region fallthrough
CT: control target
= control target key end

     0   :  { %s7896_s0 = inlined_call_operand.hbm [shape: f32[96,192], index: 0, kind: input, shape index: {}]   ;;  %s7897_s1 = inlined_call_operand.hbm [shape: bf16[192,128], index: 1, kind: input, shape index: {}]   ;;  %s7898_s2 = inlined_call_operand.hbm [shape: f32[48,128], index: 2, kind: input, shape index: {}]   ;;  %s7899_s3 = inlined_call_operand.vmem [shape: f32[2,1,128], index: 3, kind: input, shape index: {}]   ;;  %s7900_s4 = inlined_call_operand.hbm [shape: f32[2,1,128], index: 4, kind: input, shape index: {}]   ;;  %s7901_s5 = inlined_call_operand.hbm [shape: bf16[2,128,384], index: 5, kind: input, shape index: {}]   ;;  %s7902_s6 = inlined_call_operand.vmem [shape: f32[2,1,384], index: 6, kind: input, shape index: {}]   ;;  %s7903_s7 = inlined_call_operand.hbm [shape: bf16[2,128,128], index: 7, kind: input, shape index: {}]   ;;  %s7904_s8 = inlined_call_operand.hbm [shape: f32[2,1,128], index: 8, kind: input, shape index: {}]   ;;  %s7905_s9 = inlined_call_operand.hbm [shape: f32[2,1,128], index: 9, kind: input, shape index: {}]   ;;  %s7906_s10 = inlined_call_operand.vmem [shape: f32[2,1,128], index: 10, kind: input, shape index: {}]   ;;  %s7907_s11 = inlined_call_operand.hbm [shape: bf16[2,128,512], index: 11, kind: input, shape index: {}]   ;;  %s7908_s12 = inlined_call_operand.vmem [shape: f32[2,1,512], index: 12, kind: input, shape index: {}]   ;;  %s7909_s13 = inlined_call_operand.hbm [shape: bf16[2,512,128], index: 13, kind: input, shape index: {}]   ;;  %s7910_s14 = inlined_call_operand.vmem [shape: f32[2,1,128], index: 14, kind: input, shape index: {}]   ;;  %s7911_s15 = inlined_call_operand.vmem [shape: f32[1,128], index: 15, kind: input, shape index: {}]   ;;  %s7912_s16 = inlined_call_operand.vmem [shape: f32[1,128], index: 16, kind: input, shape index: {}]   ;;  %s7913_s17 = inlined_call_operand.hbm [shape: f32[2,2,128], index: 17, kind: output, shape index: {}]  }
   0x1   :  { %7948 = sst [smem:[#allocation45_spill]] %s7896_s0 }
   0x2   :  { %7949 = sst [smem:[#allocation46_spill]] %s7897_s1 }
   0x3   :  { %7950 = sst [smem:[#allocation47_spill]] %s7898_s2 }
   0x4   :  { %7951 = sst [smem:[#allocation48_spill]] %s7899_s3 }
   0x5   :  { %7952 = sst [smem:[#allocation49_spill]] %s7900_s4 }
   0x6   :  { %7953 = sst [smem:[#allocation50_spill]] %s7901_s5 }
   0x7   :  { %7954 = sst [smem:[#allocation51_spill]] %s7902_s6 }
   0x8   :  { %7955 = sst [smem:[#allocation52_spill]] %s7903_s7 }
   0x9   :  { %7956 = sst [smem:[#allocation53_spill]] %s7904_s8 }
   0xa   :  { %7957 = sst [smem:[#allocation54_spill]] %s7905_s9 }
   0xb   :  { %7958 = sst [smem:[#allocation55_spill]] %s7906_s10 }
   0xc   :  { %7959 = sst [smem:[#allocation56_spill]] %s7907_s11 }
   0xd   :  { %7960 = sst [smem:[#allocation57_spill]] %s7908_s12 }
   0xe   :  { %7961 = sst [smem:[#allocation58_spill]] %s7909_s13 }
   0xf   :  { %7962 = sst [smem:[#allocation59_spill]] %s7910_s14 }
  0x10   :  { %7963 = sst [smem:[#allocation60_spill]] %s7911_s15 }
  0x11   :  { %7964 = sst [smem:[#allocation61_spill]] %s7912_s16 }
  0x12   :  { %7965 = sst [smem:[#allocation62_spill]] %s7913_s17 }
  0x13   :  { %22 = vsyncpa [#allocation4], 0 }
  0x14   :  { %24 = vsyncpa [#allocation4 + $0x1], 0 }
  0x15   :  { %25 = vsyncpa [#allocation7], 0 }
  0x16   :  { %26 = vsyncpa [#allocation10], 0 }
  0x17   :  { %28 = vsyncpa [#allocation10 + $0x1], 0 }
  0x18   :  { %29 = vsyncpa [#allocation13], 0 }
  0x19   :  { %31 = vsyncpa [#allocation13 + $0x1], 0 }
  0x1a   :  { %32 = vsyncpa [#allocation16], 0 }
  0x1b   :  { %34 = vsyncpa [#allocation16 + $0x1], 0 }
  0x1c   :  { %35 = vsyncpa [#allocation19], 0 }
  0x1d   :  { %37 = vsyncpa [#allocation19 + $0x1], 0 }
  0x1e   :  { %38 = vsyncpa [#allocation5], 0 }
  0x1f   :  { %40 = vsyncpa [#allocation5 + $0x1], 0  ;;  %s6511_s24 = smov 0   ;;  %s6513_s25 = smov 0  }
  0x20   :  { %s6515_s26 = smov 0   ;;  %s6517_s27 = smov 0  }
  0x21   :  { %s6519_s28 = smov 0   ;;  %s6521_s29 = smov 0  }
  0x22   :  { %s6523_s0 = smov 0   ;;  %s6525_s30 = smov 0  }
  0x23   :  { %s6527_s18 = smov 0   ;;  %s6529_s19 = smov 0  }
  0x24   :  { %s6531_s1 = smov 0  }
  0x25 LB: > { %7966 = sst [smem:[#allocation28_spill]] %s6357_s25  ;;  %s6565_s20 = sadd.s32 4294967295, %s6393_s1   ;;  %s6393_s1 = sphi %s6531_s1, %s46_s1   ;;  %s6389_s19 = sphi %s6529_s19, %s8054_s19   ;;  %s6385_s18 = sphi %s6527_s18, %s8053_s18   ;;  %s6381_s30 = sphi %s6525_s30, %s8052_s30   ;;  %s6377_s0 = sphi %s6523_s0, %s8051_s0   ;;  %s6373_s29 = sphi %s6521_s29, %s8050_s29   ;;  %s6369_s28 = sphi %s6519_s28, %s8049_s28   ;;  %s6365_s27 = sphi %s6517_s27, %s8048_s27   ;;  %s6361_s26 = sphi %s6515_s26, %s8047_s26   ;;  %s6357_s25 = sphi %s6513_s25, %s8046_s25   ;;  %s6353_s24 = sphi %s6511_s24, %s8045_s24  }
  0x26   : > { %7967 = sst [smem:[#allocation29_spill]] %s6361_s26  ;;  %s4840_s21 = sadd.s32 4294967294, %s6393_s1  }
  0x27   : > { %7968 = sst [smem:[#allocation30_spill]] %s6365_s27  ;;  %p78_p0 = scmp.ne.s32.totalorder %s6369_s28, %s6365_s27 }
  0x28   : > { %7969 = sst [smem:[#allocation31_spill]] %s6369_s28  ;;  %p7926_p1 = scmp.eq.s32.totalorder %s6565_s20, 0 }
  0x29   : > { %7970 = sst [smem:[#allocation32_spill]] %s6373_s29  ;;  %p172_p2 = scmp.ne.s32.totalorder %s6357_s25, %s6353_s24 }
  0x2a   : > { %7971 = sst [smem:[#allocation33_spill]] %s6377_s0  ;;  %p6575_p4 = por %p7926_p1, %p78_p0 }
  0x2b   : > { %7972 = sst [smem:[#allocation34_spill]] %s6381_s30  ;;  %p504_p5 = scmp.eq.s32.totalorder %s4840_s21, 3 }
  0x2c   : > { %7973 = sst [smem:[#allocation35_spill]] %s6385_s18  ;;  %p6581_p6 = por %p172_p2, %p7926_p1 }
  0x2d   : > { %7974 = sst [smem:[#allocation36_spill]] %s6389_s19  ;;  %p4841_p7 = scmp.ge.s32.totalorder %s6393_s1, 1 }
  0x2e   : > { %s7975_s22 = scalar_select %p6575_p4, 1, 0 }
  0x2f   : > { %s7977_s23 = scalar_select %p6581_p6, 1, 0 }
  0x30   : > { %7976 = sst [smem:[#allocation37_spill]] %s7975_s22  ;;  %p6586_p8 = por %p504_p5, %p78_p0 }
  0x31   : > { %7978 = sst [smem:[#allocation38_spill]] %s7977_s23  ;;  %p511_p9 = scmp.lt.s32.totalorder %s6393_s1, 5 }
  0x32   : > { %s7979_s17 = scalar_select %p6586_p8, 1, 0 }
  0x33   : > { %p6591_p10 = pnand %p4841_p7, %p511_p9  ;;  %s6395_s27 = smov [#allocation6]  }
  0x34   : > { %7980 = sst [smem:[#allocation39_spill]] %s7979_s17  ;;  %s523_s30 = sshll.u32 %s6395_s27, 4  ;;  %s524_s30 = int_to_ptr.vmem [resolvable:$true] %s523_s30 }
  0x35   : > { %s7981_s24 = scalar_select %p6591_p10, 1, 0 }
  0x36   : > { %p5522_p11 = pneg %p6591_p10  ;;  %p7934_p13 = scmp.eq.s32.totalorder %s6393_s1, 0 }
  0x37   : > { %7982 = sst [smem:[#allocation40_spill]] %s7981_s24  ;;  %s5988_s17 = scalar_lea.vmem %s524_s30, 1536 }
  0x38   : > { %p6599_p12 = pnand %p5522_p11, %p7926_p1  ;;  %p5989_p2 = scmp.ne.s32.totalorder %s524_s30, %s5988_s17 }
  0x39   : > { %p5996_p9 = scmp.lt.s32.totalorder %s524_s30, %s524_s30  ;;  %p5997_p3 = scmp.lt.s32.totalorder %s5988_s17, %s5988_s17 }
  0x3a   : > { %p5979_p0 = pneg %p6599_p12 }
  0x3b   : > { %p5998_p8 = por %p5997_p3, %p5996_p9 }
  0x3c   : > { %p5991_p5 = pnand %p5989_p2, %p5979_p0 }
  0x3e   : > { %p5992_p7 = pneg %p5991_p5 }
  0x40   : > { %p5999_p6 = pnand %p5998_p8, %p5992_p7 }
  0x42   : > { %6002 = shalt.err (!%p5999_p6)
}
  0x43   : > { %s7921_s27 = smov 64   ;;  %s7923_s16 = smov 4  }
  0x44   : > { %s7984_s14 = sld [smem:[#allocation46_spill]]  ;;  %p166_p3 = scmp.ne.s32.totalorder %s6361_s26, %s6357_s25 }
  0x45   : > { %p7927_p6 = scmp.lt.s32.totalorder %s6393_s1, 4  ;;  %s6622_s6 = sand.u32 1, %s6393_s1  }
  0x46   : > { %p168_p8 = por %p166_p3, %p7934_p13  ;;  %s6627_s10 = sand.u32 1, %s6361_s26  }
  0x47   : > { %s6630_s3 = sshll.u32 %s6385_s18, 4  ;;  %s7985_s4 = sld [smem:[#allocation49_spill]] }
  0x48   : > { %p6639_p11 = pnand %p7927_p6, %p168_p8  ;;  %s4849_s12 = sshll.u32 %s6627_s10, 6 }
  0x49   : > { %s6398_s0 = smov [#allocation9]  }
  0x4a   : > { %5525 = dma.hbm_to_vmem [thread:$0]  (!%p6599_p12), %s7984_s14, 1536, %s524_s30, [#allocation7], %s7921_s27, %s7921_s27, %s7923_s16  }
  0x4b   : > { %s587_s14 = scalar_lea.vmem [#allocation9], %s6627_s10  ;;  %s7931_s27 = scalar_lea.sflag [#allocation10], %s6622_s6 }
  0x4c   : > { %s594_s30 = sshll.u32 %s587_s14, 4  ;;  %p6647_p2 = pneg %p6639_p11  ;;  %s595_s30 = int_to_ptr.vmem [resolvable:$true] %s594_s30 }
  0x4d   : > { %s592_s15 = scalar_lea.hbm %s7985_s4, %s6630_s3  ;;  %s6016_s25 = scalar_lea.vmem %s595_s30, 16 }
  0x4e   : > { %s7987_s16 = scalar_select %p6647_p2, 1, 0 }
  0x4f   : > { %p6017_p5 = scmp.ne.s32.totalorder %s595_s30, %s6016_s25  ;;  %s6021_s23 = sshll.u32 %s6398_s0, 4  ;;  %s6022_s23 = int_to_ptr.vmem [resolvable:$false] %s6021_s23 }
  0x50   : > { %s6023_s14 = scalar_lea.vmem %s6022_s23, 32  ;;  %p6024_p3 = scmp.lt.s32.totalorder %s595_s30, %s6022_s23 }
  0x51   : > { %p6019_p7 = pnand %p6017_p5, %p6647_p2  ;;  %p6025_p8 = scmp.lt.s32.totalorder %s6023_s14, %s6016_s25 }
  0x53   : > { %p6020_p9 = pneg %p6019_p7  ;;  %p6026_p1 = por %p6025_p8, %p6024_p3 }
  0x55   : > { %p6027_p6 = pnand %p6026_p1, %p6020_p9 }
  0x57   : > { %6030 = shalt.err (!%p6027_p6)
}
  0x58   : > { %5535 = dma.hbm_to_vmem [thread:$0]  (!%p6639_p11), %s592_s15, 16, %s595_s30, %s7931_s27  }
  0x59   : > { %s5043_s4 = sshll.u32 %s6385_s18, 10  ;;  %s7988_s7 = sld [smem:[#allocation52_spill]] }
  0x5a   : > { %s633_s13 = scalar_lea.vmem [#allocation12], %s4849_s12  ;;  %s7940_s25 = scalar_lea.sflag [#allocation13], %s6622_s6 }
  0x5b   : > { %s640_s11 = sshll.u32 %s633_s13, 4  ;;  %s6399_s14 = smov [#allocation12]   ;;  %s641_s11 = int_to_ptr.vmem [resolvable:$true] %s640_s11 }
  0x5c   : > { %s6044_s23 = scalar_lea.vmem %s641_s11, 1024  ;;  %s6049_s8 = sshll.u32 %s6399_s14, 4  ;;  %s6050_s8 = int_to_ptr.vmem [resolvable:$false] %s6049_s8 }
  0x5d   : > { %p6045_p1 = scmp.ne.s32.totalorder %s641_s11, %s6044_s23  ;;  %s6051_s5 = scalar_lea.vmem %s6050_s8, 2048 }
  0x5e   : > { %p6052_p7 = scmp.lt.s32.totalorder %s641_s11, %s6050_s8  ;;  %p6053_p9 = scmp.lt.s32.totalorder %s6051_s5, %s6044_s23 }
  0x5f   : > { %s639_s0 = scalar_lea.hbm %s7988_s7, %s5043_s4  ;;  %p6047_p6 = pnand %p6045_p1, %p6647_p2 }
  0x60   : > { %p6054_p3 = por %p6053_p9, %p6052_p7 }
  0x61   : > { %p6048_p5 = pneg %p6047_p6 }
  0x63   : > { %p6055_p8 = pnand %p6054_p3, %p6048_p5 }
  0x65   : > { %6058 = shalt.err (!%p6055_p8)
}
  0x66   : > { %s7989_s4 = smov 4   ;;  %s7990_s12 = smov 64  }
  0x67   : > { %5541 = dma.hbm_to_vmem [thread:$0]  (!%p6639_p11), %s639_s0, 1024, %s641_s11, %s7940_s25, %s7990_s12, %s7990_s12, %s7989_s4  }
  0x68   : > { %s7991_s9 = sld [smem:[#allocation54_spill]]  ;;  %s670_s5 = scalar_lea.vmem [#allocation15], %s6627_s10 }
  0x69   : > { %s677_s24 = sshll.u32 %s670_s5, 4  ;;  %s6400_s15 = smov [#allocation8]   ;;  %s678_s24 = int_to_ptr.vmem [resolvable:$true] %s677_s24 }
  0x6a   : > { %s536_s30 = sshll.u32 %s6400_s15, 4  ;;  %s7939_s23 = scalar_lea.sflag [#allocation16], %s6622_s6  ;;  %s537_s30 = int_to_ptr.vmem [resolvable:$true] %s536_s30 }
  0x6b   : > { %s6072_s14 = scalar_lea.vmem %s678_s24, 16  ;;  %s6401_s27 = smov [#allocation15]  }
  0x6c   : > { %p6073_p1 = scmp.ne.s32.totalorder %s678_s24, %s6072_s14  ;;  %s6077_s7 = sshll.u32 %s6401_s27, 4  ;;  %s6078_s7 = int_to_ptr.vmem [resolvable:$false] %s6077_s7 }
  0x6d   : > { %s6079_s26 = scalar_lea.vmem %s6078_s7, 32  ;;  %p6080_p7 = scmp.lt.s32.totalorder %s678_s24, %s6078_s7 }
  0x6e   : > { %s675_s8 = scalar_lea.hbm %s7991_s9, %s6630_s3  ;;  %p6075_p6 = pnand %p6073_p1, %p6647_p2 }
  0x6f   : > { %p6081_p9 = scmp.lt.s32.totalorder %s6079_s26, %s6072_s14 }
  0x70   : > { %p6076_p5 = pneg %p6075_p6 }
  0x71   : > { %p6082_p3 = por %p6081_p9, %p6080_p7 }
  0x73   : > { %p6083_p8 = pnand %p6082_p3, %p6076_p5 }
  0x75   : > { %6086 = shalt.err (!%p6083_p8)
}
  0x76   : > { %5547 = dma.hbm_to_vmem [thread:$0]  (!%p6639_p11), %s675_s8, 16, %s678_s24, %s7939_s23  }
  0x77   : > { %s6098_s11 = scalar_lea.vmem %s537_s30, 768  ;;  %p6106_p4 = scmp.lt.s32.totalorder %s537_s30, %s537_s30 }
  0x78   : > { %p6099_p13 = scmp.ne.s32.totalorder %s537_s30, %s6098_s11  ;;  %p6107_p10 = scmp.lt.s32.totalorder %s6098_s11, %s6098_s11 }
  0x7a   : > { %p6101_p1 = pnand %p6099_p13, %p5979_p0  ;;  %p6108_p2 = por %p6107_p10, %p6106_p4 }
  0x7c   : > { %p6102_p6 = pneg %p6101_p1 }
  0x7e   : > { %p6109_p7 = pnand %p6108_p2, %p6102_p6 }
  0x80   : > { %6112 = shalt.err (!%p6109_p7)
}
  0x81   : > { %s6402_s7 = smov 128   ;;  %s6403_s26 = smov 8  }
  0x82   : > { %s7992_s2 = sld [smem:[#allocation47_spill]]  ;;  %s55_s22 = sadd.s32 1, %s6385_s18 }
  0x83   : > { %s7993_s13 = sld [smem:[#allocation29_spill]]  ;;  %p56_p4 = scmp.ge.s32.totalorder %s55_s22, 2 }
  0x84   : > { %s58_s8 = sadd.s32 1, %s6389_s19  ;;  %s65_s5 = sadd.s32 1, %s6373_s29 }
  0x85   : > { %p72_p10 = scmp.ne.s32.totalorder %s6373_s29, %s6369_s28  ;;  %s8056_s22 = smov (%p56_p4, %s55_s22), 0 }
  0x86   : > { %7994 = sst [smem:[#allocation41_spill]] %s8056_s22  ;;  %s8058_s8 = smov (!%p56_p4, %s58_s8), %s6389_s19 }
  0x87   : > { %p7995_p13 = scmp.eq.s32.totalorder %s6393_s1, 0  ;;  %s156_s21 = ssub.s32 %s6385_s18, %s8056_s22 }
  0x88   : > { %5528 = dma.hbm_to_vmem [thread:$0]  (!%p6599_p12), %s7992_s2, 768, %s537_s30, [#allocation7], %s6402_s7, %s6402_s7, %s6403_s26  }
  0x89   : > { %p74_p0 = por %p7995_p13, %p72_p10  ;;  %p60_p2 = scmp.ge.s32.totalorder %s8058_s8, 2 }
  0x8a   : > { %p157_p5 = scmp.eq.s32.totalorder %s156_s21, 0  ;;  %p7996_p12 = scmp.eq.s32.totalorder %s6565_s20, 3 }
  0x8b   : > { %s556_s15 = sand.u32 1, %s6373_s29   ;;  %s8060_s8 = smov (%p60_p2, %s8058_s8), 0 }
  0x8c   : > { %p6705_p9 = por %p7996_p12, %p72_p10  ;;  %7998 = sst [smem:[#allocation42_spill]] %s8060_s8 }
  0x8d   : > { %s7999_s30 = sadd.s32 1, %s7993_s13  ;;  %s62_s14 = ssub.s32 %s6389_s19, %s8060_s8 }
  0x8e   : > { %s8062_s13 = smov (!%p157_p5, %s7993_s13), %s7999_s30  ;;  %p63_p3 = scmp.eq.s32.totalorder %s62_s14, 0 }
  0x8f   : > { %8000 = sst [smem:[#allocation43_spill]] %s8062_s13  ;;  %s5490_s11 = smul.u32 96, %s556_s15 }
  0x90   : > { %s5046_s7 = smul.u32 1536, %s6389_s19  ;;  %p8001_p8 = scmp.lt.s32.totalorder %s6393_s1, 4 }
  0x91   : > { %s6727_s27 = scalar_select %p63_p3, %s6373_s29, %s65_s5  }
  0x92   : > { %p6722_p1 = pnand %p8001_p8, %p74_p0  ;;  %s8004_s23 = sld [smem:[#allocation45_spill]] }
  0x93   : > { %8003 = sst [smem:[#allocation44_spill]] %s6727_s27  ;;  %s560_s2 = scalar_lea.vmem [#allocation3], %s5490_s11 }
  0x94   : > { %s568_s9 = sshll.u32 %s560_s2, 4  ;;  %s5491_s30 = smul.u32 192, %s6627_s10  ;;  %s569_s9 = int_to_ptr.vmem [resolvable:$true] %s568_s9 }
  0x95   : > { %s557_s8 = scalar_lea.sflag [#allocation4], %s556_s15  ;;  %p6115_p6 = pneg %p6722_p1 }
  0x96   : > { %s6126_s14 = scalar_lea.vmem %s569_s9, 1536  ;;  %s6404_s22 = smov [#allocation3]  }
  0x97   : > { %p6127_p7 = scmp.ne.s32.totalorder %s569_s9, %s6126_s14  ;;  %s6131_s19 = sshll.u32 %s6404_s22, 4  ;;  %s6132_s19 = int_to_ptr.vmem [resolvable:$false] %s6131_s19 }
  0x98   : > { %s567_s25 = scalar_lea.hbm %s8004_s23, %s5046_s7  ;;  %s6133_s5 = scalar_lea.vmem %s6132_s19, 3072 }
  0x99   : > { %p6129_p4 = pnand %p6127_p7, %p6115_p6  ;;  %p6134_p13 = scmp.lt.s32.totalorder %s569_s9, %s6132_s19 }
  0x9a   : > { %p6135_p0 = scmp.lt.s32.totalorder %s6133_s5, %s6126_s14 }
  0x9b   : > { %p6130_p10 = pneg %p6129_p4 }
  0x9c   : > { %p6136_p2 = por %p6135_p0, %p6134_p13 }
  0x9e   : > { %p6137_p5 = pnand %p6136_p2, %p6130_p10 }
  0xa0   : > { %6140 = shalt.err (!%p6137_p5)
}
  0xa1   : > { %s7944_s23 = smov 256   ;;  %s6406_s2 = smov 16  }
  0xa2   : > { %5532 = dma.hbm_to_vmem [thread:$0]  (!%p6722_p1), %s567_s25, 1536, %s569_s9, %s557_s8, %s7944_s23, %s7944_s23, %s6406_s2  }
  0xa3   : > { %s5492_s15 = smul.u32 3072, %s6385_s18  ;;  %s605_s11 = scalar_lea.vmem [#allocation11], %s5491_s30 }
  0xa4   : > { %s612_s22 = sshll.u32 %s605_s11, 4  ;;  %s8005_s19 = sld [smem:[#allocation50_spill]]  ;;  %s613_s22 = int_to_ptr.vmem [resolvable:$true] %s612_s22 }
  0xa5   : > { %s6154_s14 = scalar_lea.vmem %s613_s22, 3072  ;;  %p8006_p3 = scmp.ne.s32.totalorder %s7987_s16, 0 }
  0xa6   : > { %p6155_p12 = scmp.ne.s32.totalorder %s613_s22, %s6154_s14  ;;  %s6407_s5 = smov [#allocation11]  }
  0xa7   : > { %s6159_s27 = sshll.u32 %s6407_s5, 4  ;;  %s6160_s27 = int_to_ptr.vmem [resolvable:$false] %s6159_s27 }
  0xa8   : > { %p6157_p8 = pnand %p6155_p12, %p8006_p3  ;;  %s6161_s26 = scalar_lea.vmem %s6160_s27, 6144 }
  0xa9   : > { %p6162_p7 = scmp.lt.s32.totalorder %s613_s22, %s6160_s27  ;;  %p6163_p4 = scmp.lt.s32.totalorder %s6161_s26, %s6154_s14 }
  0xaa   : > { %s611_s21 = scalar_lea.hbm %s8005_s19, %s5492_s15  ;;  %p6158_p6 = pneg %p6157_p8 }
  0xab   : > { %p6164_p1 = por %p6163_p4, %p6162_p7 }
  0xad   : > { %p6165_p10 = pnand %p6164_p1, %p6158_p6 }
  0xaf   : > { %6168 = shalt.err (!%p6165_p10)
}
  0xb0   : > { %s6408_s9 = smov 192   ;;  %s6409_s25 = smov 12  }
  0xb1   : > { %s8007_s8 = scalar_lea.sflag [#allocation10], %s6622_s6  ;;  %s8008_s11 = sld [smem:[#allocation53_spill]] }
  0xb2   : > { %5538 = dma.hbm_to_vmem [thread:$0]  (!%p6639_p11), %s611_s21, 3072, %s613_s22, %s8007_s8, %s6408_s9, %s6408_s9, %s6409_s25  }
  0xb3   : > { %s653_s27 = scalar_lea.vmem [#allocation14], %s6627_s10  ;;  %s4854_s19 = sshll.u32 %s6627_s10, 8 }
  0xb4   : > { %s660_s0 = sshll.u32 %s653_s27, 4  ;;  %s6410_s5 = smov [#allocation14]   ;;  %s661_s0 = int_to_ptr.vmem [resolvable:$true] %s660_s0 }
  0xb5   : > { %s6182_s14 = scalar_lea.vmem %s661_s0, 16  ;;  %s6187_s26 = sshll.u32 %s6410_s5, 4  ;;  %s6188_s26 = int_to_ptr.vmem [resolvable:$false] %s6187_s26 }
  0xb6   : > { %p6183_p13 = scmp.ne.s32.totalorder %s661_s0, %s6182_s14  ;;  %s6189_s23 = scalar_lea.vmem %s6188_s26, 32 }
  0xb7   : > { %s658_s7 = scalar_lea.hbm %s8008_s11, %s6630_s3  ;;  %p6190_p5 = scmp.lt.s32.totalorder %s661_s0, %s6188_s26 }
  0xb8   : > { %p6185_p0 = pnand %p6183_p13, %p8006_p3  ;;  %p6191_p12 = scmp.lt.s32.totalorder %s6189_s23, %s6182_s14 }
  0xba   : > { %p6186_p2 = pneg %p6185_p0  ;;  %p6192_p8 = por %p6191_p12, %p6190_p5 }
  0xbc   : > { %p6193_p6 = pnand %p6192_p8, %p6186_p2 }
  0xbe   : > { %6196 = shalt.err (!%p6193_p6)
}
  0xbf   : > { %s8009_s3 = scalar_lea.sflag [#allocation13], %s6622_s6  ;;  %s5044_s22 = sshll.u32 %s6385_s18, 12 }
  0xc0   : > { %5544 = dma.hbm_to_vmem [thread:$0]  (!%p6639_p11), %s658_s7, 16, %s661_s0, %s8009_s3  }
  0xc1   : > { %s8010_s25 = sld [smem:[#allocation56_spill]]  ;;  %s694_s30 = scalar_lea.vmem [#allocation17], %s4854_s19 }
  0xc2   : > { %s701_s15 = sshll.u32 %s694_s30, 4  ;;  %s6411_s11 = smov [#allocation17]   ;;  %s702_s15 = int_to_ptr.vmem [resolvable:$true] %s701_s15 }
  0xc3   : > { %s6210_s23 = scalar_lea.vmem %s702_s15, 4096  ;;  %s6215_s27 = sshll.u32 %s6411_s11, 4  ;;  %s6216_s27 = int_to_ptr.vmem [resolvable:$false] %s6215_s27 }
  0xc4   : > { %p6211_p7 = scmp.ne.s32.totalorder %s702_s15, %s6210_s23  ;;  %s6217_s14 = scalar_lea.vmem %s6216_s27, 8192 }
  0xc5   : > { %p6218_p10 = scmp.lt.s32.totalorder %s702_s15, %s6216_s27  ;;  %p6219_p13 = scmp.lt.s32.totalorder %s6217_s14, %s6210_s23 }
  0xc6   : > { %p6213_p4 = pnand %p6211_p7, %p8006_p3 }
  0xc7   : > { %s700_s8 = scalar_lea.hbm %s8010_s25, %s5044_s22  ;;  %p6220_p0 = por %p6219_p13, %p6218_p10 }
  0xc8   : > { %p6214_p1 = pneg %p6213_p4 }
  0xca   : > { %p6221_p2 = pnand %p6220_p0, %p6214_p1 }
  0xcc   : > { %6224 = shalt.err (!%p6221_p2)
}
  0xcd   : > { %s8011_s7 = smov 256   ;;  %s8012_s0 = scalar_lea.sflag [#allocation16], %s6622_s6 }
  0xce   : > { %5550 = dma.hbm_to_vmem [thread:$0]  (!%p6639_p11), %s700_s8, 4096, %s702_s15, %s8012_s0, %s8011_s7, %s8011_s7, %s6406_s2  }
  0xcf   : > { %s8013_s3 = sld [smem:[#allocation58_spill]]  ;;  %s722_s9 = scalar_lea.vmem [#allocation18], %s4854_s19 }
  0xd0   : > { %s729_s25 = sshll.u32 %s722_s9, 4  ;;  %s719_s30 = scalar_lea.sflag [#allocation19], %s6627_s10  ;;  %s730_s25 = int_to_ptr.vmem [resolvable:$true] %s729_s25 }
  0xd1   : > { %s6238_s23 = scalar_lea.vmem %s730_s25, 4096  ;;  %s6412_s11 = smov [#allocation18]  }
  0xd2   : > { %p6239_p5 = scmp.ne.s32.totalorder %s730_s25, %s6238_s23  ;;  %s6243_s6 = sshll.u32 %s6412_s11, 4  ;;  %s6244_s6 = int_to_ptr.vmem [resolvable:$false] %s6243_s6 }
  0xd3   : > { %s6245_s27 = scalar_lea.vmem %s6244_s6, 8192  ;;  %p6246_p6 = scmp.lt.s32.totalorder %s730_s25, %s6244_s6 }
  0xd4   : > { %p6241_p12 = pnand %p6239_p5, %p8006_p3  ;;  %p6247_p7 = scmp.lt.s32.totalorder %s6245_s27, %s6238_s23 }
  0xd5   : > { %s728_s21 = scalar_lea.hbm %s8013_s3, %s5044_s22 }
  0xd6   : > { %p6242_p8 = pneg %p6241_p12  ;;  %p6248_p4 = por %p6247_p7, %p6246_p6 }
  0xd8   : > { %p6249_p1 = pnand %p6248_p4, %p6242_p8 }
  0xda   : > { %6252 = shalt.err (!%p6249_p1)
}
  0xdb   : > { %5553 = dma.hbm_to_vmem [thread:$0]  (!%p6639_p11), %s728_s21, 4096, %s730_s25, %s719_s30, %s7990_s12, %s7990_s12, %s7989_s4  }
  0xdc   : > { %s8014_s10 = sld [smem:[#allocation40_spill]] }
  0xe2   : > { %p8015_p10 = scmp.ne.s32.totalorder %s8014_s10, 0 }
  0xe3   : > { %s8016_s16 = sld [smem:[#allocation37_spill]] (!%p8015_p10)  ;;  %s6793_s2 = sand.u32 (!%p8015_p10), 1, %s6369_s28  }
  0xe4   : > { %747 = sbr.rel (%p8015_p10) target bundleno = 5851 (0x16db), region = 88  ;;  %s750_s22 = scalar_lea.sflag (!%p8015_p10), [#allocation4], %s6793_s2 }
  0xe5   : > { %s5493_s19 = smul.u32 (!%p8015_p10), 96, %s6793_s2 }
  0xe7   : > { %s6797_s8 = scalar_lea.vmem (!%p8015_p10), [#allocation3], %s5493_s19 }
  0xe9   : > { %p8017_p3 = scmp.ne.s32.totalorder %s8016_s16, 0 }
  0xeb   : > { %6324 = dma.done.wait (%p8017_p3), %s750_s22, 1536  }
  0xec   : > { %6326 = vsyncadd (%p8017_p3), %s750_s22, 4294965760  ;;  %p8018_p11 = scmp.eq.s32.totalorder %s6565_s20, 0 }
  0xee   : > { %6328 = dma.done.wait (%p8018_p11), [#allocation7], 2304   ;;  %p8019_p13 = pmov %p8018_p11 }
  0xef   : > { %s8020_s17 = sld [smem:[#allocation28_spill]]  ;;  %s766_s12 = sand.u32 1, %s6565_s20  }
  0xf0   : > { %6330 = vsyncadd (%p8019_p13), [#allocation7], 4294964992  ;;  %s8021_s4 = sld [smem:[#allocation38_spill]]  ;;  %s767_s14 = scalar_lea.sflag [#allocation10], %s766_s12 }
  0xf5   : > { %s6809_s15 = sand.u32 1, %s8020_s17  }
  0xf6   : > { %p8022_p0 = scmp.ne.s32.totalorder %s8021_s4, 0 }
  0xf8   : > { %6332 = dma.done.wait (%p8022_p0), %s767_s14, 3088  }
  0xf9   : > { %6334 = vsyncadd (%p8022_p0), %s767_s14, 4294964208  ;;  %s5494_s0 = smul.u32 192, %s6809_s15  ;;  %s4863_s5 = sshll.u32 %s6809_s15, 6 }
  0xfa   : > { %s784_s3 = scalar_lea.sflag [#allocation13], %s766_s12  ;;  %s6820_s21 = scalar_lea.vmem [#allocation12], %s4863_s5 }
  0xfb   : > { %s6818_s26 = scalar_lea.vmem [#allocation11], %s5494_s0 }
  0xfc   : > { %6336 = dma.done.wait (%p8022_p0), %s784_s3, 1040  }
  0xfd   : > { %6338 = vsyncadd (%p8022_p0), %s784_s3, 4294966256  ;;  %s801_s9 = scalar_lea.sflag [#allocation16], %s766_s12 }
  0xfe   : > { %6340 = dma.done.wait (%p8022_p0), %s801_s9, 4112  }
  0xff   : > { %6342 = vsyncadd (%p8022_p0), %s801_s9, 4294963184  ;;  %s4864_s30 = sshll.u32 %s6809_s15, 8  ;;  %s818_s11 = scalar_lea.sflag [#allocation19], %s6809_s15 }
 0x100   : > { %s6833_s23 = scalar_lea.vmem [#allocation17], %s4864_s30  ;;  %s6836_s6 = scalar_lea.vmem [#allocation18], %s4864_s30 }
 0x101   : > { %6344 = dma.done.wait (%p8022_p0), %s818_s11, 4096  }
 0x102   : > { %6346 = vsyncadd (%p8022_p0), %s818_s11, 4294963200  ;;  %s8023_s27 = sld [smem:[#allocation33_spill]]  ;;  %s4866_s10 = sshll.u32 %s6793_s2, 1 }
 0x103   : > { %s8025_s5 = sld [smem:[#allocation55_spill]]  ;;  %s6871_s12 = scalar_lea.vmem [#allocation20], %s4866_s10 }
 0x104   : > { %s8026_s25 = sld [smem:[#allocation51_spill]] }
 0x105   : > { %s8027_s29 = sld [smem:[#allocation57_spill]] }
 0x106   : > { %s8028_s13 = sld [smem:[#allocation59_spill]] }
 0x108   : > { %p922_p2 = scmp.lt.s32.totalorder %s8023_s27, 1  ;;  %p4868_p5 = scmp.ne.s32.totalorder %s8023_s27, 0 }
 0x10a   : > { %s6845_s16 = scalar_select %p922_p2, %s8023_s27, 1 }
 0x10b   : > { %943 = sbr.rel (%p4868_p5) target bundleno = 529 (0x211), region = 132 }
 0x10c   : > { %s5495_s14 = smul.u32 3, %s6845_s16  ;;  %s931_s3 = scalar_lea.vmem %s8025_s5, %s6845_s16 }
 0x10d   : > { %s4867_s9 = sshll.u32 %s6845_s16, 2  ;;  %s938_s17 = scalar_lea.vmem %s8028_s13, %s6845_s16 }
 0x10e   : > { %s6860_s20 = scalar_lea.vmem %s8026_s25, %s5495_s14  ;;  %s6865_s19 = scalar_lea.vmem %s8027_s29, %s4867_s9 }
 0x110   : > { %v5669_v0 = vld [vmem:[#allocation6 + $0x38] sm:$0xff]   ;;  %v6413_v1 = vmov 0   ;;  %v5670_v2 = vld [vmem:[#allocation6 + $0x30] sm:$0xff]   ;;  %v5671_v3 = vld [vmem:[#allocation6 + $0x28] sm:$0xff]   ;;  %vm1064_vm0 = vcmask 523264  }
 0x111   : > { %5442 = vmatprep.subr.bf16.mxu1 %v6413_v1  ;;  %1074 = vmatprep.subr.bf16.mxu0 %v6413_v1  ;;  %v5672_v4 = vld [vmem:[#allocation6 + $0x20] sm:$0xff]   ;;  %v949_v5 = vld [vmem:[%s6797_s8 + $0x28] sm:$0xff]  ;;  %v951_v6 = vld [vmem:[%s6797_s8 + $0x38] sm:$0xff] }
 0x112   : > { %5454 = vmatpush1.bf16.msra.mxu1 %v5669_v0  ;;  %1075 = vmatpush1.bf16.msra.mxu0 %v5669_v0  ;;  %v983_v7 = vpack.c.bf16 %v951_v6, %v949_v5  ;;  %v945_v8 = vld [vmem:[%s6797_s8 + $0x8] sm:$0xff]  ;;  %v947_v9 = vld [vmem:[%s6797_s8 + $0x18] sm:$0xff]  ;;  %v5674_v12 = vld [vmem:[#allocation6 + $0x10] sm:$0xff]  }
 0x113   : > { %5443 = vmatprep.subr.bf16.mxu1 %v6413_v1  ;;  %1076 = vmatprep.subr.bf16.mxu0 %v6413_v1  ;;  %v5673_v10 = vld [vmem:[#allocation6 + $0x18] sm:$0xff]   ;;  %v981_v11 = vpack.c.bf16 %v947_v9, %v945_v8  ;;  %v5675_v13 = vld [vmem:[#allocation6 + $0x8] sm:$0xff]   ;;  %v5676_v14 = vld [vmem:[#allocation6] sm:$0xff]  }
 0x114   : > { %4882 = vmatprep.mubr.msk.bf16.mxu1 %vm1064_vm0, %v983_v7  ;;  %v5677_v15 = vld [vmem:[#allocation6 + $0x58] sm:$0xff]   ;;  %v5678_v16 = vld [vmem:[#allocation6 + $0x50] sm:$0xff]   ;;  %v5679_v17 = vld [vmem:[#allocation6 + $0x48] sm:$0xff]  }
 0x115   : > { %4881 = vmatprep.mubr.msk.bf16.mxu0 %vm1064_vm0, %v981_v11  ;;  %v5680_v18 = vld [vmem:[#allocation6 + $0x40] sm:$0xff]   ;;  %v950_v20 = vld [vmem:[%s6797_s8 + $0x30] sm:$0xff]  ;;  %v953_v23 = vld [vmem:[%s6797_s8 + $0x48] sm:$0xff] }
 0x116   : > { %5455 = vmatpush1.bf16.msra.mxu1 %v5670_v2  ;;  %1077 = vmatpush1.bf16.msra.mxu0 %v5670_v2  ;;  %v948_v19 = vld [vmem:[%s6797_s8 + $0x20] sm:$0xff]  ;;  %v946_v22 = vld [vmem:[%s6797_s8 + $0x10] sm:$0xff]  ;;  %v955_v24 = vld [vmem:[%s6797_s8 + $0x58] sm:$0xff] }
 0x117   : > { %5444 = vmatprep.subr.bf16.mxu1 %v6413_v1  ;;  %1078 = vmatprep.subr.bf16.mxu0 %v6413_v1  ;;  %v944_v21 = vld [vmem:[%s6797_s8] sm:$0xff]  ;;  %v982_v25 = vpack.c.bf16 %v950_v20, %v948_v19  ;;  %v985_v27 = vpack.c.bf16 %v955_v24, %v953_v23  ;;  %v954_v29 = vld [vmem:[%s6797_s8 + $0x50] sm:$0xff]  ;;  %v989_v39 = vld [vmem:[#allocation8 + $0x18] sm:$0xff] }
 0x118   : > { %v980_v26 = vpack.c.bf16 %v946_v22, %v944_v21  ;;  %v952_v28 = vld [vmem:[%s6797_s8 + $0x40] sm:$0xff]  ;;  %v988_v31 = vld [vmem:[#allocation8 + $0x10] sm:$0xff]  ;;  %v987_v40 = vld [vmem:[#allocation8 + $0x8] sm:$0xff] }
 0x119   : > { %v984_v30 = vpack.c.bf16 %v954_v29, %v952_v28  ;;  %v986_v32 = vld [vmem:[#allocation8] sm:$0xff]  ;;  %v991_v51 = vld [vmem:[#allocation8 + $0x28] sm:$0xff] }
 0x11a   : > { %5456 = vmatpush1.bf16.msra.mxu1 %v5671_v3  ;;  %1079 = vmatpush1.bf16.msra.mxu0 %v5671_v3  ;;  %v990_v47 = vld [vmem:[#allocation8 + $0x20] sm:$0xff] }
 0x11b   : > { %5445 = vmatprep.subr.bf16.mxu1 %v6413_v1  ;;  %1080 = vmatprep.subr.bf16.mxu0 %v6413_v1 }
 0x11e   : > { %5457 = vmatpush1.bf16.msra.mxu1 %v5672_v4  ;;  %1081 = vmatpush1.bf16.msra.mxu0 %v5672_v4 }
 0x11f   : > { %5446 = vmatprep.subr.bf16.mxu1 %v6413_v1  ;;  %1082 = vmatprep.subr.bf16.mxu0 %v6413_v1 }
 0x122   : > { %5458 = vmatpush1.bf16.msra.mxu1 %v5673_v10  ;;  %1083 = vmatpush1.bf16.msra.mxu0 %v5673_v10 }
 0x123   : > { %5447 = vmatprep.subr.bf16.mxu1 %v6413_v1  ;;  %1084 = vmatprep.subr.bf16.mxu0 %v6413_v1 }
 0x126   : > { %5459 = vmatpush1.bf16.msra.mxu1 %v5674_v12  ;;  %1085 = vmatpush1.bf16.msra.mxu0 %v5674_v12 }
 0x127   : > { %5448 = vmatprep.subr.bf16.mxu1 %v6413_v1  ;;  %1086 = vmatprep.subr.bf16.mxu0 %v6413_v1 }
 0x12a   : > { %5460 = vmatpush1.bf16.msra.mxu1 %v5675_v13  ;;  %1087 = vmatpush1.bf16.msra.mxu0 %v5675_v13 }
 0x12b   : > { %5449 = vmatprep.subr.bf16.mxu1 %v6413_v1  ;;  %1088 = vmatprep.subr.bf16.mxu0 %v6413_v1 }
 0x12e   : > { %5461 = vmatpush1.bf16.msra.mxu1 %v5676_v14  ;;  %1089 = vmatpush1.bf16.msra.mxu0 %v5676_v14 }
 0x12f   : > { %5450 = vmatprep.subr.bf16.mxu1 %v6413_v1  ;;  %1098 = vmatprep.subr.bf16.mxu0 %v6413_v1 }
 0x132   : > { %5462 = vmatpush2.bf16.msra.mxu1 %v5677_v15  ;;  %1099 = vmatpush2.bf16.msra.mxu0 %v5677_v15 }
 0x133   : > { %5451 = vmatprep.subr.bf16.mxu1 %v6413_v1  ;;  %1100 = vmatprep.subr.bf16.mxu0 %v6413_v1 }
 0x136   : > { %5463 = vmatpush2.bf16.msra.mxu1 %v5678_v16  ;;  %1101 = vmatpush2.bf16.msra.mxu0 %v5678_v16 }
 0x137   : > { %5452 = vmatprep.subr.bf16.mxu1 %v6413_v1  ;;  %1102 = vmatprep.subr.bf16.mxu0 %v6413_v1 }
 0x13a   : > { %5464 = vmatpush2.bf16.msra.mxu1 %v5679_v17  ;;  %1103 = vmatpush2.bf16.msra.mxu0 %v5679_v17 }
 0x13b   : > { %5453 = vmatprep.subr.bf16.mxu1 %v6413_v1  ;;  %1104 = vmatprep.subr.bf16.mxu0 %v6413_v1 }
 0x13e   : > { %5465 = vmatpush2.bf16.msra.mxu1 %v5680_v18  ;;  %1105 = vmatpush2.bf16.msra.mxu0 %v5680_v18 }
 0x141   : > { %1115 = vmatmul.mubr.bf16.vlgmr.msra.gmra.mxu1 %v982_v25  ;;  %1107 = vmatmul.mubr.bf16.vlgmr.msra.gmra.mxu0 %v980_v26 }
 0x142   : > { %4883 = vmatprep.mubr.msk.bf16.mxu1 %vm1064_vm0, %v985_v27 }
 0x149   : > { %1123 = vmatmul.mubr.bf16.gmra.mxu1 %v984_v30 }
 0x201   : > { %v1116_v33 = vpop.f32.mrf.mxu1  ;;  %v1108_v34 = vpop.f32.mrf.mxu0 }
 0x202   : > { %v1117_v35 = vadd.f32 %v1116_v33, %v988_v31  ;;  %v1109_v36 = vadd.f32 %v1108_v34, %v986_v32 }
 0x203   : > { %v1118_v37 = vpop.f32.mrf.mxu1  ;;  %v1110_v38 = vpop.f32.mrf.mxu0 }
 0x204   : > { %1133 = vst [vmem:[#allocation2 + $0x8] sm:$0xff] %v1117_v35  ;;  %1131 = vst [vmem:[#allocation2 + $0x28] sm:$0xff] %v1109_v36 }
 0x205   : > { %v1119_v41 = vpop.f32.mrf.mxu1  ;;  %v1111_v42 = vpop.f32.mrf.mxu0 }
 0x206   : > { %v1120_v43 = vadd.f32 %v1119_v41, %v989_v39  ;;  %v1112_v44 = vadd.f32 %v1111_v42, %v987_v40 }
 0x207   : > { %v1121_v45 = vpop.f32.mrf.mxu1  ;;  %v1113_v46 = vpop.f32.mrf.mxu0 }
 0x208   : > { %1134 = vst [vmem:[#allocation2] sm:$0xff] %v1120_v43  ;;  %1132 = vst [vmem:[#allocation2 + $0x10] sm:$0xff] %v1112_v44 }
 0x209   : > { %v1124_v48 = vpop.f32.mrf.mxu1 }
 0x20a   : > { %v1125_v49 = vadd.f32 %v1124_v48, %v990_v47 }
 0x20b   : > { %v1126_v50 = vpop.f32.mrf.mxu1 }
 0x20c   : > { %1135 = vst [vmem:[#allocation2 + $0x18] sm:$0xff] %v1125_v49 }
 0x20d   : > { %v1127_v52 = vpop.f32.mrf.mxu1 }
 0x20e   : > { %v1128_v53 = vadd.f32 %v1127_v52, %v991_v51 }
 0x20f   : > { %v1129_v54 = vpop.f32.mrf.mxu1 }
 0x210   : > { %1136 = vst [vmem:[#allocation2 + $0x20] sm:$0xff] %v1128_v53 }
 0x211 PF: > { %v1137_v55 = vld [vmem:[#allocation2 + $0x28] sm:$0xff]  ;;  %v1138_v57 = vld [vmem:[#allocation2 + $0x10] sm:$0xff]  ;;  %v1140_v58 = vld [vmem:[#allocation2] sm:$0xff]  ;;  %v6414_v61 = vmov 0.0   ;;  %v6415_v36 = vmov 0   ;;  %vm6416_vm1 = vmmov 0  }
 0x212   : > { %v1139_v56 = vld [vmem:[#allocation2 + $0x8] sm:$0xff]  ;;  %1145 = vadd.xlane.f32.xlu0 %v1137_v55  ;;  %5222 = vmatprep.subr.bf16.mxu1 %v6414_v61  ;;  %v5684_v62 = vld [vmem:[%s6818_s26 + $0xb0] ss:$12 sps:$4 sm:$0xff]   ;;  %v5685_v17 = vld [vmem:[%s6818_s26 + $0x94] ss:$12 sps:$4 sm:$0xff]   ;;  %s8029_s18 = sld [smem:[#allocation48_spill]] }
 0x213   : > { %1149 = vadd.xlane.f32.xlu1 %v1139_v56  ;;  %v5681_v59 = vld [vmem:[%s6818_s26 + $0xac] ss:$12 sps:$4 sm:$0xff]   ;;  %v5683_v60 = vld [vmem:[%s6818_s26 + $0xa8] ss:$12 sps:$4 sm:$0xff]   ;;  %5223 = vmatpush3.bf16.msra.mxu1 %v5684_v62  ;;  %v5687_v18 = vld [vmem:[%s6818_s26 + $0x90] ss:$12 sps:$4 sm:$0xff]  }
 0x214   : > { %1416 = vmatprep.subr.bf16.mxu0 %v5681_v59  ;;  %5224 = vmatprep.subr.bf16.mxu1 %v6414_v61  ;;  %v6934_v15 = vld [vmem:[#allocation2 + $0x18] sm:$0xff]  ;;  %v5692_v22 = vld [vmem:[%s6818_s26 + $0x80] ss:$12 sps:$4 sm:$0xff]   ;;  %v5693_v23 = vld [vmem:[%s6818_s26 + $0x64] ss:$12 sps:$4 sm:$0xff]   ;;  %s8031_s8 = scalar_lea.vmem [#allocation9], %s6809_s15 }
 0x215   : > { %1417 = vmatpush1.bf16.msra.mxu0 %v5683_v60  ;;  %v5688_v19 = vld [vmem:[%s6818_s26 + $0x98] ss:$12 sps:$4 sm:$0xff]   ;;  %v5689_v20 = vld [vmem:[%s6818_s26 + $0x7c] ss:$12 sps:$4 sm:$0xff]   ;;  %v5695_v24 = vld [vmem:[%s6818_s26 + $0x60] ss:$12 sps:$4 sm:$0xff]   ;;  %1448 = vmatprep.mubr.bf16.mxu0 %v6415_v36 }
 0x216   : > { %1147 = vadd.xlane.f32.xlu0 %v1138_v57  ;;  %1418 = vmatprep.subr.bf16.mxu0 %v5685_v17  ;;  %v5691_v21 = vld [vmem:[%s6818_s26 + $0x78] ss:$12 sps:$4 sm:$0xff]   ;;  %v5696_v25 = vld [vmem:[%s6818_s26 + $0x68] ss:$12 sps:$4 sm:$0xff]   ;;  %v5700_v28 = vld [vmem:[%s6818_s26 + $0x50] ss:$12 sps:$4 sm:$0xff]  }
 0x217   : > { %1151 = vadd.xlane.f32.xlu1 %v1140_v58  ;;  %v6937_v16 = vld [vmem:[#allocation2 + $0x20] sm:$0xff]  ;;  %5225 = vmatpush3.bf16.msra.mxu1 %v5688_v19  ;;  %v5697_v26 = vld [vmem:[%s6818_s26 + $0x4c] ss:$12 sps:$4 sm:$0xff]   ;;  %v5699_v27 = vld [vmem:[%s6818_s26 + $0x48] ss:$12 sps:$4 sm:$0xff]   ;;  %vm1549_vm2 = vcmask 261120  }
 0x218   : > { %5226 = vmatprep.subr.bf16.mxu1 %v6414_v61  ;;  %v5701_v29 = vld [vmem:[%s6818_s26 + $0x34] ss:$12 sps:$4 sm:$0xff]   ;;  %v5703_v30 = vld [vmem:[%s6818_s26 + $0x30] ss:$12 sps:$4 sm:$0xff]   ;;  %v5704_v31 = vld [vmem:[%s6818_s26 + $0x38] ss:$12 sps:$4 sm:$0xff]   ;;  %5238 = vmatprep.mubr.msk.bf16.mxu1 %vm6416_vm1, %v6414_v61  ;;  %s8030_s13 = scalar_lea.vmem %s8029_s18, %s6845_s16 }
 0x219   : > { %1419 = vmatpush1.bf16.msra.mxu0 %v5687_v18  ;;  %v5705_v32 = vld [vmem:[%s6818_s26 + $0x1c] ss:$12 sps:$4 sm:$0xff]   ;;  %v5707_v33 = vld [vmem:[%s6818_s26 + $0x18] ss:$12 sps:$4 sm:$0xff]   ;;  %v5708_v34 = vld [vmem:[%s6818_s26 + $0x20] ss:$12 sps:$4 sm:$0xff]  }
 0x21a   : > { %1420 = vmatprep.subr.bf16.mxu0 %v5689_v20  ;;  %v5709_v35 = vld [vmem:[%s6818_s26 + $0x4] ss:$12 sps:$4 sm:$0xff]   ;;  %v5711_v37 = vld [vmem:[%s6818_s26] ss:$12 sps:$4 sm:$0xff]   ;;  %v5712_v38 = vld [vmem:[%s6818_s26 + $0x8] ss:$12 sps:$4 sm:$0xff]  }
 0x21b   : > { %5227 = vmatpush3.bf16.msra.mxu1 %v5692_v22  ;;  %v4884_v62 = vld [vmem:[%s8030_s13] ss:$0 sm:$0xff]  ;;  %vm1657_vm3 = vcmask 1043456   ;;  %s6417_s7 = smov 96   ;;  %vm1613_vm5 = vcmask 195584   ;;  %s6418_s26 = smov 64  }
 0x21c   : > { %5228 = vmatprep.subr.bf16.mxu1 %v6414_v61  ;;  %s8033_s25 = scalar_lea.vmem [#allocation15], %s6809_s15  ;;  %s8036_s16 = sld [smem:[#allocation33_spill]] }
 0x21d   : > { %1421 = vmatpush1.bf16.msra.mxu0 %v5691_v21 }
 0x21e   : > { %1422 = vmatprep.subr.bf16.mxu0 %v5693_v23 }
 0x21f   : > { %5229 = vmatpush3.bf16.msra.mxu1 %v5696_v25 }
 0x220   : > { %5230 = vmatprep.subr.bf16.mxu1 %v6414_v61 }
 0x221   : > { %1423 = vmatpush1.bf16.msra.mxu0 %v5695_v24 }
 0x222   : > { %1424 = vmatprep.subr.bf16.mxu0 %v5697_v26  ;;  %p5034_p12 = scmp.ne.s32.totalorder %s8036_s16, 1 }
 0x223   : > { %5231 = vmatpush3.bf16.msra.mxu1 %v5700_v28  ;;  %s8037_s5 = sld [smem:[#allocation60_spill]] (!%p5034_p12) }
 0x224   : > { %5232 = vmatprep.subr.bf16.mxu1 %v6414_v61  ;;  %s8038_s30 = sld [smem:[#allocation61_spill]] (!%p5034_p12) }
 0x225   : > { %1425 = vmatpush1.bf16.msra.mxu0 %v5699_v27 }
 0x226   : > { %1426 = vmatprep.subr.bf16.mxu0 %v5701_v29 }
 0x227   : > { %5233 = vmatpush3.bf16.msra.mxu1 %v5704_v31 }
 0x228   : > { %5234 = vmatprep.subr.bf16.mxu1 %v6414_v61 }
 0x229   : > { %1427 = vmatpush1.bf16.msra.mxu0 %v5703_v30 }
 0x22a   : > { %1428 = vmatprep.subr.bf16.mxu0 %v5705_v32 }
 0x22b   : > { %5235 = vmatpush3.bf16.msra.mxu1 %v5708_v34 }
 0x22c   : > { %5236 = vmatprep.subr.bf16.mxu1 %v6414_v61 }
 0x22d   : > { %1429 = vmatpush1.bf16.msra.mxu0 %v5707_v33  ;;  %v1271_v33 = vld [vmem:[%s6860_s20] sm:$0x7]  ;;  %s6419_s20 = smov 32  }
 0x22e   : > { %1430 = vmatprep.subr.bf16.mxu0 %v5709_v35 }
 0x22f   : > { %5237 = vmatpush3.bf16.msra.mxu1 %v5712_v38 }
 0x231   : > { %1431 = vmatpush1.bf16.msra.mxu0 %v5711_v37 }
 0x29b   : > { %v1146_v63 = vpop.xlane.xlu0 %1145 }
 0x29c   : > { %v1150_v0 = vpop.xlane.xlu1 %1149  ;;  %v1158_v1 = vmul.f32 0.0078125, %v1146_v63 }
 0x29d   : > { %v1160_v2 = vmul.f32 0.0078125, %v1150_v0 }
 0x29e   : > { %v6918_v3 = vsub.f32 %v1137_v55, %v1158_v1 }
 0x29f   : > { %v6920_v4 = vsub.f32 %v1139_v56, %v1160_v2  ;;  %v1148_v5 = vpop.xlane.xlu0 %1147 }
 0x2a0   : > { %v1152_v6 = vpop.xlane.xlu1 %1151  ;;  %v1159_v7 = vmul.f32 0.0078125, %v1148_v5  ;;  %v1170_v8 = vmul.f32 %v6918_v3, %v6918_v3  ;;  %v4885_v5 = vld [vmem:[%s8031_s8] ss:$0 sm:$0xff] }
 0x2a1   : > { %v1161_v9 = vmul.f32 0.0078125, %v1152_v6  ;;  %v1172_v10 = vmul.f32 %v6920_v4, %v6920_v4 }
 0x2a2   : > { %1176 = vadd.xlane.f32.xlu0 %v1170_v8  ;;  %v6926_v11 = vsub.f32 %v1138_v57, %v1159_v7 }
 0x2a3   : > { %v6928_v12 = vsub.f32 %v1140_v58, %v1161_v9 }
 0x2a4   : > { %v1171_v13 = vmul.f32 %v6926_v11, %v6926_v11 }
 0x2a5   : > { %v1173_v14 = vmul.f32 %v6928_v12, %v6928_v12 }
 0x2a6   : > { %1180 = vadd.xlane.f32.xlu0 %v1172_v10  ;;  %1178 = vadd.xlane.f32.xlu1 %v1171_v13 }
 0x2aa   : > { %1182 = vadd.xlane.f32.xlu1 %v1173_v14  ;;  %1153 = vadd.xlane.f32.xlu0 %v6934_v15 }
 0x2ae   : > { %1155 = vadd.xlane.f32.xlu1 %v6937_v16 }
 0x32b   : > { %v1177_v39 = vpop.xlane.xlu0 %1176 }
 0x32c   : > { %v1188_v40 = vmul.f32 0.0078125, %v1177_v39 }
 0x32e   : > { %v1194_v41 = vadd.f32 1e-06, %v1188_v40 }
 0x32f   : > { %v1179_v42 = vpop.xlane.xlu1 %1178  ;;  %v1181_v43 = vpop.xlane.xlu0 %1180 }
 0x330   : > { %5801 = vrsqrt.f32 %v1194_v41  ;;  %v1189_v44 = vmul.f32 0.0078125, %v1179_v42  ;;  %v1190_v45 = vmul.f32 0.0078125, %v1181_v43 }
 0x332   : > { %v1195_v46 = vadd.f32 1e-06, %v1189_v44  ;;  %v1196_v47 = vadd.f32 1e-06, %v1190_v45 }
 0x333   : > { %v1183_v48 = vpop.xlane.xlu1 %1182  ;;  %v1154_v49 = vpop.xlane.xlu0 %1153 }
 0x334   : > { %5803 = vrsqrt.f32 %v1195_v46  ;;  %v1191_v50 = vmul.f32 0.0078125, %v1183_v48  ;;  %v1162_v51 = vmul.f32 0.0078125, %v1154_v49 }
 0x335   : > { %5805 = vrsqrt.f32 %v1196_v47 }
 0x336   : > { %v1197_v52 = vadd.f32 1e-06, %v1191_v50  ;;  %v1168_v53 = vsub.f32 %v6934_v15, %v1162_v51 }
 0x337   : > { %v1156_v54 = vpop.xlane.xlu1 %1155 }
 0x338   : > { %5807 = vrsqrt.f32 %v1197_v52  ;;  %v1163_v55 = vmul.f32 0.0078125, %v1156_v54  ;;  %v1174_v56 = vmul.f32 %v1168_v53, %v1168_v53 }
 0x33a   : > { %v1169_v57 = vsub.f32 %v6937_v16, %v1163_v55  ;;  %1184 = vadd.xlane.f32.xlu0 %v1174_v56 }
 0x33c   : > { %v1175_v58 = vmul.f32 %v1169_v57, %v1169_v57 }
 0x33d   : > { %v5802_v59 = vpop.eup %5801 }
 0x33e   : > { %1186 = vadd.xlane.f32.xlu1 %v1175_v58  ;;  %v1206_v60 = vmul.f32 %v5802_v59, %v6918_v3 }
 0x340   : > { %v1218_v1 = vmul.f32 %v4884_v62, %v1206_v60 }
 0x341   : > { %v5804_v63 = vpop.eup %5803 }
 0x342   : > { %v1207_v0 = vmul.f32 %v5804_v63, %v6926_v11  ;;  %v5806_v2 = vpop.eup %5805  ;;  %v1230_v8 = vadd.f32 %v4885_v5, %v1218_v1 }
 0x343   : > { %v1208_v10 = vmul.f32 %v5806_v2, %v6920_v4 }
 0x344   : > { %v1219_v6 = vmul.f32 %v4884_v62, %v1207_v0 }
 0x345   : > { %v5808_v7 = vpop.eup %5807  ;;  %v1220_v15 = vmul.f32 %v4884_v62, %v1208_v10 }
 0x346   : > { %v1231_v9 = vadd.f32 %v4885_v5, %v1219_v6  ;;  %v1209_v3 = vmul.f32 %v5808_v7, %v6928_v12 }
 0x347   : > { %v1232_v16 = vadd.f32 %v4885_v5, %v1220_v15 }
 0x348   : > { %v1268_v13 = vpack.c.bf16 %v1231_v9, %v1230_v8  ;;  %v1221_v14 = vmul.f32 %v4884_v62, %v1209_v3 }
 0x34a   : > { %1449 = vmatmul.mubr.bf16.vlgmr.msra.gmra.mxu0 %v1268_v13  ;;  %5239 = vmatmul.mubr.bf16.vlgmr.msra.gmra.mxu1 %v1268_v13  ;;  %v1233_v11 = vadd.f32 %v4885_v5, %v1221_v14 }
 0x34b   : > { %1458 = vmatprep.mubr.bf16.mxu0 %v6415_v36  ;;  %5242 = vmatprep.mubr.msk.bf16.mxu1 %vm6416_vm1, %v6414_v61 }
 0x34c   : > { %v1269_v17 = vpack.c.bf16 %v1233_v11, %v1232_v16 }
 0x352   : > { %1459 = vmatmul.mubr.bf16.gmra.mxu0 %v1269_v17  ;;  %5243 = vmatmul.mubr.bf16.gmra.mxu1 %v1269_v17 }
 0x353   : > { %1468 = vmatprep.mubr.bf16.mxu0 %v6415_v36  ;;  %5246 = vmatprep.mubr.msk.bf16.mxu1 %vm6416_vm1, %v6414_v61  ;;  %v1273_v61 = vlaneseq }
 0x355   : > { %v6990_v31 = vshrl.u32 %v1273_v61, 7 }
 0x357   : > { %v1275_v32 = vsub.s32 0, %v6990_v31  ;;  %v1279_v35 = vsub.s32 1, %v6990_v31  ;;  %v1283_v39 = vsub.s32 2, %v6990_v31 }
 0x359   : > { %v6996_v34 = vrot.slane %v1271_v33, %v1275_v32  ;;  %v7003_v43 = vrot.slane %v1271_v33, %v1279_v35  ;;  %v7008_v47 = vrot.slane %v1271_v33, %v1283_v39 }
 0x3c3   : > { %v1185_v4 = vpop.xlane.xlu0 %1184 }
 0x3c4   : > { %v1192_v12 = vmul.f32 0.0078125, %v1185_v4 }
 0x3c6   : > { %v1198_v18 = vadd.f32 1e-06, %v1192_v12 }
 0x3c7   : > { %v1187_v19 = vpop.xlane.xlu1 %1186 }
 0x3c8   : > { %v1193_v20 = vmul.f32 0.0078125, %v1187_v19  ;;  %5809 = vrsqrt.f32 %v1198_v18 }
 0x3ca   : > { %v1199_v21 = vadd.f32 1e-06, %v1193_v20 }
 0x3cc   : > { %5811 = vrsqrt.f32 %v1199_v21 }
 0x3d5   : > { %v5810_v22 = vpop.eup %5809 }
 0x3d6   : > { %v1210_v23 = vmul.f32 %v5810_v22, %v1168_v53 }
 0x3d8   : > { %v1222_v24 = vmul.f32 %v4884_v62, %v1210_v23 }
 0x3d9   : > { %v5812_v25 = vpop.eup %5811 }
 0x3da   : > { %v1211_v26 = vmul.f32 %v5812_v25, %v1169_v57  ;;  %v1234_v28 = vadd.f32 %v4885_v5, %v1222_v24 }
 0x3dc   : > { %v1223_v27 = vmul.f32 %v4884_v62, %v1211_v26 }
 0x3de   : > { %v1235_v29 = vadd.f32 %v4885_v5, %v1223_v27 }
 0x3e0   : > { %v1270_v30 = vpack.c.bf16 %v1235_v29, %v1234_v28 }
 0x3e2   : > { %1469 = vmatmul.mubr.bf16.gmra.mxu0 %v1270_v30  ;;  %5247 = vmatmul.mubr.bf16.gmra.mxu1 %v1270_v30 }
 0x40a   : > { %v1450_v37 = vpop.f32.mrf.mxu0  ;;  %v1513_v38 = vpop.f32.mrf.mxu1 }
 0x40b   : > { %v1451_v42 = vadd.f32 %v1450_v37, %v6996_v34  ;;  %v1514_v2 = vadd.f32 %v1513_v38, %v7008_v47 }
 0x40c   : > { %v1452_v40 = vpop.f32.mrf.mxu0  ;;  %v5240_v41 = vpop.f32.mrf.mxu1 }
 0x40d   : > { %v1536_v50 = vmul.f32 0.17677669, %v1451_v42  ;;  %v1453_v51 = vadd.f32 %v1452_v40, %v7003_v43  ;;  %v7078_v41 = vand.u32 127, %v1273_v61 }
 0x40e   : > { %v1454_v44 = vpop.f32.mrf.mxu0  ;;  %v1516_v45 = vpop.f32.mrf.mxu1 }
 0x40f   : > { %v1455_v46 = vadd.f32 %v1454_v44, %v6996_v34  ;;  %v1517_v60 = vadd.f32 %v1516_v45, %v7008_v47  ;;  %vm1544_vm4 = vcmp.lt.s32.totalorder %v7078_v41, 17 }
 0x410   : > { %v1456_v48 = vpop.f32.mrf.mxu0  ;;  %v5241_v49 = vpop.f32.mrf.mxu1 }
 0x411   : > { %v1537_v52 = vmul.f32 0.17677669, %v1455_v46  ;;  %v1457_v53 = vadd.f32 %v1456_v48, %v7003_v43  ;;  %v7031_v8 = vpack.c.bf16 %v1517_v60, %v1514_v2 }
 0x412   : > { %v1460_v54 = vpop.f32.mrf.mxu0  ;;  %v1521_v55 = vpop.f32.mrf.mxu1 }
 0x413   : > { %v7012_v56 = vpack.c.bf16 %v1537_v52, %v1536_v50  ;;  %v7014_v57 = vpack.c.bf16 %v1457_v53, %v1453_v51  ;;  %v1461_v58 = vadd.f32 %v1460_v54, %v6996_v34  ;;  %v1522_v59 = vadd.f32 %v1521_v55, %v7008_v47 }
 0x414   : > { %v1462_v62 = vpop.f32.mrf.mxu0  ;;  %v5244_v63 = vpop.f32.mrf.mxu1 }
 0x415   : > { %v7019_v0 = vpack.c.bf16 %v1522_v59, %v1522_v59  ;;  %v1463_v1 = vadd.f32 %v1462_v62, %v7003_v43  ;;  %1723 = vrot.lane.b32.xlu1 %v7014_v57, %s6417_s7  ;;  %5254 = vmatprep.mubr.msk.bf16.mxu0 %vm1549_vm2, %v7012_v56  ;;  %v1538_v6 = vmul.f32 0.17677669, %v1461_v58  ;;  %v1557_v14 = vsel %vm1549_vm2, %v7014_v57, 0 }
 0x416   : > { %v1524_v5 = vpop.f32.mrf.mxu1  ;;  %v1464_v12 = vpop.f32.mrf.mxu0 }
 0x417   : > { %v7027_v7 = vpack.c.bf16 %v1463_v1, %v1463_v1  ;;  %5468 = vmatprep.subr.msk.bf16.mxu1 %vm1657_vm3, %v7019_v0  ;;  %v1659_v10 = vsel %vm1657_vm3, %v7019_v0, 0  ;;  %v7042_v13 = vpack.c.bf16 %v1538_v6, %v1538_v6  ;;  %v1465_v20 = vadd.f32 %v1464_v12, %v6996_v34 }
 0x418   : > { %v5245_v9 = vpop.f32.mrf.mxu1  ;;  %5259 = vmatpush3.bf16.msra.mxu1 %v1659_v10  ;;  %v7061_v19 = vpop.f32.mrf.mxu0  ;;  %v1525_v23 = vadd.f32 %v1524_v5, %v7008_v47 }
 0x419   : > { %1717 = vrot.lane.b32.xlu1 %v7012_v56, %s6417_s7  ;;  %v1560_v3 = vsel %vm1549_vm2, %v7027_v7, 0  ;;  %5466 = vmatprep.subr.msk.bf16.mxu0 %vm1549_vm2, %v7027_v7  ;;  %v1539_v27 = vmul.f32 0.17677669, %v1465_v20 }
 0x41a   : > { %5260 = vmatprep.subr.bf16.mxu1 %v7031_v8  ;;  %1725 = vrot.lane.b32.xlu0 %v7027_v7, %s6417_s7 }
 0x41b   : > { %5251 = vmatpush3.bf16.xpose.msra.mxu0 %v1560_v3 }
 0x41c   : > { %5467 = vmatprep.subr.msk.bf16.mxu0 %vm1549_vm2, %v7014_v57  ;;  %5261 = vmatpush3.bf16.msra.mxu1 %v7031_v8 }
 0x41d   : > { %1719 = vrot.lane.b32.xlu1 %v7042_v13, %s6417_s7 }
 0x423   : > { %5253 = vmatpush3.bf16.xpose.msra.mxu0 %v1557_v14 }
 0x42a   : > { %5255 = vmatmul.mubr.msk.bf16.vlgmr.msra.gmra.mxu0 %vm1549_vm2, %v7042_v13 }
 0x487   : > { %v1724_v15 = vpop.permute.xlu1 %1723 }
 0x488   : > { %v1734_v4 = vsel %vm1549_vm2, %v1724_v15, 0 }
 0x48b   : > { %v1718_v11 = vpop.permute.xlu1 %1717 }
 0x48c   : > { %5270 = vmatprep.mubr.msk.bf16.mxu0 %vm1549_vm2, %v1718_v11  ;;  %v1726_v16 = vpop.permute.xlu0 %1725 }
 0x48d   : > { %v1737_v17 = vsel %vm1549_vm2, %v1726_v16, 0  ;;  %5469 = vmatprep.subr.msk.bf16.mxu0 %vm1549_vm2, %v1726_v16 }
 0x48e   : > { %5267 = vmatpush3.bf16.xpose.msra.mxu0 %v1737_v17 }
 0x48f   : > { %5470 = vmatprep.subr.msk.bf16.mxu0 %vm1549_vm2, %v1724_v15  ;;  %v1720_v18 = vpop.permute.xlu1 %1719 }
 0x496   : > { %5269 = vmatpush3.bf16.xpose.msra.mxu0 %v1734_v4 }
 0x49d   : > { %5271 = vmatmul.mubr.msk.bf16.vlgmr.msra.gmra.mxu0 %vm1549_vm2, %v1720_v18 }
 0x4a2   : > { %v1470_v21 = vpop.f32.mrf.mxu0  ;;  %v1529_v22 = vpop.f32.mrf.mxu1 }
 0x4a3   : > { %v1471_v24 = vadd.f32 %v1470_v21, %v6996_v34  ;;  %v1530_v25 = vadd.f32 %v1529_v22, %v7008_v47 }
 0x4a4   : > { %v5248_v26 = vpop.f32.mrf.mxu1  ;;  %v7073_v38 = vpop.f32.mrf.mxu0 }
 0x4a5   : > { %v1540_v28 = vmul.f32 0.17677669, %v1471_v24  ;;  %v7067_v29 = vpack.c.bf16 %v1530_v25, %v1525_v23 }
 0x4a6   : > { %v7069_v30 = vpop.f32.mrf.mxu1  ;;  %v7075_v40 = vpop.f32.mrf.mxu0 }
 0x4a7   : > { %v7071_v33 = vpack.c.bf16 %v1540_v28, %v1539_v27 }
 0x4a8   : > { %v5249_v37 = vpop.f32.mrf.mxu1  ;;  %v7080_v42 = vpop.f32.mrf.mxu0 }
 0x4ea   : > { %v5256_v44 = vpop.f32.mrf.mxu0 }
 0x4eb   : > { %v1612_v50 = vsel %vm1544_vm4, %v5256_v44, -1e+30 }
 0x4ec   : > { %v1596_v45 = vpop.f32.mrf.mxu0  ;;  %v1620_v52 = vsel %vm1613_vm5, %v1612_v50, -inf }
 0x4ed   : > { %v1610_v46 = vsel %vm1544_vm4, %v1596_v45, -1e+30 }
 0x4ee   : > { %v5257_v48 = vpop.f32.mrf.mxu0  ;;  %v1614_v49 = vsel %vm1613_vm5, %v1610_v46, -inf }
 0x4ef   : > { %1615 = vmax.xlane.f32.xlu0 %v1614_v49 }
 0x4f0   : > { %v1599_v51 = vpop.f32.mrf.mxu0 }
 0x4f1   : > { %v1611_v61 = vsel %vm1544_vm4, %v1599_v51, -1e+30 }
 0x4f2   : > { %v1617_v53 = vsel %vm1613_vm5, %v1611_v61, -inf }
 0x4f3   : > { %1621 = vmax.xlane.f32.xlu0 %v1620_v52  ;;  %1618 = vmax.xlane.f32.xlu1 %v1617_v53 }
 0x55d   : > { %v5272_v54 = vpop.f32.mrf.mxu0 }
 0x55e   : > { %v1789_v55 = vsel %vm1544_vm4, %v5272_v54, -1e+30 }
 0x55f   : > { %v1773_v58 = vpop.f32.mrf.mxu0  ;;  %v1796_v59 = vsel %vm1613_vm5, %v1789_v55, -inf }
 0x560   : > { %v1787_v60 = vsel %vm1544_vm4, %v1773_v58, -1e+30  ;;  %1797 = vmax.xlane.f32.xlu1 %v1796_v59 }
 0x561   : > { %v5273_v62 = vpop.f32.mrf.mxu0  ;;  %v1790_v63 = vsel %vm1613_vm5, %v1787_v60, -inf }
 0x562   : > { %1791 = vmax.xlane.f32.xlu0 %v1790_v63 }
 0x563   : > { %v1776_v1 = vpop.f32.mrf.mxu0 }
 0x564   : > { %v1788_v2 = vsel %vm1544_vm4, %v1776_v1, -1e+30 }
 0x565   : > { %v1793_v5 = vsel %vm1613_vm5, %v1788_v2, -inf }
 0x566   : > { %1794 = vmax.xlane.f32.xlu0 %v1793_v5 }
 0x578   : > { %v1616_v6 = vpop.xlane.xlu0 %1615 }
 0x579   : > { %v1623_v9 = vsub.f32 %v1610_v46, %v1616_v6 }
 0x57b   : > { %v1626_v17 = vmul.f32 1.442695, %v1623_v9 }
 0x57c   : > { %v1619_v10 = vpop.xlane.xlu1 %1618  ;;  %v1622_v3 = vpop.xlane.xlu0 %1621 }
 0x57d   : > { %v1624_v14 = vsub.f32 %v1611_v61, %v1619_v10  ;;  %v1625_v15 = vsub.f32 %v1612_v50, %v1622_v3  ;;  %v7142_v3 = vld [vmem:[%s6820_s21 + $0x18] sm:$0xff]  }
 0x57f   : > { %v1628_v11 = vmul.f32 1.442695, %v1624_v14  ;;  %v1630_v16 = vmul.f32 1.442695, %v1625_v15 }
 0x581   : > { %5813 = vpow2.f32 %v1628_v11 }
 0x582   : > { %5815 = vpow2.f32 %v1630_v16 }
 0x583   : > { %5817 = vpow2.f32 %v1626_v17 }
 0x58e   : > { %v5814_v4 = vpop.eup %5813 }
 0x58f   : > { %v5816_v12 = vpop.eup %5815  ;;  %v1635_v18 = vsel %vm1613_vm5, %v5814_v4, 0.0 }
 0x590   : > { %1636 = vadd.xlane.f32.xlu1 %v1635_v18  ;;  %v1638_v20 = vsel %vm1613_vm5, %v5816_v12, 0.0  ;;  %v5818_v21 = vpop.eup %5817 }
 0x591   : > { %1639 = vadd.xlane.f32.xlu0 %v1638_v20  ;;  %v1632_v22 = vsel %vm1613_vm5, %v5818_v21, 0.0  ;;  %v7146_v20 = vld [vmem:[%s6820_s21 + $0x10] sm:$0xff]  }
 0x595   : > { %1633 = vadd.xlane.f32.xlu0 %v1632_v22 }
 0x5e9   : > { %v1798_v23 = vpop.xlane.xlu1 %1797 }
 0x5ea   : > { %v1801_v24 = vsub.f32 %v1789_v55, %v1798_v23 }
 0x5eb   : > { %v1792_v25 = vpop.xlane.xlu0 %1791 }
 0x5ec   : > { %v1806_v26 = vmul.f32 1.442695, %v1801_v24  ;;  %v1799_v27 = vsub.f32 %v1787_v60, %v1792_v25 }
 0x5ee   : > { %5819 = vpow2.f32 %v1806_v26  ;;  %v1802_v28 = vmul.f32 1.442695, %v1799_v27 }
 0x5ef   : > { %v1795_v37 = vpop.xlane.xlu0 %1794 }
 0x5f0   : > { %5821 = vpow2.f32 %v1802_v28  ;;  %v1800_v44 = vsub.f32 %v1788_v2, %v1795_v37 }
 0x5f2   : > { %v1804_v45 = vmul.f32 1.442695, %v1800_v44 }
 0x5f4   : > { %5823 = vpow2.f32 %v1804_v45 }
 0x5fb   : > { %v5820_v46 = vpop.eup %5819 }
 0x5fc   : > { %v1814_v48 = vsel %vm1613_vm5, %v5820_v46, 0.0 }
 0x5fd   : > { %v5822_v49 = vpop.eup %5821  ;;  %1815 = vadd.xlane.f32.xlu1 %v1814_v48 }
 0x5fe   : > { %v1808_v50 = vsel %vm1613_vm5, %v5822_v49, 0.0 }
 0x601   : > { %v5824_v51 = vpop.eup %5823  ;;  %1809 = vadd.xlane.f32.xlu1 %v1808_v50 }
 0x602   : > { %v1811_v61 = vsel %vm1613_vm5, %v5824_v51, 0.0 }
 0x603   : > { %1812 = vadd.xlane.f32.xlu0 %v1811_v61 }
 0x612   : > { %1827 = vrot.lane.b32.xlu1 %v7031_v8, %s6417_s7 }
 0x616   : > { %2033 = vrot.lane.b32.xlu1 %v7027_v7, %s6418_s26 }
 0x619   : > { %v1637_v52 = vpop.xlane.xlu1 %1636  ;;  %1829 = vrot.lane.b32.xlu0 %v7019_v0, %s6417_s7 }
 0x61a   : > { %v1640_v53 = vpop.xlane.xlu0 %1639  ;;  %2031 = vrot.lane.b32.xlu1 %v7014_v57, %s6418_s26 }
 0x61b   : > { %5825 = vrcp.f32 %v1640_v53 }
 0x61c   : > { %5827 = vrcp.f32 %v1637_v52 }
 0x61d   : > { %2027 = vrot.lane.b32.xlu0 %v7012_v56, %s6418_s26 }
 0x61e   : > { %v1634_v54 = vpop.xlane.xlu0 %1633  ;;  %2029 = vrot.lane.b32.xlu1 %v7042_v13, %s6418_s26 }
 0x61f   : > { %5829 = vrcp.f32 %v1634_v54 }
 0x621   : > { %2276 = vrot.lane.b32.xlu0 %v7027_v7, %s6419_s20 }
 0x622   : > { %2274 = vrot.lane.b32.xlu1 %v7014_v57, %s6419_s20  ;;  %v7130_v57 = vld [vmem:[%s6820_s21 + $0x8] sm:$0xff]  }
 0x623   : > { %5290 = vmatprep.subr.bf16.mxu0 %v7130_v57 }
 0x624   : > { %5291 = vmatpush3.bf16.msra.mxu0 %v7130_v57 }
 0x625   : > { %2270 = vrot.lane.b32.xlu0 %v7012_v56, %s6419_s20  ;;  %v7135_v56 = vld [vmem:[%s6820_s21] sm:$0xff]  }
 0x626   : > { %2272 = vrot.lane.b32.xlu1 %v7042_v13, %s6419_s20  ;;  %5292 = vmatprep.subr.bf16.mxu0 %v7135_v56 }
 0x628   : > { %v5826_v55 = vpop.eup %5825  ;;  %5293 = vmatpush3.bf16.msra.mxu0 %v7135_v56 }
 0x629   : > { %v5828_v58 = vpop.eup %5827  ;;  %v1646_v60 = vmul.f32 %v5826_v55, %v5816_v12 }
 0x62a   : > { %v1644_v63 = vmul.f32 %v5828_v58, %v5814_v4 }
 0x62b   : > { %v1648_v2 = vpack.c.bf16 %v1646_v60, %v1646_v60 }
 0x62c   : > { %v5830_v59 = vpop.eup %5829 }
 0x62d   : > { %v1642_v62 = vmul.f32 %v5830_v59, %v5818_v21  ;;  %v1477_v59 = vadd.f32 %v7080_v42, %v7003_v43 }
 0x62f   : > { %v1647_v1 = vpack.c.bf16 %v1644_v63, %v1642_v62  ;;  %v7169_v60 = vpack.c.bf16 %v1477_v59, %v1477_v59  ;;  %v1473_v63 = vadd.f32 %v7073_v38, %v7003_v43  ;;  %v1475_v38 = vadd.f32 %v7075_v40, %v6996_v34 }
 0x631   : > { %5262 = vmatprep.mubr.msk.bf16.mxu1 %vm1613_vm5, %v1647_v1  ;;  %v1467_v1 = vadd.f32 %v7061_v19, %v7003_v43  ;;  %v2527_v42 = vsel %vm1549_vm2, %v7169_v60, 0  ;;  %v1541_v19 = vmul.f32 0.17677669, %v1475_v38 }
 0x632   : > { %5263 = vmatmul.mubr.msk.bf16.vlgmr.msra.gmra.mxu1 %vm1613_vm5, %v1648_v2 }
 0x686   : > { %v1816_v7 = vpop.xlane.xlu1 %1815 }
 0x687   : > { %5831 = vrcp.f32 %v1816_v7  ;;  %v7178_v7 = vpack.c.bf16 %v1473_v63, %v1467_v1 }
 0x689   : > { %v2524_v43 = vsel %vm1549_vm2, %v7178_v7, 0 }
 0x68a   : > { %v1810_v13 = vpop.xlane.xlu1 %1809 }
 0x68b   : > { %5833 = vrcp.f32 %v1810_v13  ;;  %v7191_v13 = vpack.c.bf16 %v1541_v19, %v1541_v19 }
 0x68c   : > { %v1813_v5 = vpop.xlane.xlu0 %1812 }
 0x68d   : > { %5835 = vrcp.f32 %v1813_v5 }
 0x68e   : > { %v1828_v10 = vpop.permute.xlu1 %1827 }
 0x690   : > { %v1830_v6 = vpop.permute.xlu0 %1829 }
 0x691   : > { %v1839_v9 = vsel %vm1657_vm3, %v1830_v6, 0  ;;  %5471 = vmatprep.subr.msk.bf16.mxu1 %vm1657_vm3, %v1830_v6 }
 0x692   : > { %5275 = vmatpush3.bf16.msra.mxu1 %v1839_v9  ;;  %v2034_v21 = vpop.permute.xlu1 %2033 }
 0x693   : > { %5276 = vmatprep.subr.bf16.mxu1 %v1828_v10 }
 0x694   : > { %v5832_v14 = vpop.eup %5831  ;;  %v2028_v50 = vpop.permute.xlu0 %2027 }
 0x695   : > { %v1822_v16 = vmul.f32 %v5832_v14, %v5820_v46 }
 0x696   : > { %5277 = vmatpush3.bf16.msra.mxu1 %v1828_v10 }
 0x697   : > { %5282 = vmatprep.subr.bf16.mxu1 %v7142_v3  ;;  %v1824_v18 = vpack.c.bf16 %v1822_v16, %v1822_v16 }
 0x698   : > { %v5834_v15 = vpop.eup %5833  ;;  %v2277_v52 = vpop.permute.xlu0 %2276 }
 0x699   : > { %v1818_v17 = vmul.f32 %v5834_v15, %v5822_v49  ;;  %v2045_v49 = vsel %vm1549_vm2, %v2034_v21, 0  ;;  %v2288_v54 = vsel %vm1549_vm2, %v2277_v52, 0 }
 0x69a   : > { %v5836_v11 = vpop.eup %5835 }
 0x69b   : > { %v1820_v4 = vmul.f32 %v5836_v11, %v5824_v51  ;;  %v2032_v51 = vpop.permute.xlu1 %2031 }
 0x69c   : > { %v2042_v61 = vsel %vm1549_vm2, %v2032_v51, 0  ;;  %v2271_v55 = vpop.permute.xlu0 %2270 }
 0x69d   : > { %v1823_v12 = vpack.c.bf16 %v1820_v4, %v1818_v17 }
 0x69f   : > { %5278 = vmatprep.mubr.msk.bf16.mxu1 %vm1613_vm5, %v1823_v12  ;;  %v2030_v53 = vpop.permute.xlu1 %2029 }
 0x6a0   : > { %5279 = vmatmul.mubr.msk.bf16.vlgmr.msra.gmra.mxu1 %vm1613_vm5, %v1824_v18 }
 0x6a1   : > { %5283 = vmatpush3.bf16.msra.mxu1 %v7142_v3 }
 0x6a2   : > { %5284 = vmatprep.subr.bf16.mxu1 %v7146_v20 }
 0x6a3   : > { %v2275_v58 = vpop.permute.xlu1 %2274 }
 0x6a4   : > { %v2285_v62 = vsel %vm1549_vm2, %v2275_v58, 0 }
 0x6a5   : > { %5285 = vmatpush3.bf16.msra.mxu1 %v7146_v20 }
 0x6a6   : > { %5472 = vmatprep.subr.msk.bf16.mxu1 %vm1549_vm2, %v2034_v21 }
 0x6a7   : > { %v2273_v2 = vpop.permute.xlu1 %2272 }
 0x6f2   : > { %v5264_v22 = vpop.f32.mrf.mxu1 }
 0x6f3   : > { %v1714_v27 = vpack.c.bf16 %v5264_v22, %v5264_v22 }
 0x6f4   : > { %v1695_v23 = vpop.f32.mrf.mxu1 }
 0x6f6   : > { %v5265_v24 = vpop.f32.mrf.mxu1 }
 0x6f8   : > { %v1698_v25 = vpop.f32.mrf.mxu1 }
 0x6f9   : > { %v1713_v26 = vpack.c.bf16 %v1698_v25, %v1695_v23 }
 0x6fb   : > { %5294 = vmatprep.mubr.msk.bf16.mxu0 %vm1549_vm2, %v1713_v26 }
 0x6fc   : > { %5295 = vmatmul.mubr.msk.bf16.vlgmr.msra.gmra.mxu0 %vm1549_vm2, %v1714_v27 }
 0x760   : > { %v5280_v28 = vpop.f32.mrf.mxu1 }
 0x761   : > { %v1894_v48 = vpack.c.bf16 %v5280_v28, %v5280_v28 }
 0x762   : > { %v1875_v37 = vpop.f32.mrf.mxu1 }
 0x764   : > { %v5281_v44 = vpop.f32.mrf.mxu1 }
 0x766   : > { %v1878_v45 = vpop.f32.mrf.mxu1 }
 0x767   : > { %v1893_v46 = vpack.c.bf16 %v1878_v45, %v1875_v37 }
 0x769   : > { %5286 = vmatprep.mubr.msk.bf16.mxu1 %vm1549_vm2, %v1893_v46 }
 0x76a   : > { %5287 = vmatmul.mubr.msk.bf16.vlgmr.msra.gmra.mxu1 %vm1549_vm2, %v1894_v48 }
 0x76b   : > { %5299 = vmatpush3.bf16.xpose.msra.mxu1 %v2045_v49  ;;  %5302 = vmatprep.mubr.msk.bf16.mxu1 %vm1549_vm2, %v2028_v50 }
 0x76c   : > { %5473 = vmatprep.subr.msk.bf16.mxu1 %vm1549_vm2, %v2032_v51 }
 0x773   : > { %5301 = vmatpush3.bf16.xpose.msra.mxu1 %v2042_v61 }
 0x774   : > { %5475 = vmatprep.subr.msk.bf16.mxu1 %vm1549_vm2, %v2277_v52 }
 0x77a   : > { %5303 = vmatmul.mubr.msk.bf16.vlgmr.msra.gmra.mxu1 %vm1549_vm2, %v2030_v53 }
 0x77b   : > { %5323 = vmatpush3.bf16.xpose.msra.mxu1 %v2288_v54  ;;  %5326 = vmatprep.mubr.msk.bf16.mxu1 %vm1549_vm2, %v2271_v55 }
 0x77c   : > { %5476 = vmatprep.subr.msk.bf16.mxu1 %vm1549_vm2, %v2275_v58 }
 0x783   : > { %5325 = vmatpush3.bf16.xpose.msra.mxu1 %v2285_v62 }
 0x784   : > { %5478 = vmatprep.subr.msk.bf16.mxu1 %vm1549_vm2, %v7169_v60 }
 0x78a   : > { %5327 = vmatmul.mubr.msk.bf16.vlgmr.msra.gmra.mxu1 %vm1549_vm2, %v2273_v2 }
 0x78b   : > { %5347 = vmatpush3.bf16.xpose.msra.mxu1 %v2527_v42  ;;  %5350 = vmatprep.mubr.msk.bf16.mxu1 %vm1549_vm2, %v7071_v33 }
 0x78c   : > { %5479 = vmatprep.subr.msk.bf16.mxu1 %vm1549_vm2, %v7178_v7 }
 0x793   : > { %5349 = vmatpush3.bf16.xpose.msra.mxu1 %v2524_v43 }
 0x79a   : > { %5351 = vmatmul.mubr.msk.bf16.vlgmr.msra.gmra.mxu1 %vm1549_vm2, %v7191_v13 }
 0x7bc   : > { %v7195_v5 = vpop.f32.mrf.mxu0 }
 0x7be   : > { %v7197_v6 = vpop.f32.mrf.mxu0 }
 0x7c0   : > { %v5297_v9 = vpop.f32.mrf.mxu0 }
 0x82a   : > { %v7199_v10 = vpop.f32.mrf.mxu1 }
 0x82c   : > { %v7201_v14 = vpop.f32.mrf.mxu1 }
 0x82e   : > { %v5289_v34 = vpop.f32.mrf.mxu1 }
 0x830   : > { %v7203_v40 = vpop.f32.mrf.mxu1 }
 0x83a   : > { %v5304_v15 = vpop.f32.mrf.mxu1 }
 0x83b   : > { %v2097_v12 = vsel %vm1544_vm4, %v5304_v15, -1e+30 }
 0x83c   : > { %v2081_v11 = vpop.f32.mrf.mxu1  ;;  %v2104_v22 = vsel %vm1613_vm5, %v2097_v12, -inf }
 0x83d   : > { %v2095_v16 = vsel %vm1544_vm4, %v2081_v11, -1e+30 }
 0x83e   : > { %v5305_v17 = vpop.f32.mrf.mxu1  ;;  %v2098_v4 = vsel %vm1613_vm5, %v2095_v16, -inf }
 0x83f   : > { %2099 = vmax.xlane.f32.xlu0 %v2098_v4  ;;  %v7237_v4 = vld [vmem:[%s6820_s21 + $0x28] sm:$0xff]  }
 0x840   : > { %v2084_v18 = vpop.f32.mrf.mxu1 }
 0x841   : > { %v2096_v21 = vsel %vm1544_vm4, %v2084_v18, -1e+30 }
 0x842   : > { %v2101_v23 = vsel %vm1613_vm5, %v2096_v21, -inf }
 0x843   : > { %2105 = vmax.xlane.f32.xlu0 %v2104_v22  ;;  %2102 = vmax.xlane.f32.xlu1 %v2101_v23 }
 0x84a   : > { %v5328_v24 = vpop.f32.mrf.mxu1 }
 0x84b   : > { %v2340_v38 = vsel %vm1544_vm4, %v5328_v24, -1e+30 }
 0x84c   : > { %v2324_v25 = vpop.f32.mrf.mxu1  ;;  %v2347_v19 = vsel %vm1613_vm5, %v2340_v38, -inf }
 0x84d   : > { %v2338_v2 = vsel %vm1544_vm4, %v2324_v25, -1e+30 }
 0x84e   : > { %v5329_v26 = vpop.f32.mrf.mxu1  ;;  %v2341_v43 = vsel %vm1613_vm5, %v2338_v2, -inf }
 0x850   : > { %v2327_v27 = vpop.f32.mrf.mxu1 }
 0x851   : > { %v2339_v1 = vsel %vm1544_vm4, %v2327_v27, -1e+30 }
 0x852   : > { %v2344_v42 = vsel %vm1613_vm5, %v2339_v1, -inf }
 0x85a   : > { %v7214_v28 = vpop.f32.mrf.mxu1 }
 0x85c   : > { %v7216_v37 = vpop.f32.mrf.mxu1 }
 0x85e   : > { %v5353_v44 = vpop.f32.mrf.mxu1 }
 0x8c8   : > { %v2100_v45 = vpop.xlane.xlu0 %2099 }
 0x8c9   : > { %v2107_v46 = vsub.f32 %v2095_v16, %v2100_v45 }
 0x8cb   : > { %v2110_v48 = vmul.f32 1.442695, %v2107_v46 }
 0x8cc   : > { %v2103_v49 = vpop.xlane.xlu1 %2102  ;;  %v2106_v50 = vpop.xlane.xlu0 %2105 }
 0x8cd   : > { %5837 = vpow2.f32 %v2110_v48  ;;  %v2108_v51 = vsub.f32 %v2096_v21, %v2103_v49  ;;  %v2109_v61 = vsub.f32 %v2097_v12, %v2106_v50 }
 0x8cf   : > { %v2112_v52 = vmul.f32 1.442695, %v2108_v51  ;;  %v2114_v53 = vmul.f32 1.442695, %v2109_v61 }
 0x8d1   : > { %5839 = vpow2.f32 %v2112_v52 }
 0x8d2   : > { %5841 = vpow2.f32 %v2114_v53 }
 0x8da   : > { %v5838_v54 = vpop.eup %5837 }
 0x8db   : > { %v2116_v55 = vsel %vm1613_vm5, %v5838_v54, 0.0 }
 0x8dc   : > { %2117 = vadd.xlane.f32.xlu0 %v2116_v55 }
 0x8de   : > { %v5840_v58 = vpop.eup %5839 }
 0x8df   : > { %v5842_v59 = vpop.eup %5841  ;;  %v2119_v62 = vsel %vm1613_vm5, %v5840_v58, 0.0 }
 0x8e0   : > { %2120 = vadd.xlane.f32.xlu0 %v2119_v62  ;;  %v2122_v63 = vsel %vm1613_vm5, %v5842_v59, 0.0  ;;  %v7247_v62 = vld [vmem:[%s6820_s21 + $0x20] sm:$0xff]  }
 0x8e1   : > { %2123 = vadd.xlane.f32.xlu1 %v2122_v63  ;;  %v2566_v63 = vpop.f32.mrf.mxu1 }
 0x8f2   : > { %2133 = vrot.lane.b32.xlu1 %v7031_v8, %s6418_s26 }
 0x8f6   : > { %2135 = vrot.lane.b32.xlu0 %v7019_v0, %s6418_s26 }
 0x915   : > { %2345 = vmax.xlane.f32.xlu0 %v2344_v42  ;;  %v2579_v42 = vsel %vm1544_vm4, %v7214_v28, -1e+30 }
 0x916   : > { %2342 = vmax.xlane.f32.xlu1 %v2341_v43  ;;  %v7266_v43 = vpop.f32.mrf.mxu0 }
 0x919   : > { %2348 = vmax.xlane.f32.xlu0 %v2347_v19 }
 0x965   : > { %v2118_v9 = vpop.xlane.xlu0 %2117 }
 0x966   : > { %5843 = vrcp.f32 %v2118_v9 }
 0x969   : > { %v2121_v34 = vpop.xlane.xlu0 %2120 }
 0x96a   : > { %v2124_v15 = vpop.xlane.xlu1 %2123  ;;  %5845 = vrcp.f32 %v2121_v34 }
 0x96b   : > { %5847 = vrcp.f32 %v2124_v15 }
 0x96d   : > { %v2136_v11 = vpop.permute.xlu0 %2135 }
 0x96e   : > { %v2145_v16 = vsel %vm1657_vm3, %v2136_v11, 0  ;;  %5474 = vmatprep.subr.msk.bf16.mxu0 %vm1657_vm3, %v2136_v11  ;;  %v2134_v17 = vpop.permute.xlu1 %2133 }
 0x96f   : > { %5307 = vmatpush3.bf16.msra.mxu0 %v2145_v16 }
 0x970   : > { %5308 = vmatprep.subr.bf16.mxu0 %v2134_v17 }
 0x973   : > { %5309 = vmatpush3.bf16.msra.mxu0 %v2134_v17  ;;  %v5844_v12 = vpop.eup %5843 }
 0x974   : > { %5314 = vmatprep.subr.bf16.mxu0 %v7237_v4  ;;  %v2126_v22 = vmul.f32 %v5844_v12, %v5838_v54 }
 0x977   : > { %v5846_v18 = vpop.eup %5845 }
 0x978   : > { %v5848_v21 = vpop.eup %5847  ;;  %v2128_v23 = vmul.f32 %v5846_v18, %v5840_v58 }
 0x979   : > { %v2130_v24 = vmul.f32 %v5848_v21, %v5842_v59 }
 0x97a   : > { %v2131_v25 = vpack.c.bf16 %v2128_v23, %v2126_v22  ;;  %v7273_v22 = vld [vmem:[%s6820_s21 + $0x38] sm:$0xff]  }
 0x97b   : > { %v2132_v26 = vpack.c.bf16 %v2130_v24, %v2130_v24 }
 0x97c   : > { %5310 = vmatprep.mubr.msk.bf16.mxu0 %vm1613_vm5, %v2131_v25 }
 0x97d   : > { %5311 = vmatmul.mubr.msk.bf16.vlgmr.msra.gmra.mxu0 %vm1613_vm5, %v2132_v26 }
 0x97e   : > { %5315 = vmatpush3.bf16.msra.mxu0 %v7237_v4 }
 0x97f   : > { %5316 = vmatprep.subr.bf16.mxu0 %v7247_v62 }
 0x982   : > { %5317 = vmatpush3.bf16.msra.mxu0 %v7247_v62 }
 0x99e   : > { %v2346_v27 = vpop.xlane.xlu0 %2345 }
 0x99f   : > { %v2343_v44 = vpop.xlane.xlu1 %2342  ;;  %v2351_v45 = vsub.f32 %v2339_v1, %v2346_v27  ;;  %v2578_v1 = vsel %vm1544_vm4, %v2566_v63, -1e+30 }
 0x9a0   : > { %v2350_v46 = vsub.f32 %v2338_v2, %v2343_v44  ;;  %v2583_v2 = vsel %vm1613_vm5, %v2578_v1, -inf }
 0x9a1   : > { %v2355_v48 = vmul.f32 1.442695, %v2351_v45 }
 0x9a2   : > { %v2349_v49 = vpop.xlane.xlu0 %2348  ;;  %v2353_v51 = vmul.f32 1.442695, %v2350_v46 }
 0x9a3   : > { %5849 = vpow2.f32 %v2355_v48  ;;  %v2352_v50 = vsub.f32 %v2340_v38, %v2349_v49  ;;  %v2586_v38 = vsel %vm1613_vm5, %v2579_v42, -inf  ;;  %v7277_v48 = vld [vmem:[%s6820_s21 + $0x30] sm:$0xff]   ;;  %v1533_v49 = vadd.f32 %v7069_v30, %v7008_v47  ;;  %s8032_s21 = scalar_lea.vmem [#allocation14], %s6809_s15 }
 0x9a5   : > { %v2357_v61 = vmul.f32 1.442695, %v2352_v50  ;;  %v7285_v50 = vpack.c.bf16 %v1533_v49, %v1533_v49 }
 0x9a7   : > { %5851 = vpow2.f32 %v2357_v61 }
 0x9a8   : > { %5853 = vpow2.f32 %v2353_v51 }
 0x9b0   : > { %v5850_v52 = vpop.eup %5849 }
 0x9b1   : > { %v2362_v53 = vsel %vm1613_vm5, %v5850_v52, 0.0 }
 0x9b2   : > { %2363 = vadd.xlane.f32.xlu0 %v2362_v53 }
 0x9b4   : > { %v5852_v54 = vpop.eup %5851 }
 0x9b5   : > { %v2365_v55 = vsel %vm1613_vm5, %v5852_v54, 0.0  ;;  %v5854_v58 = vpop.eup %5853 }
 0x9b6   : > { %2366 = vadd.xlane.f32.xlu1 %v2365_v55  ;;  %v2359_v59 = vsel %vm1613_vm5, %v5854_v58, 0.0 }
 0x9ba   : > { %2360 = vadd.xlane.f32.xlu1 %v2359_v59 }
 0x9c8   : > { %2378 = vrot.lane.b32.xlu0 %v7019_v0, %s6419_s20  ;;  %v2577_v0 = vsel %vm1544_vm4, %v7216_v37, -1e+30 }
 0x9cb   : > { %2376 = vrot.lane.b32.xlu1 %v7031_v8, %s6419_s20  ;;  %v2580_v8 = vsel %vm1613_vm5, %v2577_v0, -inf }
 0x9e7   : > { %2584 = vmax.xlane.f32.xlu0 %v2583_v2 }
 0x9eb   : > { %2587 = vmax.xlane.f32.xlu0 %v2586_v38 }
 0x9ef   : > { %2581 = vmax.xlane.f32.xlu1 %v2580_v8 }
 0xa3b   : > { %v2364_v19 = vpop.xlane.xlu0 %2363 }
 0xa3d   : > { %v5312_v9 = vpop.f32.mrf.mxu0 }
 0xa3e   : > { %v2200_v12 = vpack.c.bf16 %v5312_v9, %v5312_v9 }
 0xa3f   : > { %v2181_v34 = vpop.f32.mrf.mxu0  ;;  %v2367_v15 = vpop.xlane.xlu1 %2366 }
 0xa40   : > { %v2379_v11 = vpop.permute.xlu0 %2378  ;;  %5855 = vrcp.f32 %v2367_v15 }
 0xa41   : > { %5477 = vmatprep.subr.msk.bf16.mxu0 %vm1657_vm3, %v2379_v11  ;;  %v5313_v28 = vpop.f32.mrf.mxu0  ;;  %5857 = vrcp.f32 %v2364_v19  ;;  %v2388_v18 = vsel %vm1657_vm3, %v2379_v11, 0  ;;  %v2014_v19 = vadd.f32 %v7197_v6, %v7201_v14 }
 0xa42   : > { %v2017_v28 = vadd.f32 %v7266_v43, %v7203_v40  ;;  %v2624_v40 = vsel %vm1657_vm3, %v7285_v50, 0 }
 0xa43   : > { %v2184_v16 = vpop.f32.mrf.mxu0  ;;  %v2361_v17 = vpop.xlane.xlu1 %2360 }
 0xa44   : > { %v2199_v37 = vpack.c.bf16 %v2184_v16, %v2181_v34  ;;  %5859 = vrcp.f32 %v2361_v17 }
 0xa46   : > { %5318 = vmatprep.mubr.msk.bf16.mxu0 %vm1549_vm2, %v2199_v37 }
 0xa47   : > { %5319 = vmatmul.mubr.msk.bf16.vlgmr.msra.gmra.mxu0 %vm1549_vm2, %v2200_v12  ;;  %v2377_v21 = vpop.permute.xlu1 %2376 }
 0xa48   : > { %5331 = vmatpush3.bf16.msra.mxu0 %v2388_v18 }
 0xa49   : > { %5332 = vmatprep.subr.bf16.mxu0 %v2377_v21 }
 0xa4c   : > { %5333 = vmatpush3.bf16.msra.mxu0 %v2377_v21 }
 0xa4d   : > { %5338 = vmatprep.subr.bf16.mxu0 %v7273_v22  ;;  %v5856_v23 = vpop.eup %5855 }
 0xa4e   : > { %v5858_v24 = vpop.eup %5857  ;;  %v2373_v26 = vmul.f32 %v5856_v23, %v5852_v54 }
 0xa4f   : > { %v2371_v44 = vmul.f32 %v5858_v24, %v5850_v52 }
 0xa50   : > { %v2375_v46 = vpack.c.bf16 %v2373_v26, %v2373_v26 }
 0xa51   : > { %v5860_v25 = vpop.eup %5859 }
 0xa52   : > { %v2369_v27 = vmul.f32 %v5860_v25, %v5854_v58 }
 0xa54   : > { %v2374_v45 = vpack.c.bf16 %v2371_v44, %v2369_v27 }
 0xa56   : > { %5334 = vmatprep.mubr.msk.bf16.mxu0 %vm1613_vm5, %v2374_v45 }
 0xa57   : > { %5335 = vmatmul.mubr.msk.bf16.vlgmr.msra.gmra.mxu0 %vm1613_vm5, %v2375_v46 }
 0xa58   : > { %5339 = vmatpush3.bf16.msra.mxu0 %v7273_v22 }
 0xa59   : > { %5340 = vmatprep.subr.bf16.mxu0 %v7277_v48 }
 0xa5c   : > { %5341 = vmatpush3.bf16.msra.mxu0 %v7277_v48 }
 0xa5d   : > { %5480 = vmatprep.subr.msk.bf16.mxu0 %vm1657_vm3, %v7285_v50 }
 0xa70   : > { %v2585_v51 = vpop.xlane.xlu0 %2584 }
 0xa71   : > { %v2590_v61 = vsub.f32 %v2578_v1, %v2585_v51 }
 0xa73   : > { %v2594_v52 = vmul.f32 1.442695, %v2590_v61 }
 0xa74   : > { %v2588_v53 = vpop.xlane.xlu0 %2587 }
 0xa75   : > { %5861 = vpow2.f32 %v2594_v52  ;;  %v2591_v54 = vsub.f32 %v2579_v42, %v2588_v53  ;;  %v2022_v42 = vadd.f32 %v7195_v5, %v7199_v10 }
 0xa77   : > { %v2596_v55 = vmul.f32 1.442695, %v2591_v54 }
 0xa78   : > { %v2582_v47 = vpop.xlane.xlu1 %2581 }
 0xa79   : > { %v2589_v30 = vsub.f32 %v2577_v0, %v2582_v47 }
 0xa7b   : > { %v2592_v58 = vmul.f32 1.442695, %v2589_v30 }
 0xa7d   : > { %5863 = vpow2.f32 %v2592_v58 }
 0xa7e   : > { %5865 = vpow2.f32 %v2596_v55 }
 0xa82   : > { %v5862_v59 = vpop.eup %5861 }
 0xa83   : > { %v2601_v63 = vsel %vm1613_vm5, %v5862_v59, 0.0 }
 0xa84   : > { %2602 = vadd.xlane.f32.xlu0 %v2601_v63 }
 0xa8a   : > { %v5864_v2 = vpop.eup %5863 }
 0xa8b   : > { %v2598_v38 = vsel %vm1613_vm5, %v5864_v2, 0.0  ;;  %v5866_v8 = vpop.eup %5865 }
 0xa8c   : > { %2599 = vadd.xlane.f32.xlu1 %v2598_v38  ;;  %v2604_v1 = vsel %vm1613_vm5, %v5866_v8, 0.0 }
 0xa90   : > { %2605 = vadd.xlane.f32.xlu1 %v2604_v1 }
 0xa9a   : > { %2686 = vrot.lane.b32.xlu0 %v7169_v60, %s6417_s7 }
 0xaa1   : > { %2684 = vrot.lane.b32.xlu1 %v7178_v7, %s6417_s7 }
 0xaa5   : > { %2678 = vrot.lane.b32.xlu1 %v7071_v33, %s6417_s7 }
 0xaa9   : > { %2680 = vrot.lane.b32.xlu1 %v7191_v13, %s6417_s7 }
 0xb07   : > { %v5320_v0 = vpop.f32.mrf.mxu0 }
 0xb08   : > { %v2269_v9 = vadd.f32 %v5320_v0, %v2022_v42 }
 0xb09   : > { %v2253_v34 = vpop.f32.mrf.mxu0 }
 0xb0a   : > { %v2267_v15 = vadd.f32 %v2253_v34, %v2014_v19 }
 0xb0b   : > { %v5321_v11 = vpop.f32.mrf.mxu0 }
 0xb0d   : > { %v2256_v16 = vpop.f32.mrf.mxu0  ;;  %v2603_v37 = vpop.xlane.xlu0 %2602 }
 0xb0e   : > { %v2268_v17 = vadd.f32 %v2256_v16, %v2017_v28  ;;  %5867 = vrcp.f32 %v2603_v37 }
 0xb11   : > { %v2687_v27 = vpop.permute.xlu0 %2686 }
 0xb12   : > { %v2698_v61 = vsel %vm1549_vm2, %v2687_v27, 0 }
 0xb15   : > { %v2600_v12 = vpop.xlane.xlu1 %2599 }
 0xb16   : > { %5869 = vrcp.f32 %v2600_v12 }
 0xb17   : > { %v5336_v18 = vpop.f32.mrf.mxu0 }
 0xb18   : > { %v2443_v14 = vpack.c.bf16 %v5336_v18, %v5336_v18 }
 0xb19   : > { %v2424_v21 = vpop.f32.mrf.mxu0  ;;  %v2606_v5 = vpop.xlane.xlu1 %2605 }
 0xb1a   : > { %5871 = vrcp.f32 %v2606_v5 }
 0xb1b   : > { %v5337_v10 = vpop.f32.mrf.mxu0  ;;  %v5868_v24 = vpop.eup %5867 }
 0xb1c   : > { %v2610_v26 = vmul.f32 %v5868_v24, %v5862_v59 }
 0xb1d   : > { %v2427_v23 = vpop.f32.mrf.mxu0  ;;  %v2685_v44 = vpop.permute.xlu1 %2684 }
 0xb1e   : > { %v2442_v6 = vpack.c.bf16 %v2427_v23, %v2424_v21  ;;  %v2695_v53 = vsel %vm1549_vm2, %v2685_v44, 0 }
 0xb20   : > { %5342 = vmatprep.mubr.msk.bf16.mxu0 %vm1549_vm2, %v2442_v6 }
 0xb21   : > { %5343 = vmatmul.mubr.msk.bf16.vlgmr.msra.gmra.mxu0 %vm1549_vm2, %v2443_v14  ;;  %v2679_v52 = vpop.permute.xlu1 %2678 }
 0xb22   : > { %5355 = vmatpush3.bf16.msra.mxu0 %v2624_v40 }
 0xb23   : > { %v5870_v43 = vpop.eup %5869  ;;  %5356 = vmatprep.subr.bf16.mxu0 %v7067_v29 }
 0xb24   : > { %v2608_v25 = vmul.f32 %v5870_v43, %v5864_v2 }
 0xb25   : > { %v2681_v54 = vpop.permute.xlu1 %2680 }
 0xb26   : > { %5357 = vmatpush3.bf16.msra.mxu0 %v7067_v29  ;;  %v2613_v45 = vpack.c.bf16 %v2610_v26, %v2608_v25 }
 0xb27   : > { %v5872_v46 = vpop.eup %5871  ;;  %5481 = vmatprep.subr.msk.bf16.mxu0 %vm1549_vm2, %v2687_v27 }
 0xb28   : > { %5358 = vmatprep.mubr.msk.bf16.mxu0 %vm1613_vm5, %v2613_v45  ;;  %v2612_v49 = vmul.f32 %v5872_v46, %v5866_v8 }
 0xb2a   : > { %v2614_v51 = vpack.c.bf16 %v2612_v49, %v2612_v49 }
 0xb2c   : > { %5359 = vmatmul.mubr.msk.bf16.vlgmr.msra.gmra.mxu0 %vm1613_vm5, %v2614_v51 }
 0xb2d   : > { %5363 = vmatpush3.bf16.xpose.msra.mxu0 %v2698_v61  ;;  %5366 = vmatprep.mubr.msk.bf16.mxu0 %vm1549_vm2, %v2679_v52 }
 0xb2e   : > { %5482 = vmatprep.subr.msk.bf16.mxu0 %vm1549_vm2, %v2685_v44 }
 0xb35   : > { %5365 = vmatpush3.bf16.xpose.msra.mxu0 %v2695_v53 }
 0xb36   : > { %5386 = vmatprep.subr.bf16.mxu0 %v7130_v57 }
 0xb3c   : > { %5367 = vmatmul.mubr.msk.bf16.vlgmr.msra.gmra.mxu0 %vm1549_vm2, %v2681_v54 }
 0xb3d   : > { %5387 = vmatpush3.bf16.msra.mxu0 %v7130_v57 }
 0xb3e   : > { %5388 = vmatprep.subr.bf16.mxu0 %v7135_v56 }
 0xb41   : > { %5389 = vmatpush3.bf16.msra.mxu0 %v7135_v56 }
 0xbe1   : > { %v5344_v47 = vpop.f32.mrf.mxu0 }
 0xbe2   : > { %v7325_v30 = vadd.f32 %v5344_v47, %v2269_v9 }
 0xbe3   : > { %v2496_v55 = vpop.f32.mrf.mxu0 }
 0xbe4   : > { %v7327_v58 = vadd.f32 %v2496_v55, %v2267_v15 }
 0xbe5   : > { %v5345_v59 = vpop.f32.mrf.mxu0 }
 0xbe7   : > { %v2499_v63 = vpop.f32.mrf.mxu0 }
 0xbe8   : > { %v7329_v2 = vadd.f32 %v2499_v63, %v2268_v17 }
 0xbec   : > { %v5360_v38 = vpop.f32.mrf.mxu0 }
 0xbed   : > { %v2675_v57 = vpack.c.bf16 %v5360_v38, %v5360_v38 }
 0xbee   : > { %v2660_v8 = vpop.f32.mrf.mxu0 }
 0xbf0   : > { %v5361_v1 = vpop.f32.mrf.mxu0 }
 0xbf2   : > { %v2663_v42 = vpop.f32.mrf.mxu0 }
 0xbf3   : > { %v2674_v0 = vpack.c.bf16 %v2663_v42, %v2660_v8 }
 0xbf5   : > { %5390 = vmatprep.mubr.msk.bf16.mxu0 %vm1549_vm2, %v2674_v0 }
 0xbf6   : > { %5391 = vmatmul.mubr.msk.bf16.vlgmr.msra.gmra.mxu0 %vm1549_vm2, %v2675_v57 }
 0xbfc   : > { %v5368_v56 = vpop.f32.mrf.mxu0 }
 0xbfd   : > { %v2750_v11 = vsel %vm1544_vm4, %v5368_v56, -1e+30 }
 0xbfe   : > { %v2734_v19 = vpop.f32.mrf.mxu0  ;;  %v2757_v17 = vsel %vm1613_vm5, %v2750_v11, -inf }
 0xbff   : > { %v2748_v9 = vsel %vm1544_vm4, %v2734_v19, -1e+30 }
 0xc00   : > { %v5369_v34 = vpop.f32.mrf.mxu0  ;;  %v2751_v15 = vsel %vm1613_vm5, %v2748_v9, -inf }
 0xc01   : > { %2752 = vmax.xlane.f32.xlu0 %v2751_v15 }
 0xc02   : > { %v2737_v28 = vpop.f32.mrf.mxu0 }
 0xc03   : > { %v2749_v16 = vsel %vm1544_vm4, %v2737_v28, -1e+30 }
 0xc04   : > { %v2754_v37 = vsel %vm1613_vm5, %v2749_v16, -inf }
 0xc05   : > { %2758 = vmax.xlane.f32.xlu0 %v2757_v17  ;;  %2755 = vmax.xlane.f32.xlu1 %v2754_v37 }
 0xc8a   : > { %v2753_v12 = vpop.xlane.xlu0 %2752 }
 0xc8b   : > { %v2760_v18 = vsub.f32 %v2748_v9, %v2753_v12 }
 0xc8d   : > { %v2763_v21 = vmul.f32 1.442695, %v2760_v18 }
 0xc8e   : > { %v2759_v5 = vpop.xlane.xlu0 %2758  ;;  %v2756_v10 = vpop.xlane.xlu1 %2755 }
 0xc8f   : > { %5873 = vpow2.f32 %v2763_v21  ;;  %v2762_v23 = vsub.f32 %v2750_v11, %v2759_v5  ;;  %v2761_v6 = vsub.f32 %v2749_v16, %v2756_v10 }
 0xc91   : > { %v2767_v14 = vmul.f32 1.442695, %v2762_v23  ;;  %v2765_v24 = vmul.f32 1.442695, %v2761_v6 }
 0xc93   : > { %5875 = vpow2.f32 %v2767_v14 }
 0xc94   : > { %5877 = vpow2.f32 %v2765_v24 }
 0xc9c   : > { %v5874_v40 = vpop.eup %5873 }
 0xc9d   : > { %v2769_v43 = vsel %vm1613_vm5, %v5874_v40, 0.0 }
 0xc9e   : > { %2770 = vadd.xlane.f32.xlu0 %v2769_v43 }
 0xca0   : > { %v5876_v25 = vpop.eup %5875 }
 0xca1   : > { %v5878_v26 = vpop.eup %5877  ;;  %v2775_v27 = vsel %vm1613_vm5, %v5876_v25, 0.0 }
 0xca2   : > { %2776 = vadd.xlane.f32.xlu1 %v2775_v27  ;;  %v2772_v44 = vsel %vm1613_vm5, %v5878_v26, 0.0 }
 0xca3   : > { %2773 = vadd.xlane.f32.xlu0 %v2772_v44 }
 0xcb3   : > { %2788 = vrot.lane.b32.xlu1 %v7067_v29, %s6417_s7 }
 0xcb6   : > { %v7347_v45 = vpop.f32.mrf.mxu0 }
 0xcb7   : > { %2966 = vrot.lane.b32.xlu1 %v7169_v60, %s6418_s26 }
 0xcb8   : > { %v7351_v46 = vpop.f32.mrf.mxu0 }
 0xcb9   : > { %2790 = vrot.lane.b32.xlu0 %v7285_v50, %s6417_s7 }
 0xcba   : > { %v5393_v49 = vpop.f32.mrf.mxu0 }
 0xcbb   : > { %2964 = vrot.lane.b32.xlu1 %v7178_v7, %s6418_s26 }
 0xcbd   : > { %2960 = vrot.lane.b32.xlu0 %v7071_v33, %s6418_s26 }
 0xcbf   : > { %2962 = vrot.lane.b32.xlu1 %v7191_v13, %s6418_s26 }
 0xcc1   : > { %3193 = vrot.lane.b32.xlu0 %v7169_v60, %s6419_s20 }
 0xcc3   : > { %3191 = vrot.lane.b32.xlu1 %v7178_v7, %s6419_s20 }
 0xcc5   : > { %3187 = vrot.lane.b32.xlu0 %v7071_v33, %s6419_s20 }
 0xcc7   : > { %3189 = vrot.lane.b32.xlu1 %v7191_v13, %s6419_s20 }
 0xd27   : > { %v2771_v51 = vpop.xlane.xlu0 %2770 }
 0xd28   : > { %5879 = vrcp.f32 %v2771_v51 }
 0xd2b   : > { %v2777_v61 = vpop.xlane.xlu1 %2776 }
 0xd2c   : > { %v2774_v52 = vpop.xlane.xlu0 %2773  ;;  %5881 = vrcp.f32 %v2777_v61 }
 0xd2d   : > { %5883 = vrcp.f32 %v2774_v52 }
 0xd2f   : > { %v2789_v60 = vpop.permute.xlu1 %2788 }
 0xd30   : > { %v2791_v53 = vpop.permute.xlu0 %2790 }
 0xd31   : > { %v2800_v54 = vsel %vm1657_vm3, %v2791_v53, 0  ;;  %5483 = vmatprep.subr.msk.bf16.mxu1 %vm1657_vm3, %v2791_v53 }
 0xd32   : > { %5371 = vmatpush3.bf16.msra.mxu1 %v2800_v54 }
 0xd33   : > { %5372 = vmatprep.subr.bf16.mxu1 %v2789_v60  ;;  %v2967_v8 = vpop.permute.xlu1 %2966 }
 0xd34   : > { %v2961_v9 = vpop.permute.xlu0 %2960  ;;  %v2978_v34 = vsel %vm1549_vm2, %v2967_v8, 0 }
 0xd35   : > { %v5880_v33 = vpop.eup %5879 }
 0xd36   : > { %5373 = vmatpush3.bf16.msra.mxu1 %v2789_v60  ;;  %v2779_v55 = vmul.f32 %v5880_v33, %v5874_v40 }
 0xd37   : > { %5378 = vmatprep.subr.bf16.mxu1 %v7142_v3 }
 0xd38   : > { %v3194_v15 = vpop.permute.xlu0 %3193 }
 0xd39   : > { %v5882_v7 = vpop.eup %5881  ;;  %v3205_v28 = vsel %vm1549_vm2, %v3194_v15, 0 }
 0xd3a   : > { %v5884_v13 = vpop.eup %5883  ;;  %v2783_v47 = vmul.f32 %v5882_v7, %v5876_v25 }
 0xd3b   : > { %v2781_v59 = vmul.f32 %v5884_v13, %v5878_v26 }
 0xd3c   : > { %v2785_v63 = vpack.c.bf16 %v2783_v47, %v2783_v47  ;;  %v3188_v16 = vpop.permute.xlu0 %3187 }
 0xd3d   : > { %v2784_v38 = vpack.c.bf16 %v2781_v59, %v2779_v55 }
 0xd3f   : > { %5374 = vmatprep.mubr.msk.bf16.mxu1 %vm1613_vm5, %v2784_v38 }
 0xd40   : > { %5375 = vmatmul.mubr.msk.bf16.vlgmr.msra.gmra.mxu1 %vm1613_vm5, %v2785_v63 }
 0xd41   : > { %5379 = vmatpush3.bf16.msra.mxu1 %v7142_v3  ;;  %v2965_v3 = vpop.permute.xlu1 %2964 }
 0xd42   : > { %5380 = vmatprep.subr.bf16.mxu1 %v7146_v20 }
 0xd45   : > { %5381 = vmatpush3.bf16.msra.mxu1 %v7146_v20  ;;  %v2975_v20 = vsel %vm1549_vm2, %v2965_v3, 0  ;;  %v2963_v11 = vpop.permute.xlu1 %2962 }
 0xd46   : > { %5484 = vmatprep.subr.msk.bf16.mxu1 %vm1549_vm2, %v2967_v8 }
 0xd49   : > { %v3192_v17 = vpop.permute.xlu1 %3191 }
 0xd4a   : > { %v3202_v37 = vsel %vm1549_vm2, %v3192_v17, 0 }
 0xd4d   : > { %v3190_v12 = vpop.permute.xlu1 %3189 }
 0xe00   : > { %v5376_v1 = vpop.f32.mrf.mxu1 }
 0xe01   : > { %v2851_v19 = vpack.c.bf16 %v5376_v1, %v5376_v1 }
 0xe02   : > { %v2836_v42 = vpop.f32.mrf.mxu1 }
 0xe04   : > { %v5377_v0 = vpop.f32.mrf.mxu1 }
 0xe06   : > { %v2839_v57 = vpop.f32.mrf.mxu1 }
 0xe07   : > { %v2850_v56 = vpack.c.bf16 %v2839_v57, %v2836_v42 }
 0xe09   : > { %5382 = vmatprep.mubr.msk.bf16.mxu1 %vm1549_vm2, %v2850_v56 }
 0xe0a   : > { %5383 = vmatmul.mubr.msk.bf16.vlgmr.msra.gmra.mxu1 %vm1549_vm2, %v2851_v19 }
 0xe0b   : > { %5395 = vmatpush3.bf16.xpose.msra.mxu1 %v2978_v34  ;;  %5398 = vmatprep.mubr.msk.bf16.mxu1 %vm1549_vm2, %v2961_v9 }
 0xe0c   : > { %5485 = vmatprep.subr.msk.bf16.mxu1 %vm1549_vm2, %v2965_v3 }
 0xe13   : > { %5397 = vmatpush3.bf16.xpose.msra.mxu1 %v2975_v20 }
 0xe14   : > { %5487 = vmatprep.subr.msk.bf16.mxu1 %vm1549_vm2, %v3194_v15 }
 0xe1a   : > { %5399 = vmatmul.mubr.msk.bf16.vlgmr.msra.gmra.mxu1 %vm1549_vm2, %v2963_v11 }
 0xe1b   : > { %5419 = vmatpush3.bf16.xpose.msra.mxu1 %v3205_v28  ;;  %5422 = vmatprep.mubr.msk.bf16.mxu1 %vm1549_vm2, %v3188_v16 }
 0xe1c   : > { %5488 = vmatprep.subr.msk.bf16.mxu1 %vm1549_vm2, %v3192_v17 }
 0xe23   : > { %5421 = vmatpush3.bf16.xpose.msra.mxu1 %v3202_v37 }
 0xe2a   : > { %5423 = vmatmul.mubr.msk.bf16.vlgmr.msra.gmra.mxu1 %vm1549_vm2, %v3190_v12 }
 0xe2b   : > { %3774 = vmatprep.mubr.bf16.mxu1 %v6415_v36 }
 0xeca   : > { %v7392_v18 = vpop.f32.mrf.mxu1 }
 0xecc   : > { %v7394_v21 = vpop.f32.mrf.mxu1 }
 0xece   : > { %v5385_v5 = vpop.f32.mrf.mxu1 }
 0xed0   : > { %v7396_v10 = vpop.f32.mrf.mxu1 }
 0xeda   : > { %v5400_v23 = vpop.f32.mrf.mxu1 }
 0xedb   : > { %v3030_v43 = vsel %vm1544_vm4, %v5400_v23, -1e+30 }
 0xedc   : > { %v3014_v6 = vpop.f32.mrf.mxu1  ;;  %v3037_v27 = vsel %vm1613_vm5, %v3030_v43, -inf }
 0xedd   : > { %v3028_v14 = vsel %vm1544_vm4, %v3014_v6, -1e+30 }
 0xede   : > { %v5401_v24 = vpop.f32.mrf.mxu1  ;;  %v3031_v40 = vsel %vm1613_vm5, %v3028_v14, -inf }
 0xedf   : > { %3032 = vmax.xlane.f32.xlu0 %v3031_v40 }
 0xee0   : > { %v3017_v25 = vpop.f32.mrf.mxu1 }
 0xee1   : > { %v3029_v26 = vsel %vm1544_vm4, %v3017_v25, -1e+30 }
 0xee2   : > { %v3034_v44 = vsel %vm1613_vm5, %v3029_v26, -inf }
 0xee3   : > { %3038 = vmax.xlane.f32.xlu0 %v3037_v27  ;;  %3035 = vmax.xlane.f32.xlu1 %v3034_v44 }
 0xeea   : > { %v5424_v49 = vpop.f32.mrf.mxu1 }
 0xeeb   : > { %v3257_v34 = vsel %vm1544_vm4, %v5424_v49, -1e+30 }
 0xeec   : > { %v3241_v51 = vpop.f32.mrf.mxu1  ;;  %v3264_v3 = vsel %vm1613_vm5, %v3257_v34, -inf }
 0xeed   : > { %v3255_v57 = vsel %vm1544_vm4, %v3241_v51, -1e+30 }
 0xeee   : > { %v5425_v61 = vpop.f32.mrf.mxu1  ;;  %v3258_v19 = vsel %vm1613_vm5, %v3255_v57, -inf }
 0xef0   : > { %v3244_v0 = vpop.f32.mrf.mxu1 }
 0xef1   : > { %v3256_v56 = vsel %vm1544_vm4, %v3244_v0, -1e+30 }
 0xef2   : > { %v3261_v9 = vsel %vm1613_vm5, %v3256_v56, -inf }
 0xf68   : > { %v3033_v52 = vpop.xlane.xlu0 %3032 }
 0xf69   : > { %v3040_v53 = vsub.f32 %v3028_v14, %v3033_v52 }
 0xf6b   : > { %v3043_v54 = vmul.f32 1.442695, %v3040_v53 }
 0xf6c   : > { %v3039_v60 = vpop.xlane.xlu0 %3038  ;;  %v3036_v33 = vpop.xlane.xlu1 %3035 }
 0xf6d   : > { %5885 = vpow2.f32 %v3043_v54  ;;  %v3042_v7 = vsub.f32 %v3030_v43, %v3039_v60  ;;  %v3041_v13 = vsub.f32 %v3029_v26, %v3036_v33  ;;  %v5969_v33 = vld [vmem:[#allocation2 + $0x10] sm:$0xff] }
 0xf6f   : > { %v3047_v47 = vmul.f32 1.442695, %v3042_v7  ;;  %v3045_v55 = vmul.f32 1.442695, %v3041_v13  ;;  %v3415_v7 = vadd.f32 %v5969_v33, %v7329_v2  ;;  %v7441_v13 = vld [vmem:[%s8032_s21] ss:$0 sm:$0xff]  ;;  %v2949_v2 = vpop.f32.mrf.mxu0 }
 0xf70   : > { %v5973_v33 = vld [vmem:[#allocation2 + $0x20] sm:$0xff] }
 0xf71   : > { %5887 = vpow2.f32 %v3047_v47  ;;  %v5970_v47 = vld [vmem:[#allocation2 + $0x8] sm:$0xff] }
 0xf72   : > { %5889 = vpow2.f32 %v3045_v55  ;;  %v3416_v55 = vadd.f32 %v5970_v47, %v7325_v30 }
 0xf7a   : > { %v5886_v59 = vpop.eup %5885 }
 0xf7b   : > { %v3049_v63 = vsel %vm1613_vm5, %v5886_v59, 0.0 }
 0xf7c   : > { %3050 = vadd.xlane.f32.xlu0 %v3049_v63  ;;  %v5971_v63 = vld [vmem:[#allocation2 + $0x28] sm:$0xff] }
 0xf7e   : > { %v5888_v38 = vpop.eup %5887 }
 0xf7f   : > { %v5890_v8 = vpop.eup %5889  ;;  %v3055_v1 = vsel %vm1613_vm5, %v5888_v38, 0.0 }
 0xf80   : > { %3056 = vadd.xlane.f32.xlu1 %v3055_v1  ;;  %v3052_v42 = vsel %vm1613_vm5, %v5890_v8, 0.0 }
 0xf81   : > { %3053 = vadd.xlane.f32.xlu0 %v3052_v42 }
 0xf91   : > { %3066 = vrot.lane.b32.xlu1 %v7067_v29, %s6418_s26 }
 0xf97   : > { %3068 = vrot.lane.b32.xlu0 %v7285_v50, %s6418_s26 }
 0xfb5   : > { %3259 = vmax.xlane.f32.xlu1 %v3258_v19 }
 0xfb6   : > { %3262 = vmax.xlane.f32.xlu0 %v3261_v9 }
 0xfba   : > { %3265 = vmax.xlane.f32.xlu0 %v3264_v3 }
0x1005   : > { %v3051_v20 = vpop.xlane.xlu0 %3050 }
0x1006   : > { %5891 = vrcp.f32 %v3051_v20 }
0x1009   : > { %v3057_v15 = vpop.xlane.xlu1 %3056 }
0x100a   : > { %v3054_v11 = vpop.xlane.xlu0 %3053  ;;  %5893 = vrcp.f32 %v3057_v15 }
0x100b   : > { %5895 = vrcp.f32 %v3054_v11 }
0x100d   : > { %v3067_v17 = vpop.permute.xlu1 %3066 }
0x100e   : > { %v3069_v28 = vpop.permute.xlu0 %3068 }
0x100f   : > { %v3078_v16 = vsel %vm1657_vm3, %v3069_v28, 0  ;;  %5486 = vmatprep.subr.msk.bf16.mxu0 %vm1657_vm3, %v3069_v28 }
0x1010   : > { %5403 = vmatpush3.bf16.msra.mxu0 %v3078_v16 }
0x1011   : > { %5404 = vmatprep.subr.bf16.mxu0 %v3067_v17 }
0x1013   : > { %v5892_v41 = vpop.eup %5891 }
0x1014   : > { %5405 = vmatpush3.bf16.msra.mxu0 %v3067_v17  ;;  %v3059_v23 = vmul.f32 %v5892_v41, %v5886_v59  ;;  %v7445_v59 = vadd.f32 %v7441_v13, %v3415_v7 }
0x1015   : > { %5410 = vmatprep.subr.bf16.mxu0 %v7237_v4 }
0x1017   : > { %v5894_v37 = vpop.eup %5893 }
0x1018   : > { %v5896_v12 = vpop.eup %5895  ;;  %v3063_v5 = vmul.f32 %v5894_v37, %v5888_v38  ;;  %v7450_v38 = vadd.f32 %v7441_v13, %v3416_v55 }
0x1019   : > { %v3061_v6 = vmul.f32 %v5896_v12, %v5890_v8  ;;  %v2955_v12 = vadd.f32 %v7347_v45, %v7392_v18 }
0x101a   : > { %v3065_v14 = vpack.c.bf16 %v3063_v5, %v3063_v5 }
0x101b   : > { %v3064_v24 = vpack.c.bf16 %v3061_v6, %v3059_v23  ;;  %v2947_v23 = vadd.f32 %v7351_v46, %v7394_v21 }
0x101d   : > { %5406 = vmatprep.mubr.msk.bf16.mxu0 %vm1613_vm5, %v3064_v24 }
0x101e   : > { %5407 = vmatmul.mubr.msk.bf16.vlgmr.msra.gmra.mxu0 %vm1613_vm5, %v3065_v14 }
0x101f   : > { %5411 = vmatpush3.bf16.msra.mxu0 %v7237_v4 }
0x1020   : > { %5412 = vmatprep.subr.bf16.mxu0 %v7247_v62 }
0x1023   : > { %5413 = vmatpush3.bf16.msra.mxu0 %v7247_v62 }
0x103e   : > { %v3260_v43 = vpop.xlane.xlu1 %3259 }
0x103f   : > { %v3263_v40 = vpop.xlane.xlu0 %3262  ;;  %v3267_v27 = vsub.f32 %v3255_v57, %v3260_v43  ;;  %v2950_v43 = vadd.f32 %v2949_v2, %v7396_v10 }
0x1040   : > { %v3268_v25 = vsub.f32 %v3256_v56, %v3263_v40 }
0x1041   : > { %v3270_v51 = vmul.f32 1.442695, %v3267_v27 }
0x1042   : > { %v3272_v26 = vmul.f32 1.442695, %v3268_v25 }
0x1043   : > { %v3266_v44 = vpop.xlane.xlu0 %3265 }
0x1044   : > { %5897 = vpow2.f32 %v3272_v26  ;;  %v3269_v49 = vsub.f32 %v3257_v34, %v3266_v44 }
0x1046   : > { %v3274_v61 = vmul.f32 1.442695, %v3269_v49 }
0x1048   : > { %5899 = vpow2.f32 %v3274_v61 }
0x1049   : > { %5901 = vpow2.f32 %v3270_v51 }
0x1051   : > { %v5898_v52 = vpop.eup %5897 }
0x1052   : > { %v3279_v4 = vsel %vm1613_vm5, %v5898_v52, 0.0 }
0x1053   : > { %3280 = vadd.xlane.f32.xlu0 %v3279_v4  ;;  %v5972_v4 = vld [vmem:[#allocation2] sm:$0xff] }
0x1055   : > { %v5900_v53 = vpop.eup %5899 }
0x1056   : > { %v3282_v62 = vsel %vm1613_vm5, %v5900_v53, 0.0  ;;  %v5902_v54 = vpop.eup %5901 }
0x1057   : > { %3283 = vadd.xlane.f32.xlu1 %v3282_v62  ;;  %v3276_v60 = vsel %vm1613_vm5, %v5902_v54, 0.0 }
0x105b   : > { %3277 = vadd.xlane.f32.xlu1 %v3276_v60 }
0x1069   : > { %3295 = vrot.lane.b32.xlu0 %v7285_v50, %s6419_s20  ;;  %v3414_v50 = vadd.f32 %v5971_v63, %v7327_v58 }
0x106c   : > { %3293 = vrot.lane.b32.xlu1 %v7067_v29, %s6419_s20  ;;  %v7454_v29 = vadd.f32 %v7441_v13, %v3414_v50  ;;  %v5974_v50 = vld [vmem:[#allocation2 + $0x18] sm:$0xff] }
0x1088   : > { %3437 = vadd.xlane.f32.xlu0 %v7445_v59 }
0x108c   : > { %3439 = vadd.xlane.f32.xlu0 %v7450_v38 }
0x1090   : > { %3435 = vadd.xlane.f32.xlu1 %v7454_v29 }
0x10dc   : > { %v3281_v30 = vpop.xlane.xlu0 %3280 }
0x10de   : > { %v5408_v8 = vpop.f32.mrf.mxu0 }
0x10df   : > { %v3129_v9 = vpack.c.bf16 %v5408_v8, %v5408_v8 }
0x10e0   : > { %v3296_v1 = vpop.permute.xlu0 %3295  ;;  %v3114_v42 = vpop.f32.mrf.mxu0 }
0x10e1   : > { %v3284_v0 = vpop.xlane.xlu1 %3283  ;;  %5489 = vmatprep.subr.msk.bf16.mxu0 %vm1657_vm3, %v3296_v1  ;;  %v3305_v34 = vsel %vm1657_vm3, %v3296_v1, 0 }
0x10e2   : > { %v5409_v57 = vpop.f32.mrf.mxu0  ;;  %5903 = vrcp.f32 %v3284_v0 }
0x10e3   : > { %5905 = vrcp.f32 %v3281_v30 }
0x10e4   : > { %v3117_v58 = vpop.f32.mrf.mxu0 }
0x10e5   : > { %v3128_v56 = vpack.c.bf16 %v3117_v58, %v3114_v42  ;;  %v3278_v19 = vpop.xlane.xlu1 %3277 }
0x10e6   : > { %5907 = vrcp.f32 %v3278_v19  ;;  %v5723_v19 = vld [vmem:[%s6833_s23 + $0xe4] ss:$16 sps:$4 sm:$0xff]  }
0x10e7   : > { %5414 = vmatprep.mubr.msk.bf16.mxu0 %vm1549_vm2, %v3128_v56  ;;  %3742 = vmatprep.subr.bf16.mxu1 %v5723_v19 }
0x10e8   : > { %5415 = vmatmul.mubr.msk.bf16.vlgmr.msra.gmra.mxu0 %vm1549_vm2, %v3129_v9  ;;  %v5726_v9 = vld [vmem:[%s6833_s23 + $0xec] ss:$16 sps:$4 sm:$0xff]  }
0x10e9   : > { %5427 = vmatpush3.bf16.msra.mxu0 %v3305_v34  ;;  %v3294_v3 = vpop.permute.xlu1 %3293  ;;  %v5721_v34 = vld [vmem:[%s6833_s23 + $0xe0] ss:$16 sps:$4 sm:$0xff]  }
0x10ea   : > { %5428 = vmatprep.subr.bf16.mxu0 %v3294_v3  ;;  %3743 = vmatpush1.bf16.msra.mxu1 %v5721_v34 }
0x10ed   : > { %5429 = vmatpush3.bf16.msra.mxu0 %v3294_v3  ;;  %v5724_v3 = vld [vmem:[%s6833_s23 + $0xe8] ss:$16 sps:$4 sm:$0xff]  }
0x10ee   : > { %5434 = vmatprep.subr.bf16.mxu0 %v7273_v22 }
0x10ef   : > { %v5904_v20 = vpop.eup %5903 }
0x10f0   : > { %v5906_v15 = vpop.eup %5905  ;;  %v3290_v28 = vmul.f32 %v5904_v20, %v5900_v53  ;;  %v5729_v20 = vld [vmem:[%s6833_s23 + $0xc4] ss:$16 sps:$4 sm:$0xff]  }
0x10f1   : > { %v3288_v17 = vmul.f32 %v5906_v15, %v5898_v52  ;;  %v5732_v15 = vld [vmem:[%s6833_s23 + $0xcc] ss:$16 sps:$4 sm:$0xff]   ;;  %3744 = vmatprep.subr.bf16.mxu1 %v5729_v20  ;;  %v7559_v20 = vld [vmem:[%s931_s3] ss:$0 sm:$0xff] }
0x10f2   : > { %v3292_v37 = vpack.c.bf16 %v3290_v28, %v3290_v28  ;;  %v5730_v28 = vld [vmem:[%s6833_s23 + $0xc8] ss:$16 sps:$4 sm:$0xff]  }
0x10f3   : > { %v5908_v11 = vpop.eup %5907 }
0x10f4   : > { %v3286_v16 = vmul.f32 %v5908_v11, %v5902_v54  ;;  %v5727_v11 = vld [vmem:[%s6833_s23 + $0xc0] ss:$16 sps:$4 sm:$0xff]  }
0x10f5   : > { %3745 = vmatpush1.bf16.msra.mxu1 %v5727_v11 }
0x10f6   : > { %v3291_v41 = vpack.c.bf16 %v3288_v17, %v3286_v16  ;;  %v5735_v16 = vld [vmem:[%s6833_s23 + $0xa4] ss:$16 sps:$4 sm:$0xff]   ;;  %v5738_v17 = vld [vmem:[%s6833_s23 + $0xac] ss:$16 sps:$4 sm:$0xff]  }
0x10f7   : > { %3746 = vmatprep.subr.bf16.mxu1 %v5735_v16 }
0x10f8   : > { %5430 = vmatprep.mubr.msk.bf16.mxu0 %vm1613_vm5, %v3291_v41  ;;  %v5733_v41 = vld [vmem:[%s6833_s23 + $0xa0] ss:$16 sps:$4 sm:$0xff]  }
0x10f9   : > { %5431 = vmatmul.mubr.msk.bf16.vlgmr.msra.gmra.mxu0 %vm1613_vm5, %v3292_v37  ;;  %v5736_v37 = vld [vmem:[%s6833_s23 + $0xa8] ss:$16 sps:$4 sm:$0xff]   ;;  %3747 = vmatpush1.bf16.msra.mxu1 %v5733_v41 }
0x10fa   : > { %5435 = vmatpush3.bf16.msra.mxu0 %v7273_v22  ;;  %v5770_v41 = vld [vmem:[%s6836_s6 + $0xf8] sm:$0xff]  }
0x10fb   : > { %5436 = vmatprep.subr.bf16.mxu0 %v7277_v48 }
0x10fe   : > { %5437 = vmatpush3.bf16.msra.mxu0 %v7277_v48 }
0x10ff   : > { %3805 = vmatprep.subr.bf16.mxu0 %v5726_v9  ;;  %v7551_v9 = vld [vmem:[%s8033_s25] ss:$0 sm:$0xff] }
0x1111   : > { %v3438_v46 = vpop.xlane.xlu0 %3437 }
0x1112   : > { %v3448_v62 = vmul.f32 0.0078125, %v3438_v46  ;;  %v5768_v46 = vld [vmem:[%s6833_s23 + $0xc] ss:$16 sps:$4 sm:$0xff]  }
0x1114   : > { %v7480_v30 = vsub.f32 %v7445_v59, %v3448_v62 }
0x1115   : > { %v3440_v63 = vpop.xlane.xlu0 %3439 }
0x1116   : > { %v3449_v8 = vmul.f32 0.0078125, %v3440_v63  ;;  %v3460_v58 = vmul.f32 %v7480_v30, %v7480_v30 }
0x1118   : > { %v7494_v57 = vsub.f32 %v7450_v38, %v3449_v8 }
0x1119   : > { %v3436_v10 = vpop.xlane.xlu1 %3435 }
0x111a   : > { %v3447_v60 = vmul.f32 0.0078125, %v3436_v10 }
0x111c   : > { %v7483_v1 = vsub.f32 %v7454_v29, %v3447_v60 }
0x111e   : > { %v3459_v56 = vmul.f32 %v7483_v1, %v7483_v1 }
0x11a8   : > { %v5416_v5 = vpop.f32.mrf.mxu0 }
0x11a9   : > { %v3186_v6 = vadd.f32 %v5416_v5, %v2955_v12  ;;  %v5741_v12 = vld [vmem:[%s6833_s23 + $0x84] ss:$16 sps:$4 sm:$0xff]   ;;  %v5744_v5 = vld [vmem:[%s6833_s23 + $0x8c] ss:$16 sps:$4 sm:$0xff]  }
0x11aa   : > { %v3170_v14 = vpop.f32.mrf.mxu0  ;;  %3748 = vmatprep.subr.bf16.mxu1 %v5741_v12  ;;  %v5772_v12 = vld [vmem:[%s6836_s6 + $0xb8] sm:$0xff]  }
0x11ab   : > { %v3184_v24 = vadd.f32 %v3170_v14, %v2947_v23  ;;  %v5739_v23 = vld [vmem:[%s6833_s23 + $0x80] ss:$16 sps:$4 sm:$0xff]  }
0x11ac   : > { %v5417_v40 = vpop.f32.mrf.mxu0  ;;  %3749 = vmatpush1.bf16.msra.mxu1 %v5739_v23  ;;  %v5745_v14 = vld [vmem:[%s6833_s23 + $0x60] ss:$16 sps:$4 sm:$0xff]  }
0x11ad   : > { %v5748_v40 = vld [vmem:[%s6833_s23 + $0x68] ss:$16 sps:$4 sm:$0xff]   ;;  %v5774_v23 = vld [vmem:[%s6836_s6 + $0xf0] sm:$0xff]  }
0x11ae   : > { %v3173_v25 = vpop.f32.mrf.mxu0 }
0x11af   : > { %v3185_v26 = vadd.f32 %v3173_v25, %v2950_v43  ;;  %v5750_v43 = vld [vmem:[%s6833_s23 + $0x6c] ss:$16 sps:$4 sm:$0xff]   ;;  %v5753_v25 = vld [vmem:[%s6833_s23 + $0x44] ss:$16 sps:$4 sm:$0xff]  }
0x11b9   : > { %v5432_v22 = vpop.f32.mrf.mxu0 }
0x11ba   : > { %v3356_v51 = vpack.c.bf16 %v5432_v22, %v5432_v22  ;;  %v5751_v22 = vld [vmem:[%s6833_s23 + $0x40] ss:$16 sps:$4 sm:$0xff]  }
0x11bb   : > { %v3341_v27 = vpop.f32.mrf.mxu0 }
0x11bd   : > { %v5433_v44 = vpop.f32.mrf.mxu0 }
0x11be   : > { %v5759_v44 = vld [vmem:[%s6833_s23 + $0x24] ss:$16 sps:$4 sm:$0xff]  }
0x11bf   : > { %v3344_v49 = vpop.f32.mrf.mxu0 }
0x11c0   : > { %v3355_v48 = vpack.c.bf16 %v3344_v49, %v3341_v27  ;;  %v5754_v27 = vld [vmem:[%s6833_s23 + $0x48] ss:$16 sps:$4 sm:$0xff]   ;;  %v5762_v49 = vld [vmem:[%s6833_s23 + $0x2c] ss:$16 sps:$4 sm:$0xff]  }
0x11c2   : > { %5438 = vmatprep.mubr.msk.bf16.mxu0 %vm1549_vm2, %v3355_v48  ;;  %v5757_v48 = vld [vmem:[%s6833_s23 + $0x20] ss:$16 sps:$4 sm:$0xff]  }
0x11c3   : > { %5439 = vmatmul.mubr.msk.bf16.vlgmr.msra.gmra.mxu0 %vm1549_vm2, %v3356_v51  ;;  %v5760_v51 = vld [vmem:[%s6833_s23 + $0x28] ss:$16 sps:$4 sm:$0xff]  }
0x11c4   : > { %3837 = vmatprep.mubr.bf16.mxu0 %v6415_v36  ;;  %3806 = vmatpush1.bf16.msra.mxu0 %v5724_v3 }
0x11c5   : > { %3807 = vmatprep.subr.bf16.mxu0 %v5732_v15 }
0x11c8   : > { %3808 = vmatpush1.bf16.msra.mxu0 %v5730_v28 }
0x11c9   : > { %3809 = vmatprep.subr.bf16.mxu0 %v5738_v17 }
0x11cc   : > { %3810 = vmatpush1.bf16.msra.mxu0 %v5736_v37  ;;  %v5771_v37 = vld [vmem:[%s6836_s6 + $0x38] sm:$0xff]  }
0x11cd   : > { %3811 = vmatprep.subr.bf16.mxu0 %v5744_v5  ;;  %v5773_v5 = vld [vmem:[%s6836_s6 + $0x70] sm:$0xff]  }
0x1283   : > { %v5440_v45 = vpop.f32.mrf.mxu0 }
0x1284   : > { %v3413_v21 = vadd.f32 %v5440_v45, %v3186_v6  ;;  %v5742_v6 = vld [vmem:[%s6833_s23 + $0x88] ss:$16 sps:$4 sm:$0xff]   ;;  %v5765_v45 = vld [vmem:[%s6833_s23 + $0x4] ss:$16 sps:$4 sm:$0xff]  }
0x1285   : > { %v3397_v18 = vpop.f32.mrf.mxu0  ;;  %3812 = vmatpush1.bf16.msra.mxu0 %v5742_v6  ;;  %v5775_v6 = vld [vmem:[%s6836_s6 + $0x30] sm:$0xff]  }
0x1286   : > { %v3411_v61 = vadd.f32 %v3397_v18, %v3184_v24  ;;  %v3419_v7 = vadd.f32 %v5973_v33, %v3413_v21  ;;  %v5747_v24 = vld [vmem:[%s6833_s23 + $0x64] ss:$16 sps:$4 sm:$0xff]   ;;  %3813 = vmatprep.subr.bf16.mxu0 %v5750_v43  ;;  %v5763_v18 = vld [vmem:[%s6833_s23] ss:$16 sps:$4 sm:$0xff]   ;;  %v5766_v21 = vld [vmem:[%s6833_s23 + $0x8] ss:$16 sps:$4 sm:$0xff]  }
0x1287   : > { %v5441_v52 = vpop.f32.mrf.mxu0  ;;  %3750 = vmatprep.subr.bf16.mxu1 %v5747_v24  ;;  %v5777_v24 = vld [vmem:[%s6836_s6 + $0x68] sm:$0xff]  }
0x1288   : > { %v3417_v53 = vadd.f32 %v5972_v4, %v3411_v61  ;;  %v7486_v42 = vadd.f32 %v7441_v13, %v3419_v7  ;;  %3751 = vmatpush1.bf16.msra.mxu1 %v5745_v14  ;;  %v5776_v14 = vld [vmem:[%s6836_s6 + $0xb0] sm:$0xff]   ;;  %v5779_v43 = vld [vmem:[%s6836_s6 + $0x28] sm:$0xff]  }
0x1289   : > { %v3400_v54 = vpop.f32.mrf.mxu0  ;;  %3814 = vmatpush1.bf16.msra.mxu0 %v5748_v40  ;;  %3752 = vmatprep.subr.bf16.mxu1 %v5753_v25  ;;  %v5778_v40 = vld [vmem:[%s6836_s6 + $0xe8] sm:$0xff]  }
0x128a   : > { %v3412_v47 = vadd.f32 %v3400_v54, %v3185_v26  ;;  %v7476_v55 = vadd.f32 %v7441_v13, %v3417_v53  ;;  %v5756_v26 = vld [vmem:[%s6833_s23 + $0x4c] ss:$16 sps:$4 sm:$0xff]  }
0x128b   : > { %3815 = vmatprep.subr.bf16.mxu0 %v5756_v26  ;;  %v5780_v25 = vld [vmem:[%s6836_s6 + $0xa8] sm:$0xff]   ;;  %v5781_v26 = vld [vmem:[%s6836_s6 + $0x60] sm:$0xff]  }
0x128c   : > { %v3418_v2 = vadd.f32 %v5974_v50, %v3412_v47  ;;  %3441 = vadd.xlane.f32.xlu1 %v7476_v55  ;;  %3753 = vmatpush1.bf16.msra.mxu1 %v5751_v22  ;;  %v5782_v22 = vld [vmem:[%s6836_s6 + $0xe0] sm:$0xff]  }
0x128d   : > { %3816 = vmatpush1.bf16.msra.mxu0 %v5754_v27  ;;  %3754 = vmatprep.subr.bf16.mxu1 %v5759_v44  ;;  %v5783_v27 = vld [vmem:[%s6836_s6 + $0x20] sm:$0xff]  }
0x128e   : > { %v7489_v0 = vadd.f32 %v7441_v13, %v3418_v2  ;;  %v3461_v13 = vmul.f32 %v7494_v57, %v7494_v57  ;;  %3817 = vmatprep.subr.bf16.mxu0 %v5762_v49  ;;  %v5784_v44 = vld [vmem:[%s6836_s6 + $0xa0] sm:$0xff]   ;;  %v5785_v49 = vld [vmem:[%s6836_s6 + $0x58] sm:$0xff]  }
0x1290   : > { %3445 = vadd.xlane.f32.xlu1 %v7486_v42  ;;  %3443 = vadd.xlane.f32.xlu0 %v7489_v0 }
0x1291   : > { %3755 = vmatpush1.bf16.msra.mxu1 %v5757_v48  ;;  %3818 = vmatpush1.bf16.msra.mxu0 %v5760_v51  ;;  %v5786_v48 = vld [vmem:[%s6836_s6 + $0xd8] sm:$0xff]  }
0x1292   : > { %3756 = vmatprep.subr.bf16.mxu1 %v5765_v45  ;;  %3819 = vmatprep.subr.bf16.mxu0 %v5768_v46  ;;  %v5787_v51 = vld [vmem:[%s6836_s6 + $0x18] sm:$0xff]   ;;  %v5789_v46 = vld [vmem:[%s6836_s6 + $0x50] sm:$0xff]  }
0x1293   : > { %v5788_v45 = vld [vmem:[%s6836_s6 + $0x98] sm:$0xff]  }
0x1294   : > { %3467 = vadd.xlane.f32.xlu1 %v3460_v58  ;;  %3465 = vadd.xlane.f32.xlu0 %v3459_v56 }
0x1295   : > { %3757 = vmatpush1.bf16.msra.mxu1 %v5763_v18  ;;  %3820 = vmatpush1.bf16.msra.mxu0 %v5766_v21  ;;  %v5790_v18 = vld [vmem:[%s6836_s6 + $0xd0] sm:$0xff]  }
0x1296   : > { %5188 = vmatprep.subr.bf16.mxu0 %v5770_v41  ;;  %v5791_v21 = vld [vmem:[%s6836_s6 + $0x10] sm:$0xff]  }
0x1298   : > { %3469 = vadd.xlane.f32.xlu0 %v3461_v13 }
0x1315   : > { %v3442_v61 = vpop.xlane.xlu1 %3441 }
0x1316   : > { %v3450_v10 = vmul.f32 0.0078125, %v3442_v61  ;;  %v5792_v61 = vld [vmem:[%s6836_s6 + $0x90] sm:$0xff]  }
0x1318   : > { %v7535_v52 = vsub.f32 %v7476_v55, %v3450_v10 }
0x1319   : > { %v3444_v4 = vpop.xlane.xlu0 %3443  ;;  %v3446_v53 = vpop.xlane.xlu1 %3445 }
0x131a   : > { %v3451_v62 = vmul.f32 0.0078125, %v3444_v4  ;;  %v3452_v54 = vmul.f32 0.0078125, %v3446_v53  ;;  %v3462_v60 = vmul.f32 %v7535_v52, %v7535_v52  ;;  %v5793_v4 = vld [vmem:[%s6836_s6 + $0x48] sm:$0xff]  }
0x131b   : > { %v5794_v53 = vld [vmem:[%s6836_s6 + $0xc8] sm:$0xff]  }
0x131c   : > { %v7540_v33 = vsub.f32 %v7489_v0, %v3451_v62  ;;  %v7543_v7 = vsub.f32 %v7486_v42, %v3452_v54  ;;  %3471 = vadd.xlane.f32.xlu1 %v3462_v60  ;;  %v5795_v54 = vld [vmem:[%s6836_s6 + $0x8] sm:$0xff]  }
0x131d   : > { %v3466_v47 = vpop.xlane.xlu0 %3465  ;;  %v3468_v63 = vpop.xlane.xlu1 %3467  ;;  %v5796_v60 = vld [vmem:[%s6836_s6 + $0x88] sm:$0xff]  }
0x131e   : > { %v3477_v50 = vmul.f32 0.0078125, %v3466_v47  ;;  %v3478_v2 = vmul.f32 0.0078125, %v3468_v63  ;;  %v3463_v8 = vmul.f32 %v7540_v33, %v7540_v33  ;;  %v3464_v58 = vmul.f32 %v7543_v7, %v7543_v7  ;;  %v5797_v47 = vld [vmem:[%s6836_s6 + $0x40] sm:$0xff]  }
0x131f   : > { %v5798_v63 = vld [vmem:[%s6836_s6 + $0xc0] sm:$0xff]  }
0x1320   : > { %v3483_v56 = vadd.f32 1e-06, %v3477_v50  ;;  %v3484_v13 = vadd.f32 1e-06, %v3478_v2  ;;  %3473 = vadd.xlane.f32.xlu0 %v3463_v8  ;;  %3475 = vadd.xlane.f32.xlu1 %v3464_v58  ;;  %v5799_v2 = vld [vmem:[%s6836_s6] sm:$0xff]  }
0x1321   : > { %v3470_v10 = vpop.xlane.xlu0 %3469  ;;  %v5800_v8 = vld [vmem:[%s6836_s6 + $0x80] sm:$0xff]  }
0x1322   : > { %5909 = vrsqrt.f32 %v3483_v56  ;;  %v3479_v62 = vmul.f32 0.0078125, %v3470_v10 }
0x1323   : > { %5911 = vrsqrt.f32 %v3484_v13 }
0x1324   : > { %v3485_v50 = vadd.f32 1e-06, %v3479_v62 }
0x1326   : > { %5913 = vrsqrt.f32 %v3485_v50 }
0x132f   : > { %v5910_v19 = vpop.eup %5909 }
0x1330   : > { %v5912_v34 = vpop.eup %5911  ;;  %v3495_v3 = vmul.f32 %v5910_v19, %v7483_v1 }
0x1331   : > { %v3496_v15 = vmul.f32 %v5912_v34, %v7480_v30  ;;  %v5769_v30 = vld [vmem:[%s6836_s6 + $0x78] sm:$0xff]  }
0x1332   : > { %v3507_v11 = vmul.f32 %v7551_v9, %v3495_v3  ;;  %5154 = vmatprep.subr.bf16.mxu1 %v5769_v30 }
0x1333   : > { %v3508_v28 = vmul.f32 %v7551_v9, %v3496_v15 }
0x1334   : > { %v3519_v16 = vadd.f32 %v7559_v20, %v3507_v11 }
0x1335   : > { %v3520_v17 = vadd.f32 %v7559_v20, %v3508_v28 }
0x1337   : > { %v3557_v1 = vpack.c.bf16 %v3520_v17, %v3519_v16  ;;  %v5914_v16 = vpop.eup %5913 }
0x1338   : > { %v3497_v17 = vmul.f32 %v5914_v16, %v7494_v57 }
0x1339   : > { %3775 = vmatmul.mubr.bf16.vlgmr.msra.gmra.mxu1 %v3557_v1  ;;  %3838 = vmatmul.mubr.bf16.vlgmr.msra.gmra.mxu0 %v3557_v1 }
0x133a   : > { %3784 = vmatprep.mubr.bf16.mxu1 %v6415_v36  ;;  %3847 = vmatprep.mubr.bf16.mxu0 %v6415_v36  ;;  %v3509_v41 = vmul.f32 %v7551_v9, %v3497_v17 }
0x133b   : > { %5155 = vmatpush3.bf16.msra.mxu1 %v5771_v37  ;;  %5189 = vmatpush3.bf16.msra.mxu0 %v5772_v12 }
0x133c   : > { %5156 = vmatprep.subr.bf16.mxu1 %v5773_v5  ;;  %5190 = vmatprep.subr.bf16.mxu0 %v5774_v23  ;;  %v3521_v23 = vadd.f32 %v7559_v20, %v3509_v41 }
0x133f   : > { %5157 = vmatpush3.bf16.msra.mxu1 %v5775_v6  ;;  %5191 = vmatpush3.bf16.msra.mxu0 %v5776_v14 }
0x1340   : > { %5158 = vmatprep.subr.bf16.mxu1 %v5777_v24  ;;  %5192 = vmatprep.subr.bf16.mxu0 %v5778_v40 }
0x1343   : > { %5159 = vmatpush3.bf16.msra.mxu1 %v5779_v43  ;;  %5193 = vmatpush3.bf16.msra.mxu0 %v5780_v25 }
0x1344   : > { %5160 = vmatprep.subr.bf16.mxu1 %v5781_v26  ;;  %5194 = vmatprep.subr.bf16.mxu0 %v5782_v22 }
0x1347   : > { %5161 = vmatpush3.bf16.msra.mxu1 %v5783_v27  ;;  %5195 = vmatpush3.bf16.msra.mxu0 %v5784_v44 }
0x1348   : > { %5162 = vmatprep.subr.bf16.mxu1 %v5785_v49  ;;  %5196 = vmatprep.subr.bf16.mxu0 %v5786_v48 }
0x134b   : > { %5163 = vmatpush3.bf16.msra.mxu1 %v5787_v51  ;;  %5197 = vmatpush3.bf16.msra.mxu0 %v5788_v45 }
0x134c   : > { %5164 = vmatprep.subr.bf16.mxu1 %v5789_v46  ;;  %5198 = vmatprep.subr.bf16.mxu0 %v5790_v18 }
0x134f   : > { %5165 = vmatpush3.bf16.msra.mxu1 %v5791_v21  ;;  %5199 = vmatpush3.bf16.msra.mxu0 %v5792_v61 }
0x1350   : > { %5166 = vmatprep.subr.bf16.mxu1 %v5793_v4  ;;  %5200 = vmatprep.subr.bf16.mxu0 %v5794_v53 }
0x1353   : > { %5167 = vmatpush3.bf16.msra.mxu1 %v5795_v54  ;;  %5201 = vmatpush3.bf16.msra.mxu0 %v5796_v60 }
0x1354   : > { %5168 = vmatprep.subr.bf16.mxu1 %v5797_v47  ;;  %5202 = vmatprep.subr.bf16.mxu0 %v5798_v63 }
0x1357   : > { %5169 = vmatpush3.bf16.msra.mxu1 %v5799_v2  ;;  %5203 = vmatpush3.bf16.msra.mxu0 %v5800_v8 }
0x13a5   : > { %v3472_v58 = vpop.xlane.xlu1 %3471 }
0x13a6   : > { %v3480_v56 = vmul.f32 0.0078125, %v3472_v58 }
0x13a8   : > { %v3486_v13 = vadd.f32 1e-06, %v3480_v56 }
0x13a9   : > { %v3474_v19 = vpop.xlane.xlu0 %3473  ;;  %v3476_v34 = vpop.xlane.xlu1 %3475 }
0x13aa   : > { %5915 = vrsqrt.f32 %v3486_v13  ;;  %v3481_v3 = vmul.f32 0.0078125, %v3474_v19  ;;  %v3482_v15 = vmul.f32 0.0078125, %v3476_v34 }
0x13ac   : > { %v3487_v11 = vadd.f32 1e-06, %v3481_v3  ;;  %v3488_v28 = vadd.f32 1e-06, %v3482_v15 }
0x13ae   : > { %5917 = vrsqrt.f32 %v3487_v11 }
0x13af   : > { %5919 = vrsqrt.f32 %v3488_v28 }
0x13b7   : > { %v5916_v1 = vpop.eup %5915 }
0x13b8   : > { %v3498_v30 = vmul.f32 %v5916_v1, %v7535_v52 }
0x13ba   : > { %v3510_v37 = vmul.f32 %v7551_v9, %v3498_v30 }
0x13bb   : > { %v5918_v12 = vpop.eup %5917 }
0x13bc   : > { %v5920_v5 = vpop.eup %5919  ;;  %v3522_v6 = vadd.f32 %v7559_v20, %v3510_v37  ;;  %v3499_v14 = vmul.f32 %v5918_v12, %v7540_v33  ;;  %v3560_v33 = vld [vmem:[%s6865_s19] sm:$0xf] }
0x13bd   : > { %v3500_v24 = vmul.f32 %v5920_v5, %v7543_v7  ;;  %v3576_v7 = vsub.s32 3, %v6990_v31  ;;  %v7618_v22 = vrot.slane %v3560_v33, %v1275_v32 }
0x13be   : > { %v3558_v40 = vpack.c.bf16 %v3522_v6, %v3521_v23  ;;  %v3511_v57 = vmul.f32 %v7551_v9, %v3499_v14 }
0x13bf   : > { %v3512_v52 = vmul.f32 %v7551_v9, %v3500_v24  ;;  %v7622_v9 = vrot.slane %v3560_v33, %v1283_v39  ;;  %v7628_v27 = vrot.slane %v3560_v33, %v3576_v7 }
0x13c0   : > { %3785 = vmatmul.mubr.bf16.gmra.mxu1 %v3558_v40  ;;  %3848 = vmatmul.mubr.bf16.gmra.mxu0 %v3558_v40  ;;  %v3523_v43 = vadd.f32 %v7559_v20, %v3511_v57 }
0x13c1   : > { %3794 = vmatprep.mubr.bf16.mxu1 %v6415_v36  ;;  %3857 = vmatprep.mubr.bf16.mxu0 %v6415_v36  ;;  %v3524_v25 = vadd.f32 %v7559_v20, %v3512_v52  ;;  %v7626_v36 = vrot.slane %v3560_v33, %v1279_v35 }
0x13c3   : > { %v3559_v26 = vpack.c.bf16 %v3524_v25, %v3523_v43 }
0x13c8   : > { %3795 = vmatmul.mubr.bf16.gmra.mxu1 %v3559_v26  ;;  %3858 = vmatmul.mubr.bf16.gmra.mxu0 %v3559_v26 }
0x13f9   : > { %v3776_v20 = vpop.f32.mrf.mxu1  ;;  %v3839_v44 = vpop.f32.mrf.mxu0 }
0x13fa   : > { %v7631_v49 = vadd.f32 %v3776_v20, %v7618_v22  ;;  %v7634_v48 = vadd.f32 %v3839_v44, %v7622_v9 }
0x13fb   : > { %v3778_v32 = vpop.f32.mrf.mxu1  ;;  %v3841_v51 = vpop.f32.mrf.mxu0 }
0x13fc   : > { %v3868_v39 = vmul.f32 %v7631_v49, %v7631_v49  ;;  %v3870_v31 = vmul.f32 %v7634_v48, %v7634_v48  ;;  %v7641_v35 = vadd.f32 %v3778_v32, %v7626_v36  ;;  %v7644_v45 = vadd.f32 %v3841_v51, %v7628_v27 }
0x13fd   : > { %v3780_v46 = vpop.f32.mrf.mxu1  ;;  %v3843_v18 = vpop.f32.mrf.mxu0 }
0x13fe   : > { %v3892_v21 = vmul.f32 %v3868_v39, %v7631_v49  ;;  %v3894_v61 = vmul.f32 %v3870_v31, %v7634_v48  ;;  %v3869_v10 = vmul.f32 %v7641_v35, %v7641_v35  ;;  %v3871_v4 = vmul.f32 %v7644_v45, %v7644_v45 }
0x13ff   : > { %v7653_v53 = vadd.f32 %v3780_v46, %v7618_v22  ;;  %v7656_v62 = vadd.f32 %v3843_v18, %v7622_v9  ;;  %v3782_v54 = vpop.f32.mrf.mxu1  ;;  %v3845_v60 = vpop.f32.mrf.mxu0 }
0x1400   : > { %v3916_v47 = vmul.f32 0.044715, %v3892_v21  ;;  %v3918_v63 = vmul.f32 0.044715, %v3894_v61  ;;  %v3893_v50 = vmul.f32 %v3869_v10, %v7641_v35  ;;  %v3895_v2 = vmul.f32 %v3871_v4, %v7644_v45 }
0x1401   : > { %v3872_v8 = vmul.f32 %v7653_v53, %v7653_v53  ;;  %v3874_v58 = vmul.f32 %v7656_v62, %v7656_v62  ;;  %v7665_v56 = vadd.f32 %v3782_v54, %v7626_v36  ;;  %v7668_v13 = vadd.f32 %v3845_v60, %v7628_v27 }
0x1402   : > { %v3940_v19 = vadd.f32 %v3916_v47, %v7631_v49  ;;  %v3942_v34 = vadd.f32 %v3918_v63, %v7634_v48  ;;  %v3917_v3 = vmul.f32 0.044715, %v3893_v50  ;;  %v3919_v15 = vmul.f32 0.044715, %v3895_v2 }
0x1403   : > { %v3896_v11 = vmul.f32 %v3872_v8, %v7653_v53  ;;  %v3898_v28 = vmul.f32 %v3874_v58, %v7656_v62  ;;  %v3873_v16 = vmul.f32 %v7665_v56, %v7665_v56  ;;  %v3875_v17 = vmul.f32 %v7668_v13, %v7668_v13 }
0x1404   : > { %v3964_v1 = vmul.f32 0.7978846, %v3940_v19  ;;  %v3966_v30 = vmul.f32 0.7978846, %v3942_v34  ;;  %v3941_v41 = vadd.f32 %v3917_v3, %v7641_v35  ;;  %v3943_v37 = vadd.f32 %v3919_v15, %v7644_v45 }
0x1405   : > { %v3920_v12 = vmul.f32 0.044715, %v3896_v11  ;;  %v3922_v5 = vmul.f32 0.044715, %v3898_v28  ;;  %v3897_v23 = vmul.f32 %v3873_v16, %v7665_v56  ;;  %v3899_v6 = vmul.f32 %v3875_v17, %v7668_v13 }
0x1406   : > { %5921 = vtanh.f32 %v3964_v1  ;;  %v3965_v14 = vmul.f32 0.7978846, %v3941_v41  ;;  %v3967_v24 = vmul.f32 0.7978846, %v3943_v37 }
0x1407   : > { %5923 = vtanh.f32 %v3966_v30  ;;  %v3944_v40 = vadd.f32 %v3920_v12, %v7653_v53  ;;  %v3946_v57 = vadd.f32 %v3922_v5, %v7656_v62  ;;  %v3921_v52 = vmul.f32 0.044715, %v3897_v23 }
0x1408   : > { %5925 = vtanh.f32 %v3965_v14  ;;  %v3923_v43 = vmul.f32 0.044715, %v3899_v6 }
0x1409   : > { %5927 = vtanh.f32 %v3967_v24  ;;  %v3968_v25 = vmul.f32 0.7978846, %v3944_v40  ;;  %v3970_v26 = vmul.f32 0.7978846, %v3946_v57  ;;  %v3945_v33 = vadd.f32 %v3921_v52, %v7665_v56 }
0x140a   : > { %v3947_v7 = vadd.f32 %v3923_v43, %v7668_v13 }
0x140b   : > { %5929 = vtanh.f32 %v3968_v25  ;;  %v3969_v20 = vmul.f32 0.7978846, %v3945_v33 }
0x140c   : > { %5931 = vtanh.f32 %v3970_v26  ;;  %v3971_v44 = vmul.f32 0.7978846, %v3947_v7 }
0x140d   : > { %5933 = vtanh.f32 %v3969_v20 }
0x140e   : > { %5935 = vtanh.f32 %v3971_v44 }
0x1413   : > { %v5922_v32 = vpop.eup %5921 }
0x1414   : > { %v5924_v51 = vpop.eup %5923  ;;  %v4012_v21 = vadd.f32 1.0, %v5922_v32 }
0x1415   : > { %v5926_v39 = vpop.eup %5925  ;;  %v4014_v4 = vadd.f32 1.0, %v5924_v51 }
0x1416   : > { %v5928_v31 = vpop.eup %5927  ;;  %v4013_v46 = vadd.f32 1.0, %v5926_v39  ;;  %v4036_v58 = vmul.f32 0.5, %v4012_v21 }
0x1417   : > { %v4015_v61 = vadd.f32 1.0, %v5928_v31  ;;  %v4038_v15 = vmul.f32 0.5, %v4014_v4 }
0x1418   : > { %v5930_v18 = vpop.eup %5929  ;;  %v4037_v8 = vmul.f32 0.5, %v4013_v46  ;;  %v4060_v41 = vmul.f32 %v4036_v58, %v7631_v49 }
0x1419   : > { %v5932_v10 = vpop.eup %5931  ;;  %v4016_v54 = vadd.f32 1.0, %v5930_v18  ;;  %v4039_v3 = vmul.f32 0.5, %v4015_v61  ;;  %v4062_v5 = vmul.f32 %v4038_v15, %v7634_v48 }
0x141a   : > { %v5934_v60 = vpop.eup %5933  ;;  %v4018_v47 = vadd.f32 1.0, %v5932_v10  ;;  %v4061_v1 = vmul.f32 %v4037_v8, %v7641_v35 }
0x141b   : > { %v5936_v63 = vpop.eup %5935  ;;  %v4040_v50 = vmul.f32 0.5, %v4016_v54  ;;  %v4017_v2 = vadd.f32 1.0, %v5934_v60  ;;  %v4063_v37 = vmul.f32 %v4039_v3, %v7644_v45 }
0x141c   : > { %v4042_v19 = vmul.f32 0.5, %v4018_v47  ;;  %v4019_v34 = vadd.f32 1.0, %v5936_v63 }
0x141d   : > { %v4041_v11 = vmul.f32 0.5, %v4017_v2  ;;  %v4064_v28 = vmul.f32 %v4040_v50, %v7653_v53 }
0x141e   : > { %v4043_v16 = vmul.f32 0.5, %v4019_v34  ;;  %v4066_v17 = vmul.f32 %v4042_v19, %v7656_v62 }
0x141f   : > { %v4065_v30 = vmul.f32 %v4041_v11, %v7665_v56  ;;  %v4148_v6 = vpack.c.bf16 %v4064_v28, %v4060_v41 }
0x1420   : > { %v4067_v12 = vmul.f32 %v4043_v16, %v7668_v13  ;;  %v4150_v24 = vpack.c.bf16 %v4066_v17, %v4062_v5 }
0x1421   : > { %v4149_v23 = vpack.c.bf16 %v4065_v30, %v4061_v1 }
0x1422   : > { %v4151_v14 = vpack.c.bf16 %v4067_v12, %v4063_v37 }
0x1423   : > { %4384 = vmatprep.mubr.bf16.mxu1 %v4149_v23 }
0x1424   : > { %4441 = vmatprep.mubr.bf16.mxu0 %v4151_v14  ;;  %4385 = vmatmul.mubr.bf16.vlgmr.msra.gmra.mxu1 %v4148_v6 }
0x1425   : > { %4442 = vmatmul.mubr.bf16.vlgmr.msra.gmra.mxu0 %v4150_v24 }
0x1480   : > { %v3786_v53 = vpop.f32.mrf.mxu1  ;;  %v3849_v35 = vpop.f32.mrf.mxu0 }
0x1481   : > { %v7695_v62 = vadd.f32 %v3786_v53, %v7618_v22  ;;  %v7698_v49 = vadd.f32 %v3849_v35, %v7622_v9 }
0x1482   : > { %v3788_v45 = vpop.f32.mrf.mxu1  ;;  %v3851_v56 = vpop.f32.mrf.mxu0 }
0x1483   : > { %v3876_v48 = vmul.f32 %v7695_v62, %v7695_v62  ;;  %v3878_v13 = vmul.f32 %v7698_v49, %v7698_v49  ;;  %v7705_v40 = vadd.f32 %v3788_v45, %v7626_v36  ;;  %v7708_v57 = vadd.f32 %v3851_v56, %v7628_v27 }
0x1484   : > { %v3790_v52 = vpop.f32.mrf.mxu1  ;;  %v3853_v43 = vpop.f32.mrf.mxu0 }
0x1485   : > { %v3900_v25 = vmul.f32 %v3876_v48, %v7695_v62  ;;  %v3902_v26 = vmul.f32 %v3878_v13, %v7698_v49  ;;  %v3877_v33 = vmul.f32 %v7705_v40, %v7705_v40  ;;  %v3879_v7 = vmul.f32 %v7708_v57, %v7708_v57 }
0x1486   : > { %v7717_v20 = vadd.f32 %v3790_v52, %v7618_v22  ;;  %v7720_v44 = vadd.f32 %v3853_v43, %v7622_v9  ;;  %v3792_v32 = vpop.f32.mrf.mxu1  ;;  %v3855_v51 = vpop.f32.mrf.mxu0 }
0x1487   : > { %v3924_v39 = vmul.f32 0.044715, %v3900_v25  ;;  %v3926_v31 = vmul.f32 0.044715, %v3902_v26  ;;  %v3901_v46 = vmul.f32 %v3877_v33, %v7705_v40  ;;  %v3903_v18 = vmul.f32 %v3879_v7, %v7708_v57 }
0x1488   : > { %v3880_v21 = vmul.f32 %v7717_v20, %v7717_v20  ;;  %v3882_v61 = vmul.f32 %v7720_v44, %v7720_v44  ;;  %v7729_v10 = vadd.f32 %v3792_v32, %v7626_v36  ;;  %v7732_v4 = vadd.f32 %v3855_v51, %v7628_v27  ;;  %v3796_v54 = vpop.f32.mrf.mxu1  ;;  %v3859_v60 = vpop.f32.mrf.mxu0 }
0x1489   : > { %v3948_v47 = vadd.f32 %v3924_v39, %v7695_v62  ;;  %v3950_v63 = vadd.f32 %v3926_v31, %v7698_v49  ;;  %v3925_v50 = vmul.f32 0.044715, %v3901_v46  ;;  %v3927_v2 = vmul.f32 0.044715, %v3903_v18 }
0x148a   : > { %v3904_v8 = vmul.f32 %v3880_v21, %v7717_v20  ;;  %v3906_v58 = vmul.f32 %v3882_v61, %v7720_v44  ;;  %v3881_v19 = vmul.f32 %v7729_v10, %v7729_v10  ;;  %v3883_v34 = vmul.f32 %v7732_v4, %v7732_v4  ;;  %v3798_v16 = vpop.f32.mrf.mxu1  ;;  %v3861_v37 = vpop.f32.mrf.mxu0 }
0x148b   : > { %v3972_v3 = vmul.f32 0.7978846, %v3948_v47  ;;  %v3974_v15 = vmul.f32 0.7978846, %v3950_v63  ;;  %v3949_v11 = vadd.f32 %v3925_v50, %v7705_v40  ;;  %v3951_v28 = vadd.f32 %v3927_v2, %v7708_v57 }
0x148c   : > { %v3928_v17 = vmul.f32 0.044715, %v3904_v8  ;;  %v3930_v1 = vmul.f32 0.044715, %v3906_v58  ;;  %v3905_v30 = vmul.f32 %v3881_v19, %v7729_v10  ;;  %v3907_v41 = vmul.f32 %v3883_v34, %v7732_v4  ;;  %v3800_v56 = vpop.f32.mrf.mxu1  ;;  %v3863_v43 = vpop.f32.mrf.mxu0 }
0x148d   : > { %5937 = vtanh.f32 %v3972_v3  ;;  %v3973_v12 = vmul.f32 0.7978846, %v3949_v11  ;;  %v3975_v5 = vmul.f32 0.7978846, %v3951_v28  ;;  %v7747_v23 = vadd.f32 %v3796_v54, %v7618_v22 }
0x148e   : > { %5939 = vtanh.f32 %v3974_v15  ;;  %v3952_v6 = vadd.f32 %v3928_v17, %v7717_v20  ;;  %v3954_v14 = vadd.f32 %v3930_v1, %v7720_v44  ;;  %v3929_v24 = vmul.f32 0.044715, %v3905_v30  ;;  %v3802_v21 = vpop.f32.mrf.mxu1  ;;  %v3865_v47 = vpop.f32.mrf.mxu0 }
0x148f   : > { %5941 = vtanh.f32 %v3973_v12  ;;  %v3931_v53 = vmul.f32 0.044715, %v3907_v41  ;;  %v3884_v35 = vmul.f32 %v7747_v23, %v7747_v23  ;;  %v7754_v45 = vadd.f32 %v3859_v60, %v7622_v9 }
0x1490   : > { %5943 = vtanh.f32 %v3975_v5  ;;  %v3976_v48 = vmul.f32 0.7978846, %v3952_v6  ;;  %v3978_v13 = vmul.f32 0.7978846, %v3954_v14  ;;  %v3953_v52 = vadd.f32 %v3929_v24, %v7729_v10 }
0x1491   : > { %v3955_v25 = vadd.f32 %v3931_v53, %v7732_v4  ;;  %v3908_v26 = vmul.f32 %v3884_v35, %v7747_v23  ;;  %v3886_v33 = vmul.f32 %v7754_v45, %v7754_v45  ;;  %v7762_v7 = vadd.f32 %v3798_v16, %v7626_v36 }
0x1492   : > { %5945 = vtanh.f32 %v3976_v48  ;;  %v3977_v32 = vmul.f32 0.7978846, %v3953_v52  ;;  %v7765_v51 = vadd.f32 %v3861_v37, %v7628_v27  ;;  %v7768_v39 = vadd.f32 %v3800_v56, %v7618_v22 }
0x1493   : > { %5947 = vtanh.f32 %v3978_v13  ;;  %v3979_v31 = vmul.f32 0.7978846, %v3955_v25  ;;  %v3932_v46 = vmul.f32 0.044715, %v3908_v26  ;;  %v3910_v18 = vmul.f32 %v3886_v33, %v7754_v45 }
0x1494   : > { %5949 = vtanh.f32 %v3977_v32  ;;  %v3885_v61 = vmul.f32 %v7762_v7, %v7762_v7  ;;  %v3887_v54 = vmul.f32 %v7765_v51, %v7765_v51  ;;  %v3888_v60 = vmul.f32 %v7768_v39, %v7768_v39 }
0x1495   : > { %5951 = vtanh.f32 %v3979_v31  ;;  %v3956_v22 = vadd.f32 %v3932_v46, %v7747_v23  ;;  %v3934_v63 = vmul.f32 0.044715, %v3910_v18  ;;  %v7779_v50 = vadd.f32 %v3863_v43, %v7622_v9 }
0x1496   : > { %v3909_v2 = vmul.f32 %v3885_v61, %v7762_v7  ;;  %v3911_v8 = vmul.f32 %v3887_v54, %v7765_v51  ;;  %v3912_v58 = vmul.f32 %v3888_v60, %v7768_v39  ;;  %v7785_v19 = vadd.f32 %v3802_v21, %v7626_v36 }
0x1497   : > { %v3980_v34 = vmul.f32 0.7978846, %v3956_v22  ;;  %v3958_v3 = vadd.f32 %v3934_v63, %v7754_v45  ;;  %v3890_v15 = vmul.f32 %v7779_v50, %v7779_v50  ;;  %v7791_v11 = vadd.f32 %v3865_v47, %v7628_v27 }
0x1498   : > { %v3933_v9 = vmul.f32 0.044715, %v3909_v2  ;;  %v3935_v28 = vmul.f32 0.044715, %v3911_v8  ;;  %v3936_v16 = vmul.f32 0.044715, %v3912_v58  ;;  %v3889_v17 = vmul.f32 %v7785_v19, %v7785_v19 }
0x1499   : > { %v3982_v1 = vmul.f32 0.7978846, %v3958_v3  ;;  %v3914_v30 = vmul.f32 %v3890_v15, %v7779_v50  ;;  %v3891_v36 = vmul.f32 %v7791_v11, %v7791_v11  ;;  %5953 = vtanh.f32 %v3980_v34 }
0x149a   : > { %v5938_v41 = vpop.eup %5937  ;;  %v3957_v37 = vadd.f32 %v3933_v9, %v7762_v7  ;;  %v3959_v12 = vadd.f32 %v3935_v28, %v7765_v51  ;;  %v3960_v27 = vadd.f32 %v3936_v16, %v7768_v39  ;;  %v3913_v5 = vmul.f32 %v3889_v17, %v7785_v19 }
0x149b   : > { %v5940_v6 = vpop.eup %5939  ;;  %v3938_v14 = vmul.f32 0.044715, %v3914_v30  ;;  %v3915_v24 = vmul.f32 %v3891_v36, %v7791_v11  ;;  %5955 = vtanh.f32 %v3982_v1  ;;  %v4020_v32 = vadd.f32 1.0, %v5938_v41 }
0x149c   : > { %v5942_v53 = vpop.eup %5941  ;;  %v3981_v35 = vmul.f32 0.7978846, %v3957_v37  ;;  %v3983_v56 = vmul.f32 0.7978846, %v3959_v12  ;;  %v3984_v48 = vmul.f32 0.7978846, %v3960_v27 }
0x149d   : > { %v5944_v13 = vpop.eup %5943  ;;  %v3962_v52 = vadd.f32 %v3938_v14, %v7779_v50  ;;  %v3937_v43 = vmul.f32 0.044715, %v3913_v5  ;;  %v3939_v25 = vmul.f32 0.044715, %v3915_v24  ;;  %v4021_v26 = vadd.f32 1.0, %v5942_v53 }
0x149e   : > { %5957 = vtanh.f32 %v3981_v35  ;;  %v4023_v33 = vadd.f32 1.0, %v5944_v13  ;;  %v4022_v60 = vadd.f32 1.0, %v5940_v6  ;;  %v4044_v34 = vmul.f32 0.5, %v4020_v32 }
0x149f   : > { %v5946_v31 = vpop.eup %5945  ;;  %5959 = vtanh.f32 %v3983_v56  ;;  %v3986_v46 = vmul.f32 0.7978846, %v3962_v52  ;;  %v3961_v18 = vadd.f32 %v3937_v43, %v7785_v19  ;;  %v3963_v21 = vadd.f32 %v3939_v25, %v7791_v11 }
0x14a0   : > { %v5948_v61 = vpop.eup %5947  ;;  %5961 = vtanh.f32 %v3984_v48  ;;  %v4024_v54 = vadd.f32 1.0, %v5946_v31  ;;  %v4045_v58 = vmul.f32 0.5, %v4021_v26  ;;  %v4047_v9 = vmul.f32 0.5, %v4023_v33 }
0x14a1   : > { %v5950_v47 = vpop.eup %5949  ;;  %5963 = vtanh.f32 %v3986_v46  ;;  %v3985_v22 = vmul.f32 0.7978846, %v3961_v18  ;;  %v3987_v63 = vmul.f32 0.7978846, %v3963_v21  ;;  %v4026_v28 = vadd.f32 1.0, %v5948_v61 }
0x14a2   : > { %v5952_v2 = vpop.eup %5951  ;;  %v4025_v8 = vadd.f32 1.0, %v5950_v47  ;;  %v4048_v3 = vmul.f32 0.5, %v4024_v54  ;;  %v4046_v17 = vmul.f32 0.5, %v4022_v60  ;;  %v4069_v41 = vmul.f32 %v4045_v58, %v7705_v40 }
0x14a3   : > { %5965 = vtanh.f32 %v3985_v22  ;;  %v4027_v15 = vadd.f32 1.0, %v5952_v2  ;;  %v4050_v36 = vmul.f32 0.5, %v4026_v28  ;;  %v4071_v12 = vmul.f32 %v4047_v9, %v7708_v57 }
0x14a4   : > { %5967 = vtanh.f32 %v3987_v63  ;;  %v4049_v16 = vmul.f32 0.5, %v4025_v8  ;;  %v4072_v30 = vmul.f32 %v4048_v3, %v7717_v20  ;;  %v4068_v5 = vmul.f32 %v4044_v34, %v7695_v62 }
0x14a5   : > { %v4051_v1 = vmul.f32 0.5, %v4027_v15  ;;  %v4074_v6 = vmul.f32 %v4050_v36, %v7720_v44  ;;  %v4070_v24 = vmul.f32 %v4046_v17, %v7698_v49 }
0x14a6   : > { %v4073_v37 = vmul.f32 %v4049_v16, %v7729_v10  ;;  %v5954_v53 = vpop.eup %5953  ;;  %v4152_v56 = vpack.c.bf16 %v4072_v30, %v4068_v5 }
0x14a7   : > { %v4075_v27 = vmul.f32 %v4051_v1, %v7732_v4  ;;  %v4154_v48 = vpack.c.bf16 %v4074_v6, %v4070_v24  ;;  %v4028_v52 = vadd.f32 1.0, %v5954_v53 }
0x14a8   : > { %v4153_v14 = vpack.c.bf16 %v4073_v37, %v4069_v41  ;;  %v5956_v20 = vpop.eup %5955 }
0x14a9   : > { %v4155_v35 = vpack.c.bf16 %v4075_v27, %v4071_v12  ;;  %v4030_v43 = vadd.f32 1.0, %v5956_v20  ;;  %v4052_v61 = vmul.f32 0.5, %v4028_v52 }
0x14aa   : > { %4392 = vmatprep.mubr.bf16.mxu1 %v4153_v14 }
0x14ab   : > { %v5958_v40 = vpop.eup %5957  ;;  %4449 = vmatprep.mubr.bf16.mxu0 %v4155_v35  ;;  %4393 = vmatmul.mubr.bf16.gmra.mxu1 %v4152_v56  ;;  %v4054_v60 = vmul.f32 0.5, %v4030_v43  ;;  %v4076_v3 = vmul.f32 %v4052_v61, %v7747_v23 }
0x14ac   : > { %v5960_v10 = vpop.eup %5959  ;;  %4450 = vmatmul.mubr.bf16.gmra.mxu0 %v4154_v48  ;;  %v4029_v4 = vadd.f32 1.0, %v5958_v40 }
0x14ad   : > { %v5962_v57 = vpop.eup %5961  ;;  %v4031_v62 = vadd.f32 1.0, %v5960_v10  ;;  %v4078_v9 = vmul.f32 %v4054_v60, %v7754_v45  ;;  %v5033_v45 = vld [vmem:[%s938_s17] ss:$0 sm:$0xff] }
0x14ae   : > { %v5964_v13 = vpop.eup %5963  ;;  %v4032_v44 = vadd.f32 1.0, %v5962_v57  ;;  %v4053_v31 = vmul.f32 0.5, %v4029_v4 }
0x14af   : > { %v4034_v25 = vadd.f32 1.0, %v5964_v13  ;;  %v4055_v21 = vmul.f32 0.5, %v4031_v62 }
0x14b0   : > { %v5966_v49 = vpop.eup %5965  ;;  %v4056_v26 = vmul.f32 0.5, %v4032_v44  ;;  %v4077_v63 = vmul.f32 %v4053_v31, %v7762_v7 }
0x14b1   : > { %v5968_v33 = vpop.eup %5967  ;;  %v4033_v32 = vadd.f32 1.0, %v5966_v49  ;;  %v4058_v46 = vmul.f32 0.5, %v4034_v25  ;;  %v4079_v58 = vmul.f32 %v4055_v21, %v7765_v51 }
0x14b2   : > { %v4035_v18 = vadd.f32 1.0, %v5968_v33  ;;  %v4080_v22 = vmul.f32 %v4056_v26, %v7768_v39 }
0x14b3   : > { %v4057_v54 = vmul.f32 0.5, %v4033_v32  ;;  %v4082_v8 = vmul.f32 %v4058_v46, %v7779_v50 }
0x14b4   : > { %v4059_v47 = vmul.f32 0.5, %v4035_v18  ;;  %v4156_v16 = vpack.c.bf16 %v4080_v22, %v4076_v3 }
0x14b5   : > { %v4081_v2 = vmul.f32 %v4057_v54, %v7785_v19  ;;  %v4158_v39 = vpack.c.bf16 %v4082_v8, %v4078_v9 }
0x14b6   : > { %v4083_v34 = vmul.f32 %v4059_v47, %v7791_v11 }
0x14b7   : > { %v4157_v15 = vpack.c.bf16 %v4081_v2, %v4077_v63 }
0x14b8   : > { %v4159_v28 = vpack.c.bf16 %v4083_v34, %v4079_v58 }
0x14b9   : > { %4400 = vmatprep.mubr.bf16.mxu1 %v4157_v15 }
0x14ba   : > { %4457 = vmatprep.mubr.bf16.mxu0 %v4159_v28  ;;  %4401 = vmatmul.mubr.bf16.gmra.mxu1 %v4156_v16 }
0x14bb   : > { %4458 = vmatmul.mubr.bf16.gmra.mxu0 %v4158_v39 }
0x14e4   : > { %v5170_v7 = vpop.f32.mrf.mxu1 }
0x14e5   : > { %v5204_v19 = vpop.f32.mrf.mxu0 }
0x14e6   : > { %v5171_v50 = vpop.f32.mrf.mxu1 }
0x14e7   : > { %v5172_v17 = vadd.f32 %v5171_v50, %v5170_v7  ;;  %v5205_v51 = vpop.f32.mrf.mxu0 }
0x14e8   : > { %v5206_v1 = vadd.f32 %v5205_v51, %v5204_v19  ;;  %v5173_v11 = vpop.f32.mrf.mxu1 }
0x14e9   : > { %v5207_v30 = vpop.f32.mrf.mxu0 }
0x14ea   : > { %v4444_v23 = vadd.f32 %v5206_v1, %v5172_v17  ;;  %v5174_v36 = vpop.f32.mrf.mxu1 }
0x14eb   : > { %v5175_v41 = vadd.f32 %v5174_v36, %v5173_v11  ;;  %v5208_v37 = vpop.f32.mrf.mxu0 }
0x14ec   : > { %v4466_v12 = vadd.f32 %v4444_v23, %v7454_v29  ;;  %v5209_v27 = vadd.f32 %v5208_v37, %v5207_v30 }
0x14ee   : > { %v4479_v5 = vadd.f32 %v5033_v45, %v4466_v12  ;;  %v4447_v6 = vadd.f32 %v5209_v27, %v5175_v41 }
0x14f0   : > { %4485 = vst [vmem:[#allocation2 + $0x28] sm:$0xff] %v4479_v5  ;;  %v4467_v14 = vadd.f32 %v4447_v6, %v7445_v59 }
0x14f2   : > { %v4480_v24 = vadd.f32 %v5033_v45, %v4467_v14 }
0x14f4   : > { %4486 = vst [vmem:[#allocation2 + $0x10] sm:$0xff] %v4480_v24 }
0x156b   : > { %v5176_v53 = vpop.f32.mrf.mxu1 }
0x156c   : > { %v5210_v35 = vpop.f32.mrf.mxu0 }
0x156d   : > { %v5177_v56 = vpop.f32.mrf.mxu1 }
0x156e   : > { %v5178_v20 = vadd.f32 %v5177_v56, %v5176_v53  ;;  %v5211_v48 = vpop.f32.mrf.mxu0 }
0x156f   : > { %v5212_v40 = vadd.f32 %v5211_v48, %v5210_v35  ;;  %v5179_v10 = vpop.f32.mrf.mxu1 }
0x1570   : > { %v5213_v57 = vpop.f32.mrf.mxu0 }
0x1571   : > { %v4452_v4 = vadd.f32 %v5212_v40, %v5178_v20  ;;  %v5180_v13 = vpop.f32.mrf.mxu1 }
0x1572   : > { %v5181_v62 = vadd.f32 %v5180_v13, %v5179_v10  ;;  %v5214_v29 = vpop.f32.mrf.mxu0 }
0x1573   : > { %v4468_v52 = vadd.f32 %v4452_v4, %v7450_v38  ;;  %v5215_v44 = vadd.f32 %v5214_v29, %v5213_v57 }
0x1575   : > { %v4481_v43 = vadd.f32 %v5033_v45, %v4468_v52  ;;  %v4455_v25 = vadd.f32 %v5215_v44, %v5181_v62 }
0x1577   : > { %4487 = vst [vmem:[#allocation2 + $0x8] sm:$0xff] %v4481_v43  ;;  %v4469_v59 = vadd.f32 %v4455_v25, %v7476_v55 }
0x1579   : > { %v4482_v49 = vadd.f32 %v5033_v45, %v4469_v59 }
0x157a   : > { %v5182_v26 = vpop.f32.mrf.mxu1 }
0x157b   : > { %4488 = vst [vmem:[#allocation2] sm:$0xff] %v4482_v49  ;;  %v5216_v33 = vpop.f32.mrf.mxu0 }
0x157c   : > { %v5183_v32 = vpop.f32.mrf.mxu1 }
0x157d   : > { %v5184_v31 = vadd.f32 %v5183_v32, %v5182_v26  ;;  %v5217_v46 = vpop.f32.mrf.mxu0 }
0x157e   : > { %v5218_v18 = vadd.f32 %v5217_v46, %v5216_v33  ;;  %v5185_v21 = vpop.f32.mrf.mxu1 }
0x157f   : > { %v5219_v61 = vpop.f32.mrf.mxu0 }
0x1580   : > { %v4460_v54 = vadd.f32 %v5218_v18, %v5184_v31  ;;  %v5186_v60 = vpop.f32.mrf.mxu1 }
0x1581   : > { %v5187_v47 = vadd.f32 %v5186_v60, %v5185_v21  ;;  %v5220_v38 = vpop.f32.mrf.mxu0 }
0x1582   : > { %v4470_v22 = vadd.f32 %v4460_v54, %v7489_v0  ;;  %v5221_v63 = vadd.f32 %v5220_v38, %v5219_v61 }
0x1584   : > { %v4483_v2 = vadd.f32 %v5033_v45, %v4470_v22  ;;  %v4463_v8 = vadd.f32 %v5221_v63, %v5187_v47 }
0x1586   : > { %4489 = vst [vmem:[#allocation2 + $0x18] sm:$0xff] %v4483_v2  ;;  %v4471_v55 = vadd.f32 %v4463_v8, %v7486_v42  ;;  %4494 = sbr.rel (%p5034_p12) target bundleno = 5827 (0x16c3), region = 136 }
0x1588   : > { %v4484_v58 = vadd.f32 %v5033_v45, %v4471_v55 }
0x158a   : > { %4490 = vst [vmem:[#allocation2 + $0x20] sm:$0xff] %v4484_v58 }
0x158b   : > { %v4496_v34 = vrot.slane %v4482_v49, 7  ;;  %vm4498_vm6 = vcmask 1040384   ;;  %vm4502_vm7 = vcmask 1041408   ;;  %v5035_v17 = vld [vmem:[%s8037_s5] ss:$0 sm:$0xff] }
0x158c   : > { %v5036_v1 = vld [vmem:[%s8038_s30] ss:$0 sm:$0xff] }
0x158d   : > { %v4499_v3 = vsel %vm4498_vm6, %v4479_v5, %v4496_v34 }
0x158e   : > { %v4503_v15 = vsel %vm4502_vm7, %v4499_v3, 0.0 }
0x158f   : > { %4504 = vadd.xlane.f32.xlu0 %v4503_v15 }
0x1618   : > { %v4505_v9 = vpop.xlane.xlu0 %4504 }
0x1619   : > { %v4506_v0 = vmul.f32 0.0078125, %v4505_v9 }
0x161b   : > { %v4507_v28 = vsub.f32 %v4499_v3, %v4506_v0 }
0x161d   : > { %v4508_v16 = vmul.f32 %v4507_v28, %v4507_v28 }
0x161f   : > { %v4509_v39 = vsel %vm4502_vm7, %v4508_v16, 0.0 }
0x1620   : > { %4510 = vadd.xlane.f32.xlu0 %v4509_v39 }
0x16a9   : > { %v4511_v7 = vpop.xlane.xlu0 %4510 }
0x16aa   : > { %v4512_v42 = vmul.f32 0.0078125, %v4511_v7 }
0x16ac   : > { %v4513_v19 = vadd.f32 1e-06, %v4512_v42 }
0x16ae   : > { %5975 = vrsqrt.f32 %v4513_v19 }
0x16bb   : > { %v5976_v50 = vpop.eup %5975 }
0x16bc   : > { %v4515_v51 = vmul.f32 %v5976_v50, %v4507_v28 }
0x16be   : > { %v4522_v11 = vmul.f32 %v5035_v17, %v4515_v51 }
0x16c0   : > { %v4529_v30 = vadd.f32 %v5036_v1, %v4522_v11 }
0x16c2   : > { %4530 = vst [vmem:[%s6871_s12] sm:$0x3] %v4529_v30 }
0x16c3 PF: > { %s8039_s11 = sld [smem:[#allocation34_spill]]  ;;  %s4545_s18 = sshll.u32 %s6871_s12, 4  ;;  %s4546_s18 = int_to_ptr.vmem [resolvable:$true] %s4545_s18 }
0x16c4   : > { %s8040_s28 = sld [smem:[#allocation62_spill]]  ;;  %s4532_s8 = scalar_lea.sflag [#allocation5], %s6793_s2 }
0x16c5   : > { %s6253_s7 = scalar_lea.vmem %s4546_s18, 32  ;;  %s6420_s26 = smov [#allocation20]  }
0x16c6   : > { %p6254_p8 = scmp.ne.s32.totalorder %s4546_s18, %s6253_s7  ;;  %s6257_s20 = sshll.u32 %s6420_s26, 4  ;;  %s6258_s20 = int_to_ptr.vmem [resolvable:$false] %s6257_s20 }
0x16c7   : > { %s6259_s21 = scalar_lea.vmem %s6258_s20, 64  ;;  %p6260_p4 = scmp.lt.s32.totalorder %s4546_s18, %s6258_s20 }
0x16c8   : > { %p6255_p6 = pnand %p6254_p8, %p6705_p9  ;;  %p6261_p1 = scmp.lt.s32.totalorder %s6259_s21, %s6253_s7 }
0x16c9   : > { %s5038_s19 = sshll.u32 %s8039_s11, 5 }
0x16ca   : > { %s8041_s13 = smov %s8040_s28  ;;  %s4543_s29 = scalar_lea.hbm %s8040_s28, %s5038_s19 }
0x16cb   : > { %p6256_p7 = pneg %p6255_p6  ;;  %p6262_p10 = por %p6261_p1, %p6260_p4 }
0x16cd   : > { %p6263_p3 = pnand %p6262_p10, %p6256_p7 }
0x16cf   : > { %6266 = shalt.err (!%p6263_p3)
}
0x16d0   : > { %s6267_s25 = scalar_lea.hbm %s4543_s29, 32  ;;  %s6271_s23 = scalar_lea.hbm %s8041_s13, 64 }
0x16d1   : > { %p6268_p11 = scmp.ne.s32.totalorder %s4543_s29, %s6267_s25  ;;  %p6272_p2 = scmp.lt.s32.totalorder %s4543_s29, %s8041_s13 }
0x16d2   : > { %p6273_p5 = scmp.lt.s32.totalorder %s6271_s23, %s6267_s25 }
0x16d3   : > { %p6269_p13 = pnand %p6268_p11, %p6705_p9 }
0x16d4   : > { %p6274_p12 = por %p6273_p5, %p6272_p2 }
0x16d5   : > { %p6270_p0 = pneg %p6269_p13 }
0x16d7   : > { %p6275_p8 = pnand %p6274_p12, %p6270_p0 }
0x16d9   : > { %6278 = shalt.err (!%p6275_p8)
}
0x16da   : > { %5520 = dma.vmem_to_hbm [thread:$0]  (%p6705_p9), %s4546_s18, 32, %s4543_s29, %s4532_s8  }
0x16db PF: > { %s8042_s15 = sld [smem:[#allocation30_spill]]  ;;  %p5563_p6 = scmp.ge.s32.totalorder %s6393_s1, 2 }
0x16dc   : > { %s8043_s6 = sld [smem:[#allocation39_spill]] }
0x16e1   : > { %s4557_s14 = sand.u32 1, %s8042_s15  }
0x16e2   : > { %p8044_p7 = scmp.ne.s32.totalorder %s8043_s6, 0  ;;  %s4558_s16 = scalar_lea.sflag [#allocation5], %s4557_s14 }
0x16e4   : > { %p5555_p4 = pnand %p5563_p6, %p8044_p7 }
0x16e6   : > { %p5556_p1 = pneg %p5555_p4 }
0x16e8   : > { %6348 = dma.done.wait (%p5556_p1), %s4558_s16, 32  }
0x16e9   : > { %6350 = vsyncadd (%p5556_p1), %s4558_s16, 4294967264  ;;  %s46_s1 = sadd.s32 1, %s6393_s1   ;;  %s8045_s24 = sld [smem:[#allocation28_spill]] }
0x16ea   : > { %p43_p10 = scmp.ge.s32.totalorder %s46_s1, 6   ;;  %s8046_s25 = sld [smem:[#allocation29_spill]] }
0x16eb   : > { %s8047_s26 = sld [smem:[#allocation43_spill]] }
0x16ec   : > { %s8048_s27 = sld [smem:[#allocation31_spill]] }
0x16ed   : > { %s8049_s28 = sld [smem:[#allocation32_spill]] }
0x16ee   : > { %s8050_s29 = sld [smem:[#allocation44_spill]]  ;;  %45 = sbr.rel (!%p43_p10) target bundleno = 37 (0x25), region = 249 }
0x16ef   : > { %s8051_s0 = sld [smem:[#allocation35_spill]] }
0x16f0   : > { %s8052_s30 = sld [smem:[#allocation36_spill]] }
0x16f1   : > { %s8053_s18 = sld [smem:[#allocation41_spill]] }
0x16f2   : > { %s8054_s19 = sld [smem:[#allocation42_spill]] }
0x16f3   :  { %4563 = vsyncpa [#allocation4], 1 }
0x16f4   :  { %4565 = vsyncpa [#allocation4 + $0x1], 1 }
0x16f5   :  { %4566 = vsyncpa [#allocation7], 1 }
0x16f6   :  { %4567 = vsyncpa [#allocation10], 1 }
0x16f7   :  { %4569 = vsyncpa [#allocation10 + $0x1], 1 }
0x16f8   :  { %4570 = vsyncpa [#allocation13], 1 }
0x16f9   :  { %4572 = vsyncpa [#allocation13 + $0x1], 1 }
0x16fa   :  { %4573 = vsyncpa [#allocation16], 1 }
0x16fb   :  { %4575 = vsyncpa [#allocation16 + $0x1], 1 }
0x16fc   :  { %4576 = vsyncpa [#allocation19], 1 }
0x16fd   :  { %4578 = vsyncpa [#allocation19 + $0x1], 1 }
0x16fe   :  { %4579 = vsyncpa [#allocation5], 1 }
0x16ff   :  { %4581 = vsyncpa [#allocation5 + $0x1], 1 }

</bundles_post_ra>
